<compile_context>
chip_gen: v7x
topology: tpu7x:2x2x1
jax: 0.10.0
libtpu: 0.0.40
codegen_flags: <defaults>
</compile_context>

<pallas_src>
import functools

import jax
import jax.numpy as jnp
from jax.experimental import pallas as pl
from jax.experimental.pallas import tpu as pltpu


# ------------------------------- Pallas kernels ------------------------------ #

def _matmul_bias_relu_kernel(a_ref, w_ref, b_ref, o_ref):
    """o = relu(a @ w + b) for one (TM, K) x (K, N) tile; bf16 in, bf16 out, f32 acc."""
    acc = jnp.dot(a_ref[...], w_ref[...], preferred_element_type=jnp.float32)
    acc = acc + b_ref[...]                                  # (TM, N) + (1, N)
    o_ref[...] = jnp.maximum(acc, 0.0).astype(o_ref.dtype)


def _fc_head_kernel(a_ref, wfc_ref, bfc_ref, wh_ref, bh_ref, o_ref):
    """Fused fc_intermediate + (mean | logvar) heads for one batch tile.

    a_ref : [TB, 1024] bf16   (conv4 output, (p, c)-flattened per example)
    wfc   : [1024, 128] bf16   bfc : [1, 128] f32
    wh    : [128, NH]  bf16    bh  : [1, NH]  f32   (mean|logvar concat, lane-padded)
    o_ref : [TB, NH] f32
    """
    h = jnp.dot(a_ref[...], wfc_ref[...], preferred_element_type=jnp.float32)
    h = jnp.maximum(h + bfc_ref[...], 0.0).astype(jnp.bfloat16)      # fc + ReLU
    out = jnp.dot(h, wh_ref[...], preferred_element_type=jnp.float32) + bh_ref[...]
    o_ref[...] = out.astype(o_ref.dtype)


# ------------------------------ kernel wrappers ------------------------------ #

def _pick_tile_rows(m, k, n, budget_bytes=8 << 20):
    """Largest row tile dividing m whose double-buffered A + out tiles fit the budget."""
    for t in (4096, 2048, 1024, 512, 256, 128, 64, 32, 16, 8):
        if m % t == 0 and 2 * t * (k + n) * 2 <= budget_bytes:
            return t
    return m


def _pick_tile_batch(b):
    for t in (256, 128, 64, 32, 16, 8):
        if b % t == 0:
            return t
    return b


def conv_matmul(a, w, b):
    """a: [M, K] bf16, w: [K, N] bf16, b: [1, N] f32 -> relu(a@w+b) [M, N] bf16."""
    m, k = a.shape
    n = w.shape[1]
    tm = _pick_tile_rows(m, k, n)
    return pl.pallas_call(
        _matmul_bias_relu_kernel,
        out_shape=jax.ShapeDtypeStruct((m, n), jnp.bfloat16),
        grid_spec=pltpu.PrefetchScalarGridSpec(
            num_scalar_prefetch=0,
            grid=(m // tm,),
            in_specs=[
                pl.BlockSpec((tm, k), lambda i: (i, 0)),
                pl.BlockSpec((k, n), lambda i: (0, 0)),
                pl.BlockSpec((1, n), lambda i: (0, 0)),
            ],
            out_specs=pl.BlockSpec((tm, n), lambda i: (i, 0)),
        ),
        compiler_params=pltpu.CompilerParams(
            dimension_semantics=("parallel",)),
    )(a, w, b)


def fc_head_call(flat, wfc, bfc, wh, bh):
    """flat: [B, 1024] bf16 -> [B, NH] f32 (fc_intermediate + fused heads), batch-gridded."""
    bsz, kf = flat.shape
    hfc = wfc.shape[1]
    nh = wh.shape[1]
    tb = _pick_tile_batch(bsz)
    return pl.pallas_call(
        _fc_head_kernel,
        out_shape=jax.ShapeDtypeStruct((bsz, nh), jnp.float32),
        grid_spec=pltpu.PrefetchScalarGridSpec(
            num_scalar_prefetch=0,
            grid=(bsz // tb,),
            in_specs=[
                pl.BlockSpec((tb, kf), lambda i: (i, 0)),
                pl.BlockSpec((kf, hfc), lambda i: (0, 0)),
                pl.BlockSpec((1, hfc), lambda i: (0, 0)),
                pl.BlockSpec((hfc, nh), lambda i: (0, 0)),
                pl.BlockSpec((1, nh), lambda i: (0, 0)),
            ],
            out_specs=pl.BlockSpec((tb, nh), lambda i: (i, 0)),
        ),
        compiler_params=pltpu.CompilerParams(
            dimension_semantics=("parallel",)),
    )(flat, wfc, bfc, wh, bh)


# --------------------------------- XLA glue ---------------------------------- #

def _im2col_nhwc(x):
    """x: [B, H, W, C] NHWC -> patches [B*Ho*Wo, 16*C]; feature order (kh, kw, c)."""
    bsz, h, w, c = x.shape
    ho, wo = h // 2, w // 2
    xp = jnp.pad(x, ((0, 0), (1, 1), (1, 1), (0, 0)))
    cols = []
    for kh in range(4):
        for kw in range(4):
            cols.append(xp[:, kh:kh + 2 * ho:2, kw:kw + 2 * wo:2, :])
    patches = jnp.concatenate(cols, axis=-1)                # [B, Ho, Wo, 16*C]
    return patches.reshape(bsz * ho * wo, 16 * c)


def conv_block(x_nhwc, w_mat, b_row):
    """Conv2d(k=4, s=2, p=1) + ReLU via im2col + fused Pallas matmul (NHWC)."""
    bsz, h, w, _ = x_nhwc.shape
    ho, wo = h // 2, w // 2
    patches = _im2col_nhwc(x_nhwc)
    y = conv_matmul(patches, w_mat, b_row)                  # [B*Ho*Wo, Cout] bf16
    return y.reshape(bsz, ho, wo, w_mat.shape[1])


# ------------------------------ parameters ----------------------------------- #

def init_encoder_params(key, latent_dim):
    """PyTorch-layout parameters (same semantics as nn.Conv2d / nn.Linear)."""
    ks = jax.random.split(key, 14)
    scale = 0.05

    def w(k, shape):
        return (scale * jax.random.normal(k, shape)).astype(jnp.float32)

    return {
        "conv1_w": w(ks[0], (32, 1, 4, 4)),   "conv1_b": w(ks[1], (32,)),
        "conv2_w": w(ks[2], (32, 32, 4, 4)),  "conv2_b": w(ks[3], (32,)),
        "conv3_w": w(ks[4], (64, 32, 4, 4)),  "conv3_b": w(ks[5], (64,)),
        "conv4_w": w(ks[6], (64, 64, 4, 4)),  "conv4_b": w(ks[7], (64,)),
        "fc_w":    w(ks[8], (128, 64 * 4 * 4)), "fc_b": w(ks[9], (128,)),
        "mean_w":  w(ks[10], (latent_dim, 128)), "mean_b": w(ks[11], (latent_dim,)),
        "lv_w":    w(ks[12], (latent_dim, 128)), "lv_b":   w(ks[13], (latent_dim,)),
    }


def prepare_encoder_params(params, latent_dim):
    """One-time weight repacking: NHWC/(kh,kw,c) order, bf16 operands, fused heads."""
    def conv_mat(w):                             # [Co, Ci, 4, 4] -> [16*Ci, Co]
        co, ci = w.shape[0], w.shape[1]
        return jnp.transpose(w, (2, 3, 1, 0)).reshape(16 * ci, co).astype(jnp.bfloat16)

    def row(b):
        return b.astype(jnp.float32).reshape(1, -1)

    # fc weight: PyTorch K order (c, h, w) -> conv4 output flatten order (p=h*4+w, c).
    wfc = jnp.transpose(params["fc_w"].reshape(128, 64, 4, 4), (0, 2, 3, 1))
    wfc = wfc.reshape(128, 1024).T.astype(jnp.bfloat16)      # [1024, 128], rows (p, c)

    # Fused mean|logvar head, lane-padded to a multiple of 128.
    nh = 128 * ((2 * latent_dim + 127) // 128)
    wh_full = jnp.concatenate([params["mean_w"], params["lv_w"]], axis=0).T  # [128, 2L]
    wh = jnp.zeros((128, nh), jnp.float32).at[:, :2 * latent_dim].set(wh_full)
    wh = wh.astype(jnp.bfloat16)
    bh = jnp.zeros((1, nh), jnp.float32).at[0, :2 * latent_dim].set(
        jnp.concatenate([params["mean_b"], params["lv_b"]]))

    return {
        # conv1 runs as a plain XLA conv (review: <1% of FLOPs, not worth a launch).
        "w1_hwio": jnp.transpose(params["conv1_w"], (2, 3, 1, 0)).astype(jnp.float32),
        "b1": params["conv1_b"].astype(jnp.float32),
        "w2": conv_mat(params["conv2_w"]), "b2": row(params["conv2_b"]),
        "w3": conv_mat(params["conv3_w"]), "b3": row(params["conv3_b"]),
        "w4": conv_mat(params["conv4_w"]), "b4": row(params["conv4_b"]),
        "wfc": wfc, "bfc": row(params["fc_b"]),
        "wh": wh, "bh": bh,
    }


# -------------------------------- forward ------------------------------------ #

def encoder_forward(prep, x, latent_dim):
    """x: [B, 1, 64, 64] NCHW f32 -> (mean [B, L], logvar [B, L]) f32."""
    bsz = x.shape[0]
    xh = x.reshape(bsz, 64, 64, 1)                           # C==1: NCHW -> NHWC is free

    # conv1: plain XLA conv (reviewer-directed; tiny FLOPs, 16-lane patches waste the MXU).
    h = jax.lax.conv_general_dilated(
        xh, prep["w1_hwio"], window_strides=(2, 2), padding=((1, 1), (1, 1)),
        dimension_numbers=("NHWC", "HWIO", "NHWC"))
    h = jax.nn.relu(h + prep["b1"]).astype(jnp.bfloat16)     # [B, 32, 32, 32]

    # conv2 / conv3: im2col + fused Pallas matmul+bias+ReLU, tiled over M.
    h = conv_block(h, prep["w2"], prep["b2"])                # [B, 16, 16, 32]
    h = conv_block(h, prep["w3"], prep["b3"])                # [B,  8,  8, 64]

    # conv4: ONE well-shaped matmul over all B*16 output positions.
    p4 = _im2col_nhwc(h)                                     # [B*16, 1024] bf16
    y4 = conv_matmul(p4, prep["w4"], prep["b4"])             # [B*16, 64]  bf16

    # Free row-major reshape -> [B, 1024] in (p, c) order, exactly what wfc expects.
    flat = y4.reshape(bsz, 16 * 64)

    # fc_intermediate + fused mean|logvar heads, gridded over batch.
    out = fc_head_call(flat, prep["wfc"], prep["bfc"], prep["wh"], prep["bh"])
    return out[:, :latent_dim], out[:, latent_dim:2 * latent_dim]


# ----------------------- pure-JAX f32 reference (check) ---------------------- #

def encoder_reference(params, x):
    def conv(h, w, b):
        y = jax.lax.conv_general_dilated(
            h, w, window_strides=(2, 2), padding=((1, 1), (1, 1)),
            dimension_numbers=("NCHW", "OIHW", "NCHW"))
        return jax.nn.relu(y + b.reshape(1, -1, 1, 1))

    h = conv(x, params["conv1_w"], params["conv1_b"])
    h = conv(h, params["conv2_w"], params["conv2_b"])
    h = conv(h, params["conv3_w"], params["conv3_b"])
    h = conv(h, params["conv4_w"], params["conv4_b"])
    h = h.reshape(h.shape[0], -1)
    h = jax.nn.relu(h @ params["fc_w"].T + params["fc_b"])
    mean = h @ params["mean_w"].T + params["mean_b"]
    logvar = h @ params["lv_w"].T + params["lv_b"]
    return mean, logvar


# ---------------------------------- main -------------------------------------- #

if __name__ == "__main__":
    latent_dim = 10
    batch = 2

    key = jax.random.PRNGKey(0)
    k_params, k_x = jax.random.split(key)
    params = init_encoder_params(k_params, latent_dim)
    prep = prepare_encoder_params(params, latent_dim)        # one-time weight prep
    x = jax.random.normal(k_x, (batch, 1, 64, 64), dtype=jnp.float32)

    fwd = jax.jit(functools.partial(encoder_forward, latent_dim=latent_dim))
    mean, logvar = fwd(prep, x)
    jax.block_until_ready((mean, logvar))

    assert mean.shape == (batch, latent_dim)
    assert logvar.shape == (batch, latent_dim)
    assert bool(jnp.all(jnp.isfinite(mean))) and bool(jnp.all(jnp.isfinite(logvar)))

    # Correctness vs. f32 reference (bf16 MXU operands -> generous tolerance).
    ref_mean, ref_logvar = jax.jit(encoder_reference)(params, x)
    assert bool(jnp.allclose(mean, ref_mean, atol=5e-2, rtol=5e-2))
    assert bool(jnp.allclose(logvar, ref_logvar, atol=5e-2, rtol=5e-2))

    print("KERNEL_OK")
</pallas_src>

<mosaic_0001>
module attributes {stable_mosaic.version = 11 : i64} {
  func.func @_matmul_bias_relu_kernel(%arg0: i32, %arg1: memref<512x512xbf16, #tpu.memory_space<vmem>>, %arg2: memref<512x32xbf16, #tpu.memory_space<vmem>>, %arg3: memref<1x32xf32, #tpu.memory_space<vmem>>, %arg4: memref<512x32xbf16, #tpu.memory_space<vmem>>) attributes {dimension_semantics = [#tpu.dimension_semantics<parallel>], iteration_bounds = array<i64: 1>, scalar_prefetch = 0 : i64, scratch_operands = 0 : i64, tpu.core_type = #tpu.core_type<tc>, window_params = [{transform_indices = @transform_0, window_bounds = array<i64: 512, 512>}, {pipeline_mode = #tpu.pipeline_mode<synchronous>, transform_indices = @transform_1, window_bounds = array<i64: 512, 32>}, {pipeline_mode = #tpu.pipeline_mode<synchronous>, transform_indices = @transform_2, window_bounds = array<i64: 1, 32>}, {transform_indices = @transform_3, window_bounds = array<i64: 512, 32>}]} {
    %c0 = arith.constant 0 : index
    %c0_0 = arith.constant 0 : index
    %0 = vector.load %arg1[%c0, %c0_0] : memref<512x512xbf16, #tpu.memory_space<vmem>>, vector<512x512xbf16>
    %c0_1 = arith.constant 0 : index
    %c0_2 = arith.constant 0 : index
    %1 = vector.load %arg2[%c0_1, %c0_2] : memref<512x32xbf16, #tpu.memory_space<vmem>>, vector<512x32xbf16>
    %cst = arith.constant dense<0.000000e+00> : vector<512x32xf32>
    %2 = tpu.matmul %0, %1, %cst {dimension_numbers = #tpu.dot_dimension_numbers<[1], [0], [0], [1], [0, 0, 1, 1], [], []>} : vector<512x512xbf16>, vector<512x32xbf16>, vector<512x32xf32> -> vector<512x32xf32>
    %c0_3 = arith.constant 0 : index
    %c0_4 = arith.constant 0 : index
    %3 = vector.load %arg3[%c0_3, %c0_4] : memref<1x32xf32, #tpu.memory_space<vmem>>, vector<1x32xf32>
    %4 = vector.broadcast %3 : vector<1x32xf32> to vector<512x32xf32>
    %5 = arith.addf %2, %4 : vector<512x32xf32>
    %cst_5 = arith.constant 0.000000e+00 : f32
    %6 = vector.broadcast %cst_5 : f32 to vector<512x32xf32>
    %7 = arith.maximumf %5, %6 : vector<512x32xf32>
    %8 = arith.truncf %7 : vector<512x32xf32> to vector<512x32xbf16>
    %c0_6 = arith.constant 0 : index
    %c0_7 = arith.constant 0 : index
    %9 = vector.load %arg4[%c0_6, %c0_7] : memref<512x32xbf16, #tpu.memory_space<vmem>>, vector<512x32xbf16>
    tpu.vector_store %arg4[%c0_6, %c0_7], %8 {strides = array<i32>} : memref<512x32xbf16, #tpu.memory_space<vmem>>, vector<512x32xbf16>,
    return
  }
  func.func @transform_0(%arg0: i32) -> (i32, i32) {
    %c0_i32 = arith.constant 0 : i32
    %c0_i32_0 = arith.constant 0 : i32
    return %arg0, %c0_i32 : i32, i32
  }
  func.func @transform_1(%arg0: i32) -> (i32, i32) {
    %c0_i32 = arith.constant 0 : i32
    %c0_i32_0 = arith.constant 0 : i32
    %c0_i32_1 = arith.constant 0 : i32
    return %c0_i32, %c0_i32_0 : i32, i32
  }
  func.func @transform_2(%arg0: i32) -> (i32, i32) {
    %c0_i32 = arith.constant 0 : i32
    %c0_i32_0 = arith.constant 0 : i32
    %c0_i32_1 = arith.constant 0 : i32
    return %c0_i32, %c0_i32_0 : i32, i32
  }
  func.func @transform_3(%arg0: i32) -> (i32, i32) {
    %c0_i32 = arith.constant 0 : i32
    %c0_i32_0 = arith.constant 0 : i32
    return %arg0, %c0_i32 : i32, i32
  }
}

module attributes {stable_mosaic.version = 11 : i64} {
  func.func @_matmul_bias_relu_kernel(%arg0: i32, %arg1: memref<128x512xbf16, #tpu.memory_space<vmem>>, %arg2: memref<512x64xbf16, #tpu.memory_space<vmem>>, %arg3: memref<1x64xf32, #tpu.memory_space<vmem>>, %arg4: memref<128x64xbf16, #tpu.memory_space<vmem>>) attributes {dimension_semantics = [#tpu.dimension_semantics<parallel>], iteration_bounds = array<i64: 1>, scalar_prefetch = 0 : i64, scratch_operands = 0 : i64, tpu.core_type = #tpu.core_type<tc>, window_params = [{transform_indices = @transform_0, window_bounds = array<i64: 128, 512>}, {pipeline_mode = #tpu.pipeline_mode<synchronous>, transform_indices = @transform_1, window_bounds = array<i64: 512, 64>}, {pipeline_mode = #tpu.pipeline_mode<synchronous>, transform_indices = @transform_2, window_bounds = array<i64: 1, 64>}, {transform_indices = @transform_3, window_bounds = array<i64: 128, 64>}]} {
    %c0 = arith.constant 0 : index
    %c0_0 = arith.constant 0 : index
    %0 = vector.load %arg1[%c0, %c0_0] : memref<128x512xbf16, #tpu.memory_space<vmem>>, vector<128x512xbf16>
    %c0_1 = arith.constant 0 : index
    %c0_2 = arith.constant 0 : index
    %1 = vector.load %arg2[%c0_1, %c0_2] : memref<512x64xbf16, #tpu.memory_space<vmem>>, vector<512x64xbf16>
    %cst = arith.constant dense<0.000000e+00> : vector<128x64xf32>
    %2 = tpu.matmul %0, %1, %cst {dimension_numbers = #tpu.dot_dimension_numbers<[1], [0], [0], [1], [0, 0, 1, 1], [], []>} : vector<128x512xbf16>, vector<512x64xbf16>, vector<128x64xf32> -> vector<128x64xf32>
    %c0_3 = arith.constant 0 : index
    %c0_4 = arith.constant 0 : index
    %3 = vector.load %arg3[%c0_3, %c0_4] : memref<1x64xf32, #tpu.memory_space<vmem>>, vector<1x64xf32>
    %4 = vector.broadcast %3 : vector<1x64xf32> to vector<128x64xf32>
    %5 = arith.addf %2, %4 : vector<128x64xf32>
    %cst_5 = arith.constant 0.000000e+00 : f32
    %6 = vector.broadcast %cst_5 : f32 to vector<128x64xf32>
    %7 = arith.maximumf %5, %6 : vector<128x64xf32>
    %8 = arith.truncf %7 : vector<128x64xf32> to vector<128x64xbf16>
    %c0_6 = arith.constant 0 : index
    %c0_7 = arith.constant 0 : index
    %9 = vector.load %arg4[%c0_6, %c0_7] : memref<128x64xbf16, #tpu.memory_space<vmem>>, vector<128x64xbf16>
    tpu.vector_store %arg4[%c0_6, %c0_7], %8 {strides = array<i32>} : memref<128x64xbf16, #tpu.memory_space<vmem>>, vector<128x64xbf16>,
    return
  }
  func.func @transform_0(%arg0: i32) -> (i32, i32) {
    %c0_i32 = arith.constant 0 : i32
    %c0_i32_0 = arith.constant 0 : i32
    return %arg0, %c0_i32 : i32, i32
  }
  func.func @transform_1(%arg0: i32) -> (i32, i32) {
    %c0_i32 = arith.constant 0 : i32
    %c0_i32_0 = arith.constant 0 : i32
    %c0_i32_1 = arith.constant 0 : i32
    return %c0_i32, %c0_i32_0 : i32, i32
  }
  func.func @transform_2(%arg0: i32) -> (i32, i32) {
    %c0_i32 = arith.constant 0 : i32
    %c0_i32_0 = arith.constant 0 : i32
    %c0_i32_1 = arith.constant 0 : i32
    return %c0_i32, %c0_i32_0 : i32, i32
  }
  func.func @transform_3(%arg0: i32) -> (i32, i32) {
    %c0_i32 = arith.constant 0 : i32
    %c0_i32_0 = arith.constant 0 : i32
    return %arg0, %c0_i32 : i32, i32
  }
}

module attributes {stable_mosaic.version = 11 : i64} {
  func.func @_matmul_bias_relu_kernel(%arg0: i32, %arg1: memref<32x1024xbf16, #tpu.memory_space<vmem>>, %arg2: memref<1024x64xbf16, #tpu.memory_space<vmem>>, %arg3: memref<1x64xf32, #tpu.memory_space<vmem>>, %arg4: memref<32x64xbf16, #tpu.memory_space<vmem>>) attributes {dimension_semantics = [#tpu.dimension_semantics<parallel>], iteration_bounds = array<i64: 1>, scalar_prefetch = 0 : i64, scratch_operands = 0 : i64, tpu.core_type = #tpu.core_type<tc>, window_params = [{transform_indices = @transform_0, window_bounds = array<i64: 32, 1024>}, {pipeline_mode = #tpu.pipeline_mode<synchronous>, transform_indices = @transform_1, window_bounds = array<i64: 1024, 64>}, {pipeline_mode = #tpu.pipeline_mode<synchronous>, transform_indices = @transform_2, window_bounds = array<i64: 1, 64>}, {transform_indices = @transform_3, window_bounds = array<i64: 32, 64>}]} {
    %c0 = arith.constant 0 : index
    %c0_0 = arith.constant 0 : index
    %0 = vector.load %arg1[%c0, %c0_0] : memref<32x1024xbf16, #tpu.memory_space<vmem>>, vector<32x1024xbf16>
    %c0_1 = arith.constant 0 : index
    %c0_2 = arith.constant 0 : index
    %1 = vector.load %arg2[%c0_1, %c0_2] : memref<1024x64xbf16, #tpu.memory_space<vmem>>, vector<1024x64xbf16>
    %cst = arith.constant dense<0.000000e+00> : vector<32x64xf32>
    %2 = tpu.matmul %0, %1, %cst {dimension_numbers = #tpu.dot_dimension_numbers<[1], [0], [0], [1], [0, 0, 1, 1], [], []>} : vector<32x1024xbf16>, vector<1024x64xbf16>, vector<32x64xf32> -> vector<32x64xf32>
    %c0_3 = arith.constant 0 : index
    %c0_4 = arith.constant 0 : index
    %3 = vector.load %arg3[%c0_3, %c0_4] : memref<1x64xf32, #tpu.memory_space<vmem>>, vector<1x64xf32>
    %4 = vector.broadcast %3 : vector<1x64xf32> to vector<32x64xf32>
    %5 = arith.addf %2, %4 : vector<32x64xf32>
    %cst_5 = arith.constant 0.000000e+00 : f32
    %6 = vector.broadcast %cst_5 : f32 to vector<32x64xf32>
    %7 = arith.maximumf %5, %6 : vector<32x64xf32>
    %8 = arith.truncf %7 : vector<32x64xf32> to vector<32x64xbf16>
    %c0_6 = arith.constant 0 : index
    %c0_7 = arith.constant 0 : index
    %9 = vector.load %arg4[%c0_6, %c0_7] : memref<32x64xbf16, #tpu.memory_space<vmem>>, vector<32x64xbf16>
    tpu.vector_store %arg4[%c0_6, %c0_7], %8 {strides = array<i32>} : memref<32x64xbf16, #tpu.memory_space<vmem>>, vector<32x64xbf16>,
    return
  }
  func.func @transform_0(%arg0: i32) -> (i32, i32) {
    %c0_i32 = arith.constant 0 : i32
    %c0_i32_0 = arith.constant 0 : i32
    return %arg0, %c0_i32 : i32, i32
  }
  func.func @transform_1(%arg0: i32) -> (i32, i32) {
    %c0_i32 = arith.constant 0 : i32
    %c0_i32_0 = arith.constant 0 : i32
    %c0_i32_1 = arith.constant 0 : i32
    return %c0_i32, %c0_i32_0 : i32, i32
  }
  func.func @transform_2(%arg0: i32) -> (i32, i32) {
    %c0_i32 = arith.constant 0 : i32
    %c0_i32_0 = arith.constant 0 : i32
    %c0_i32_1 = arith.constant 0 : i32
    return %c0_i32, %c0_i32_0 : i32, i32
  }
  func.func @transform_3(%arg0: i32) -> (i32, i32) {
    %c0_i32 = arith.constant 0 : i32
    %c0_i32_0 = arith.constant 0 : i32
    return %arg0, %c0_i32 : i32, i32
  }
}

module attributes {stable_mosaic.version = 11 : i64} {
  func.func @_fc_head_kernel(%arg0: i32, %arg1: memref<2x1024xbf16, #tpu.memory_space<vmem>>, %arg2: memref<1024x128xbf16, #tpu.memory_space<vmem>>, %arg3: memref<1x128xf32, #tpu.memory_space<vmem>>, %arg4: memref<128x128xbf16, #tpu.memory_space<vmem>>, %arg5: memref<1x128xf32, #tpu.memory_space<vmem>>, %arg6: memref<2x128xf32, #tpu.memory_space<vmem>>) attributes {dimension_semantics = [#tpu.dimension_semantics<parallel>], iteration_bounds = array<i64: 1>, scalar_prefetch = 0 : i64, scratch_operands = 0 : i64, tpu.core_type = #tpu.core_type<tc>, window_params = [{transform_indices = @transform_0, window_bounds = array<i64: 2, 1024>}, {pipeline_mode = #tpu.pipeline_mode<synchronous>, transform_indices = @transform_1, window_bounds = array<i64: 1024, 128>}, {pipeline_mode = #tpu.pipeline_mode<synchronous>, transform_indices = @transform_2, window_bounds = array<i64: 1, 128>}, {pipeline_mode = #tpu.pipeline_mode<synchronous>, transform_indices = @transform_3, window_bounds = array<i64: 128, 128>}, {pipeline_mode = #tpu.pipeline_mode<synchronous>, transform_indices = @transform_4, window_bounds = array<i64: 1, 128>}, {transform_indices = @transform_5, window_bounds = array<i64: 2, 128>}]} {
    %c0 = arith.constant 0 : index
    %c0_0 = arith.constant 0 : index
    %0 = vector.load %arg1[%c0, %c0_0] : memref<2x1024xbf16, #tpu.memory_space<vmem>>, vector<2x1024xbf16>
    %c0_1 = arith.constant 0 : index
    %c0_2 = arith.constant 0 : index
    %1 = vector.load %arg2[%c0_1, %c0_2] : memref<1024x128xbf16, #tpu.memory_space<vmem>>, vector<1024x128xbf16>
    %cst = arith.constant dense<0.000000e+00> : vector<2x128xf32>
    %2 = tpu.matmul %0, %1, %cst {dimension_numbers = #tpu.dot_dimension_numbers<[1], [0], [0], [1], [0, 0, 1, 1], [], []>} : vector<2x1024xbf16>, vector<1024x128xbf16>, vector<2x128xf32> -> vector<2x128xf32>
    %c0_3 = arith.constant 0 : index
    %c0_4 = arith.constant 0 : index
    %3 = vector.load %arg3[%c0_3, %c0_4] : memref<1x128xf32, #tpu.memory_space<vmem>>, vector<1x128xf32>
    %4 = vector.broadcast %3 : vector<1x128xf32> to vector<2x128xf32>
    %5 = arith.addf %2, %4 : vector<2x128xf32>
    %cst_5 = arith.constant 0.000000e+00 : f32
    %6 = vector.broadcast %cst_5 : f32 to vector<2x128xf32>
    %7 = arith.maximumf %5, %6 : vector<2x128xf32>
    %8 = arith.truncf %7 : vector<2x128xf32> to vector<2x128xbf16>
    %c0_6 = arith.constant 0 : index
    %c0_7 = arith.constant 0 : index
    %9 = vector.load %arg4[%c0_6, %c0_7] : memref<128x128xbf16, #tpu.memory_space<vmem>>, vector<128x128xbf16>
    %cst_8 = arith.constant dense<0.000000e+00> : vector<2x128xf32>
    %10 = tpu.matmul %8, %9, %cst_8 {dimension_numbers = #tpu.dot_dimension_numbers<[1], [0], [0], [1], [0, 0, 1, 1], [], []>} : vector<2x128xbf16>, vector<128x128xbf16>, vector<2x128xf32> -> vector<2x128xf32>
    %c0_9 = arith.constant 0 : index
    %c0_10 = arith.constant 0 : index
    %11 = vector.load %arg5[%c0_9, %c0_10] : memref<1x128xf32, #tpu.memory_space<vmem>>, vector<1x128xf32>
    %12 = vector.broadcast %11 : vector<1x128xf32> to vector<2x128xf32>
    %13 = arith.addf %10, %12 : vector<2x128xf32>
    %c0_11 = arith.constant 0 : index
    %c0_12 = arith.constant 0 : index
    %14 = vector.load %arg6[%c0_11, %c0_12] : memref<2x128xf32, #tpu.memory_space<vmem>>, vector<2x128xf32>
    tpu.vector_store %arg6[%c0_11, %c0_12], %13 {strides = array<i32>} : memref<2x128xf32, #tpu.memory_space<vmem>>, vector<2x128xf32>,
    return
  }
  func.func @transform_0(%arg0: i32) -> (i32, i32) {
    %c0_i32 = arith.constant 0 : i32
    %c0_i32_0 = arith.constant 0 : i32
    return %arg0, %c0_i32 : i32, i32
  }
  func.func @transform_1(%arg0: i32) -> (i32, i32) {
    %c0_i32 = arith.constant 0 : i32
    %c0_i32_0 = arith.constant 0 : i32
    %c0_i32_1 = arith.constant 0 : i32
    return %c0_i32, %c0_i32_0 : i32, i32
  }
  func.func @transform_2(%arg0: i32) -> (i32, i32) {
    %c0_i32 = arith.constant 0 : i32
    %c0_i32_0 = arith.constant 0 : i32
    %c0_i32_1 = arith.constant 0 : i32
    return %c0_i32, %c0_i32_0 : i32, i32
  }
  func.func @transform_3(%arg0: i32) -> (i32, i32) {
    %c0_i32 = arith.constant 0 : i32
    %c0_i32_0 = arith.constant 0 : i32
    %c0_i32_1 = arith.constant 0 : i32
    return %c0_i32, %c0_i32_0 : i32, i32
  }
  func.func @transform_4(%arg0: i32) -> (i32, i32) {
    %c0_i32 = arith.constant 0 : i32
    %c0_i32_0 = arith.constant 0 : i32
    %c0_i32_1 = arith.constant 0 : i32
    return %c0_i32, %c0_i32_0 : i32, i32
  }
  func.func @transform_5(%arg0: i32) -> (i32, i32) {
    %c0_i32 = arith.constant 0 : i32
    %c0_i32_0 = arith.constant 0 : i32
    return %arg0, %c0_i32 : i32, i32
  }
}

</mosaic_0001>

<bundles_post_ra>
// kernel: encoder_forward.4
= control target key start
LH: loop header
LB: loop body
LE: loop exit
PB: predicated region body
PF: predicated region fallthrough
CT: control target
= control target key end

     0   :  { %v2656_v0 = vmov 0   ;;  %vm1944_vm0 = vcmask 257024   ;;  %s3519_s1 = inlined_call_operand.vmem [shape: bf16[512,32], index: 1, kind: input, shape index: {}]   ;;  %s3520_s0 = inlined_call_operand.vmem [shape: bf16[512,512], index: 0, kind: input, shape index: {}]   ;;  %s3521_s2 = inlined_call_operand.vmem [shape: f32[1,32], index: 2, kind: input, shape index: {}]   ;;  %s3522_s3 = inlined_call_operand.vmem [shape: bf16[512,32], index: 3, kind: output, shape index: {}]  }
   0x1   :  { %1046 = vmatprep.subr.bf16.mxu1 %v2656_v0  ;;  %1335 = vmatprep.subr.bf16.mxu0 %v2656_v0  ;;  %v2431_v1 = vld [vmem:[%s3519_s1] sm:$0xff]   ;;  %v2433_v3 = vld [vmem:[%s3519_s1 + $0x8] sm:$0xff]   ;;  %v2435_v5 = vld [vmem:[%s3519_s1 + $0x10] sm:$0xff]  }
   0x2   :  { %v2432_v2 = vld [vmem:[%s3519_s1 + $0x80] sm:$0xff]   ;;  %1047 = vmatpush1.bf16.msra.mxu1 %v2431_v1  ;;  %v2434_v4 = vld [vmem:[%s3519_s1 + $0x88] sm:$0xff]   ;;  %v2436_v6 = vld [vmem:[%s3519_s1 + $0x90] sm:$0xff]  }
   0x3   :  { %1336 = vmatpush1.bf16.msra.mxu0 %v2432_v2  ;;  %1048 = vmatprep.subr.bf16.mxu1 %v2656_v0  ;;  %v2437_v7 = vld [vmem:[%s3519_s1 + $0x18] sm:$0xff]   ;;  %v2439_v9 = vld [vmem:[%s3519_s1 + $0x20] sm:$0xff]   ;;  %v2441_v11 = vld [vmem:[%s3519_s1 + $0x28] sm:$0xff]  }
   0x4   :  { %1337 = vmatprep.subr.bf16.mxu0 %v2656_v0  ;;  %v2438_v8 = vld [vmem:[%s3519_s1 + $0x98] sm:$0xff]   ;;  %v2440_v10 = vld [vmem:[%s3519_s1 + $0xa0] sm:$0xff]   ;;  %v2442_v12 = vld [vmem:[%s3519_s1 + $0xa8] sm:$0xff]  }
   0x5   :  { %v2443_v13 = vld [vmem:[%s3519_s1 + $0x30] sm:$0xff]   ;;  %v2445_v15 = vld [vmem:[%s3519_s1 + $0x38] sm:$0xff]   ;;  %v2447_v17 = vld [vmem:[%s3519_s1 + $0x40] sm:$0xff]  }
   0x6   :  { %1049 = vmatpush1.bf16.msra.mxu1 %v2433_v3  ;;  %v2444_v14 = vld [vmem:[%s3519_s1 + $0xb0] sm:$0xff]   ;;  %v2446_v16 = vld [vmem:[%s3519_s1 + $0xb8] sm:$0xff]   ;;  %v2448_v18 = vld [vmem:[%s3519_s1 + $0xc0] sm:$0xff]  }
   0x7   :  { %1338 = vmatpush1.bf16.msra.mxu0 %v2434_v4  ;;  %1050 = vmatprep.subr.bf16.mxu1 %v2656_v0  ;;  %v2465_v19 = vld [vmem:[%s3520_s0 + $0x4] ss:$16 sps:$4 sm:$0xff]   ;;  %v2449_v20 = vld [vmem:[%s3519_s1 + $0x48] sm:$0xff]   ;;  %v2453_v25 = vld [vmem:[%s3519_s1 + $0x58] sm:$0xff]  }
   0x8   :  { %1339 = vmatprep.subr.bf16.mxu0 %v2656_v0  ;;  %v2468_v21 = vld [vmem:[%s3520_s0 + $0xc] ss:$16 sps:$4 sm:$0xff]   ;;  %1078 = vmatprep.mubr.bf16.mxu1 %v2465_v19  ;;  %v2451_v23 = vld [vmem:[%s3519_s1 + $0x50] sm:$0xff]   ;;  %v2455_v27 = vld [vmem:[%s3519_s1 + $0x60] sm:$0xff]  }
   0x9   :  { %v2450_v22 = vld [vmem:[%s3519_s1 + $0xc8] sm:$0xff]   ;;  %1367 = vmatprep.mubr.bf16.mxu0 %v2468_v21  ;;  %v2452_v24 = vld [vmem:[%s3519_s1 + $0xd0] sm:$0xff]   ;;  %v2454_v26 = vld [vmem:[%s3519_s1 + $0xd8] sm:$0xff]  }
   0xa   :  { %1051 = vmatpush1.bf16.msra.mxu1 %v2435_v5  ;;  %v2456_v28 = vld [vmem:[%s3519_s1 + $0xe0] sm:$0xff]   ;;  %v2457_v29 = vld [vmem:[%s3519_s1 + $0x68] sm:$0xff]   ;;  %v2459_v31 = vld [vmem:[%s3519_s1 + $0x70] sm:$0xff]  }
   0xb   :  { %1340 = vmatpush1.bf16.msra.mxu0 %v2436_v6  ;;  %1052 = vmatprep.subr.bf16.mxu1 %v2656_v0  ;;  %v2458_v30 = vld [vmem:[%s3519_s1 + $0xe8] sm:$0xff]   ;;  %v2460_v32 = vld [vmem:[%s3519_s1 + $0xf0] sm:$0xff]   ;;  %v2461_v33 = vld [vmem:[%s3519_s1 + $0x78] sm:$0xff]  }
   0xc   :  { %1341 = vmatprep.subr.bf16.mxu0 %v2656_v0  ;;  %v2462_v34 = vld [vmem:[%s3519_s1 + $0xf8] sm:$0xff]   ;;  %v2463_v35 = vld [vmem:[%s3520_s0] ss:$16 sps:$4 sm:$0xff]   ;;  %v2469_v37 = vld [vmem:[%s3520_s0 + $0x24] ss:$16 sps:$4 sm:$0xff]  }
   0xd   :  { %v2466_v36 = vld [vmem:[%s3520_s0 + $0x8] ss:$16 sps:$4 sm:$0xff]   ;;  %v2471_v38 = vld [vmem:[%s3520_s0 + $0x2c] ss:$16 sps:$4 sm:$0xff]   ;;  %v2473_v39 = vld [vmem:[%s3520_s0 + $0x20] ss:$16 sps:$4 sm:$0xff]  }
   0xe   :  { %1053 = vmatpush1.bf16.msra.mxu1 %v2437_v7  ;;  %v2474_v40 = vld [vmem:[%s3520_s0 + $0x28] ss:$16 sps:$4 sm:$0xff]   ;;  %v2475_v41 = vld [vmem:[%s3520_s0 + $0x44] ss:$16 sps:$4 sm:$0xff]   ;;  %v2477_v42 = vld [vmem:[%s3520_s0 + $0x4c] ss:$16 sps:$4 sm:$0xff]  }
   0xf   :  { %1342 = vmatpush1.bf16.msra.mxu0 %v2438_v8  ;;  %1054 = vmatprep.subr.bf16.mxu1 %v2656_v0  ;;  %v2479_v43 = vld [vmem:[%s3520_s0 + $0x40] ss:$16 sps:$4 sm:$0xff]   ;;  %v2480_v44 = vld [vmem:[%s3520_s0 + $0x48] ss:$16 sps:$4 sm:$0xff]   ;;  %v2481_v45 = vld [vmem:[%s3520_s0 + $0x64] ss:$16 sps:$4 sm:$0xff]  }
  0x10   :  { %1343 = vmatprep.subr.bf16.mxu0 %v2656_v0  ;;  %v2483_v46 = vld [vmem:[%s3520_s0 + $0x6c] ss:$16 sps:$4 sm:$0xff]   ;;  %v2485_v47 = vld [vmem:[%s3520_s0 + $0x60] ss:$16 sps:$4 sm:$0xff]   ;;  %v2486_v48 = vld [vmem:[%s3520_s0 + $0x68] ss:$16 sps:$4 sm:$0xff]  }
  0x11   :  { %v2487_v49 = vld [vmem:[%s3520_s0 + $0x84] ss:$16 sps:$4 sm:$0xff]   ;;  %v2489_v50 = vld [vmem:[%s3520_s0 + $0x8c] ss:$16 sps:$4 sm:$0xff]   ;;  %v2491_v51 = vld [vmem:[%s3520_s0 + $0x80] ss:$16 sps:$4 sm:$0xff]  }
  0x12   :  { %1055 = vmatpush1.bf16.msra.mxu1 %v2439_v9  ;;  %v2492_v52 = vld [vmem:[%s3520_s0 + $0x88] ss:$16 sps:$4 sm:$0xff]   ;;  %v2493_v53 = vld [vmem:[%s3520_s0 + $0xa4] ss:$16 sps:$4 sm:$0xff]   ;;  %v2495_v54 = vld [vmem:[%s3520_s0 + $0xac] ss:$16 sps:$4 sm:$0xff]  }
  0x13   :  { %1344 = vmatpush1.bf16.msra.mxu0 %v2440_v10  ;;  %1056 = vmatprep.subr.bf16.mxu1 %v2656_v0  ;;  %v2497_v55 = vld [vmem:[%s3520_s0 + $0xa0] ss:$16 sps:$4 sm:$0xff]   ;;  %v2498_v56 = vld [vmem:[%s3520_s0 + $0xa8] ss:$16 sps:$4 sm:$0xff]   ;;  %v2499_v57 = vld [vmem:[%s3520_s0 + $0xc4] ss:$16 sps:$4 sm:$0xff]  }
  0x14   :  { %1345 = vmatprep.subr.bf16.mxu0 %v2656_v0  ;;  %v2501_v58 = vld [vmem:[%s3520_s0 + $0xcc] ss:$16 sps:$4 sm:$0xff]   ;;  %v2503_v59 = vld [vmem:[%s3520_s0 + $0xc0] ss:$16 sps:$4 sm:$0xff]   ;;  %v2504_v60 = vld [vmem:[%s3520_s0 + $0xc8] ss:$16 sps:$4 sm:$0xff]  }
  0x15   :  { %v2505_v61 = vld [vmem:[%s3520_s0 + $0xe4] ss:$16 sps:$4 sm:$0xff]   ;;  %v2507_v62 = vld [vmem:[%s3520_s0 + $0xec] ss:$16 sps:$4 sm:$0xff]   ;;  %v2509_v63 = vld [vmem:[%s3520_s0 + $0xe0] ss:$16 sps:$4 sm:$0xff]  }
  0x16   :  { %1057 = vmatpush1.bf16.msra.mxu1 %v2441_v11  ;;  %v2511_v1 = vld [vmem:[%s3520_s0 + $0x104] ss:$16 sps:$4 sm:$0xff]   ;;  %v2513_v2 = vld [vmem:[%s3520_s0 + $0x10c] ss:$16 sps:$4 sm:$0xff]   ;;  %v2515_v3 = vld [vmem:[%s3520_s0 + $0x100] ss:$16 sps:$4 sm:$0xff]  }
  0x17   :  { %1346 = vmatpush1.bf16.msra.mxu0 %v2442_v12  ;;  %1058 = vmatprep.subr.bf16.mxu1 %v2656_v0  ;;  %v2516_v4 = vld [vmem:[%s3520_s0 + $0x108] ss:$16 sps:$4 sm:$0xff]   ;;  %v2517_v5 = vld [vmem:[%s3520_s0 + $0x124] ss:$16 sps:$4 sm:$0xff]   ;;  %v2519_v6 = vld [vmem:[%s3520_s0 + $0x12c] ss:$16 sps:$4 sm:$0xff]  }
  0x18   :  { %1347 = vmatprep.subr.bf16.mxu0 %v2656_v0  ;;  %v2521_v7 = vld [vmem:[%s3520_s0 + $0x120] ss:$16 sps:$4 sm:$0xff]   ;;  %v2522_v8 = vld [vmem:[%s3520_s0 + $0x128] ss:$16 sps:$4 sm:$0xff]   ;;  %v2523_v9 = vld [vmem:[%s3520_s0 + $0x144] ss:$16 sps:$4 sm:$0xff]  }
  0x19   :  { %v2525_v10 = vld [vmem:[%s3520_s0 + $0x14c] ss:$16 sps:$4 sm:$0xff]   ;;  %v2527_v11 = vld [vmem:[%s3520_s0 + $0x140] ss:$16 sps:$4 sm:$0xff]   ;;  %v2528_v12 = vld [vmem:[%s3520_s0 + $0x148] ss:$16 sps:$4 sm:$0xff]  }
  0x1a   :  { %1059 = vmatpush1.bf16.msra.mxu1 %v2443_v13  ;;  %v2529_v13 = vld [vmem:[%s3520_s0 + $0x164] ss:$16 sps:$4 sm:$0xff]   ;;  %v2539_v19 = vld [vmem:[%s3520_s0 + $0x180] ss:$16 sps:$4 sm:$0xff]  }
  0x1b   :  { %1348 = vmatpush1.bf16.msra.mxu0 %v2444_v14  ;;  %1060 = vmatprep.subr.bf16.mxu1 %v2656_v0  ;;  %v2531_v14 = vld [vmem:[%s3520_s0 + $0x16c] ss:$16 sps:$4 sm:$0xff]   ;;  %v2541_v21 = vld [vmem:[%s3520_s0 + $0x1a4] ss:$16 sps:$4 sm:$0xff]  }
  0x1c   :  { %1349 = vmatprep.subr.bf16.mxu0 %v2656_v0 }
  0x1e   :  { %1061 = vmatpush1.bf16.msra.mxu1 %v2445_v15  ;;  %v2533_v15 = vld [vmem:[%s3520_s0 + $0x160] ss:$16 sps:$4 sm:$0xff]  }
  0x1f   :  { %1350 = vmatpush1.bf16.msra.mxu0 %v2446_v16  ;;  %1062 = vmatprep.subr.bf16.mxu1 %v2656_v0  ;;  %v2534_v16 = vld [vmem:[%s3520_s0 + $0x168] ss:$16 sps:$4 sm:$0xff]  }
  0x20   :  { %1351 = vmatprep.subr.bf16.mxu0 %v2656_v0 }
  0x22   :  { %1063 = vmatpush1.bf16.msra.mxu1 %v2447_v17  ;;  %v2535_v17 = vld [vmem:[%s3520_s0 + $0x184] ss:$16 sps:$4 sm:$0xff]  }
  0x23   :  { %1352 = vmatpush1.bf16.msra.mxu0 %v2448_v18  ;;  %1064 = vmatprep.subr.bf16.mxu1 %v2656_v0  ;;  %v2537_v18 = vld [vmem:[%s3520_s0 + $0x18c] ss:$16 sps:$4 sm:$0xff]  }
  0x24   :  { %1353 = vmatprep.subr.bf16.mxu0 %v2656_v0 }
  0x26   :  { %1065 = vmatpush1.bf16.msra.mxu1 %v2449_v20  ;;  %v2540_v20 = vld [vmem:[%s3520_s0 + $0x188] ss:$16 sps:$4 sm:$0xff]  }
  0x27   :  { %1354 = vmatpush1.bf16.msra.mxu0 %v2450_v22  ;;  %1066 = vmatprep.subr.bf16.mxu1 %v2656_v0  ;;  %v2543_v22 = vld [vmem:[%s3520_s0 + $0x1ac] ss:$16 sps:$4 sm:$0xff]  }
  0x28   :  { %1355 = vmatprep.subr.bf16.mxu0 %v2656_v0 }
  0x2a   :  { %1067 = vmatpush1.bf16.msra.mxu1 %v2451_v23  ;;  %v2545_v23 = vld [vmem:[%s3520_s0 + $0x1a0] ss:$16 sps:$4 sm:$0xff]  }
  0x2b   :  { %1356 = vmatpush1.bf16.msra.mxu0 %v2452_v24  ;;  %1068 = vmatprep.subr.bf16.mxu1 %v2656_v0  ;;  %v2546_v24 = vld [vmem:[%s3520_s0 + $0x1a8] ss:$16 sps:$4 sm:$0xff]  }
  0x2c   :  { %1357 = vmatprep.subr.bf16.mxu0 %v2656_v0 }
  0x2e   :  { %1069 = vmatpush1.bf16.msra.mxu1 %v2453_v25  ;;  %v2547_v25 = vld [vmem:[%s3520_s0 + $0x1c4] ss:$16 sps:$4 sm:$0xff]  }
  0x2f   :  { %1358 = vmatpush1.bf16.msra.mxu0 %v2454_v26  ;;  %1070 = vmatprep.subr.bf16.mxu1 %v2656_v0  ;;  %v2549_v26 = vld [vmem:[%s3520_s0 + $0x1cc] ss:$16 sps:$4 sm:$0xff]  }
  0x30   :  { %1359 = vmatprep.subr.bf16.mxu0 %v2656_v0 }
  0x32   :  { %1071 = vmatpush1.bf16.msra.mxu1 %v2455_v27  ;;  %v2551_v27 = vld [vmem:[%s3520_s0 + $0x1c0] ss:$16 sps:$4 sm:$0xff]  }
  0x33   :  { %1360 = vmatpush1.bf16.msra.mxu0 %v2456_v28  ;;  %1072 = vmatprep.subr.bf16.mxu1 %v2656_v0  ;;  %v2552_v28 = vld [vmem:[%s3520_s0 + $0x1c8] ss:$16 sps:$4 sm:$0xff]  }
  0x34   :  { %1361 = vmatprep.subr.bf16.mxu0 %v2656_v0 }
  0x36   :  { %1073 = vmatpush1.bf16.msra.mxu1 %v2457_v29  ;;  %v2553_v29 = vld [vmem:[%s3520_s0 + $0x1e4] ss:$16 sps:$4 sm:$0xff]  }
  0x37   :  { %1362 = vmatpush1.bf16.msra.mxu0 %v2458_v30  ;;  %1074 = vmatprep.subr.bf16.mxu1 %v2656_v0  ;;  %v2555_v30 = vld [vmem:[%s3520_s0 + $0x1ec] ss:$16 sps:$4 sm:$0xff]  }
  0x38   :  { %1363 = vmatprep.subr.bf16.mxu0 %v2656_v0 }
  0x3a   :  { %1075 = vmatpush1.bf16.msra.mxu1 %v2459_v31  ;;  %v2557_v31 = vld [vmem:[%s3520_s0 + $0x1e0] ss:$16 sps:$4 sm:$0xff]  }
  0x3b   :  { %1364 = vmatpush1.bf16.msra.mxu0 %v2460_v32  ;;  %1076 = vmatprep.subr.bf16.mxu1 %v2656_v0  ;;  %v2558_v32 = vld [vmem:[%s3520_s0 + $0x1e8] ss:$16 sps:$4 sm:$0xff]  }
  0x3c   :  { %1365 = vmatprep.subr.bf16.mxu0 %v2656_v0  ;;  %v2510_v0 = vld [vmem:[%s3520_s0 + $0xe8] ss:$16 sps:$4 sm:$0xff]  }
  0x3e   :  { %1077 = vmatpush1.bf16.msra.mxu1 %v2461_v33  ;;  %v2559_v33 = vld [vmem:[%s3520_s0 + $0x204] ss:$16 sps:$4 sm:$0xff]  }
  0x3f   :  { %1366 = vmatpush1.bf16.msra.mxu0 %v2462_v34  ;;  %v2561_v34 = vld [vmem:[%s3520_s0 + $0x20c] ss:$16 sps:$4 sm:$0xff]  }
  0x41   :  { %1079 = vmatmul.mubr.bf16.vlgmr.msra.gmra.mrb[0].mxu1 %v2463_v35  ;;  %v2563_v35 = vld [vmem:[%s3520_s0 + $0x200] ss:$16 sps:$4 sm:$0xff]  }
  0x42   :  { %1368 = vmatmul.mubr.bf16.vlgmr.msra.gmra.mrb[0].mxu0 %v2466_v36  ;;  %1086 = vmatprep.mubr.bf16.mxu1 %v2469_v37  ;;  %v2564_v36 = vld [vmem:[%s3520_s0 + $0x208] ss:$16 sps:$4 sm:$0xff]   ;;  %v2565_v37 = vld [vmem:[%s3520_s0 + $0x224] ss:$16 sps:$4 sm:$0xff]  }
  0x43   :  { %1375 = vmatprep.mubr.bf16.mxu0 %v2471_v38  ;;  %v2567_v38 = vld [vmem:[%s3520_s0 + $0x22c] ss:$16 sps:$4 sm:$0xff]  }
  0x49   :  { %1087 = vmatmul.mubr.bf16.gmra.mrb[4].mxu1 %v2473_v39  ;;  %v2569_v39 = vld [vmem:[%s3520_s0 + $0x220] ss:$16 sps:$4 sm:$0xff]  }
  0x4a   :  { %1376 = vmatmul.mubr.bf16.gmra.mrb[4].mxu0 %v2474_v40  ;;  %1094 = vmatprep.mubr.bf16.mxu1 %v2475_v41  ;;  %v2570_v40 = vld [vmem:[%s3520_s0 + $0x228] ss:$16 sps:$4 sm:$0xff]   ;;  %v2571_v41 = vld [vmem:[%s3520_s0 + $0x244] ss:$16 sps:$4 sm:$0xff]  }
  0x4b   :  { %1383 = vmatprep.mubr.bf16.mxu0 %v2477_v42  ;;  %v2573_v42 = vld [vmem:[%s3520_s0 + $0x24c] ss:$16 sps:$4 sm:$0xff]  }
  0x51   :  { %1095 = vmatmul.mubr.bf16.gmra.mrb[8].mxu1 %v2479_v43  ;;  %v2575_v43 = vld [vmem:[%s3520_s0 + $0x240] ss:$16 sps:$4 sm:$0xff]  }
  0x52   :  { %1384 = vmatmul.mubr.bf16.gmra.mrb[8].mxu0 %v2480_v44  ;;  %1102 = vmatprep.mubr.bf16.mxu1 %v2481_v45  ;;  %v2576_v44 = vld [vmem:[%s3520_s0 + $0x248] ss:$16 sps:$4 sm:$0xff]   ;;  %v2577_v45 = vld [vmem:[%s3520_s0 + $0x264] ss:$16 sps:$4 sm:$0xff]  }
  0x53   :  { %1391 = vmatprep.mubr.bf16.mxu0 %v2483_v46  ;;  %v2579_v46 = vld [vmem:[%s3520_s0 + $0x26c] ss:$16 sps:$4 sm:$0xff]  }
  0x59   :  { %1103 = vmatmul.mubr.bf16.gmra.mrb[12].mxu1 %v2485_v47  ;;  %v2581_v47 = vld [vmem:[%s3520_s0 + $0x260] ss:$16 sps:$4 sm:$0xff]  }
  0x5a   :  { %1392 = vmatmul.mubr.bf16.gmra.mrb[12].mxu0 %v2486_v48  ;;  %1110 = vmatprep.mubr.bf16.mxu1 %v2487_v49  ;;  %v2582_v48 = vld [vmem:[%s3520_s0 + $0x268] ss:$16 sps:$4 sm:$0xff]   ;;  %v2583_v49 = vld [vmem:[%s3520_s0 + $0x284] ss:$16 sps:$4 sm:$0xff]  }
  0x5b   :  { %1399 = vmatprep.mubr.bf16.mxu0 %v2489_v50  ;;  %v2585_v50 = vld [vmem:[%s3520_s0 + $0x28c] ss:$16 sps:$4 sm:$0xff]  }
  0x61   :  { %1111 = vmatmul.mubr.bf16.gmra.mrb[16].mxu1 %v2491_v51  ;;  %v2587_v51 = vld [vmem:[%s3520_s0 + $0x280] ss:$16 sps:$4 sm:$0xff]  }
  0x62   :  { %1400 = vmatmul.mubr.bf16.gmra.mrb[16].mxu0 %v2492_v52  ;;  %1118 = vmatprep.mubr.bf16.mxu1 %v2493_v53  ;;  %v2588_v52 = vld [vmem:[%s3520_s0 + $0x288] ss:$16 sps:$4 sm:$0xff]   ;;  %v2589_v53 = vld [vmem:[%s3520_s0 + $0x2a4] ss:$16 sps:$4 sm:$0xff]  }
  0x63   :  { %1407 = vmatprep.mubr.bf16.mxu0 %v2495_v54  ;;  %v2591_v54 = vld [vmem:[%s3520_s0 + $0x2ac] ss:$16 sps:$4 sm:$0xff]  }
  0x69   :  { %1119 = vmatmul.mubr.bf16.gmra.mrb[20].mxu1 %v2497_v55  ;;  %v2593_v55 = vld [vmem:[%s3520_s0 + $0x2a0] ss:$16 sps:$4 sm:$0xff]  }
  0x6a   :  { %1408 = vmatmul.mubr.bf16.gmra.mrb[20].mxu0 %v2498_v56  ;;  %1126 = vmatprep.mubr.bf16.mxu1 %v2499_v57  ;;  %v2594_v56 = vld [vmem:[%s3520_s0 + $0x2a8] ss:$16 sps:$4 sm:$0xff]   ;;  %v2595_v57 = vld [vmem:[%s3520_s0 + $0x2c4] ss:$16 sps:$4 sm:$0xff]  }
  0x6b   :  { %1415 = vmatprep.mubr.bf16.mxu0 %v2501_v58  ;;  %v2597_v58 = vld [vmem:[%s3520_s0 + $0x2cc] ss:$16 sps:$4 sm:$0xff]  }
  0x71   :  { %1127 = vmatmul.mubr.bf16.gmra.mrb[24].mxu1 %v2503_v59  ;;  %v2599_v59 = vld [vmem:[%s3520_s0 + $0x2c0] ss:$16 sps:$4 sm:$0xff]  }
  0x72   :  { %1416 = vmatmul.mubr.bf16.gmra.mrb[24].mxu0 %v2504_v60  ;;  %1134 = vmatprep.mubr.bf16.mxu1 %v2505_v61  ;;  %v2600_v60 = vld [vmem:[%s3520_s0 + $0x2c8] ss:$16 sps:$4 sm:$0xff]   ;;  %v2601_v61 = vld [vmem:[%s3520_s0 + $0x2e4] ss:$16 sps:$4 sm:$0xff]  }
  0x73   :  { %1423 = vmatprep.mubr.bf16.mxu0 %v2507_v62  ;;  %v2603_v62 = vld [vmem:[%s3520_s0 + $0x2ec] ss:$16 sps:$4 sm:$0xff]  }
  0x79   :  { %1135 = vmatmul.mubr.bf16.gmra.mrb[28].mxu1 %v2509_v63  ;;  %v2605_v63 = vld [vmem:[%s3520_s0 + $0x2e0] ss:$16 sps:$4 sm:$0xff]  }
  0x7a   :  { %1424 = vmatmul.mubr.bf16.gmra.mrb[28].mxu0 %v2510_v0  ;;  %1142 = vmatprep.mubr.bf16.mxu1 %v2511_v1  ;;  %v2606_v0 = vld [vmem:[%s3520_s0 + $0x2e8] ss:$16 sps:$4 sm:$0xff]   ;;  %v2607_v1 = vld [vmem:[%s3520_s0 + $0x304] ss:$16 sps:$4 sm:$0xff]  }
  0x7b   :  { %1431 = vmatprep.mubr.bf16.mxu0 %v2513_v2  ;;  %v2609_v2 = vld [vmem:[%s3520_s0 + $0x30c] ss:$16 sps:$4 sm:$0xff]  }
  0x81   :  { %1143 = vmatmul.mubr.bf16.gmra.mrb[32].mxu1 %v2515_v3  ;;  %v2611_v3 = vld [vmem:[%s3520_s0 + $0x300] ss:$16 sps:$4 sm:$0xff]  }
  0x82   :  { %1432 = vmatmul.mubr.bf16.gmra.mrb[32].mxu0 %v2516_v4  ;;  %1150 = vmatprep.mubr.bf16.mxu1 %v2517_v5  ;;  %v2612_v4 = vld [vmem:[%s3520_s0 + $0x308] ss:$16 sps:$4 sm:$0xff]   ;;  %v2613_v5 = vld [vmem:[%s3520_s0 + $0x324] ss:$16 sps:$4 sm:$0xff]  }
  0x83   :  { %1439 = vmatprep.mubr.bf16.mxu0 %v2519_v6  ;;  %v2615_v6 = vld [vmem:[%s3520_s0 + $0x32c] ss:$16 sps:$4 sm:$0xff]  }
  0x89   :  { %1151 = vmatmul.mubr.bf16.gmra.mrb[36].mxu1 %v2521_v7  ;;  %v2617_v7 = vld [vmem:[%s3520_s0 + $0x320] ss:$16 sps:$4 sm:$0xff]  }
  0x8a   :  { %1440 = vmatmul.mubr.bf16.gmra.mrb[36].mxu0 %v2522_v8  ;;  %1158 = vmatprep.mubr.bf16.mxu1 %v2523_v9  ;;  %v2618_v8 = vld [vmem:[%s3520_s0 + $0x328] ss:$16 sps:$4 sm:$0xff]   ;;  %v2619_v9 = vld [vmem:[%s3520_s0 + $0x344] ss:$16 sps:$4 sm:$0xff]  }
  0x8b   :  { %1447 = vmatprep.mubr.bf16.mxu0 %v2525_v10  ;;  %v2621_v10 = vld [vmem:[%s3520_s0 + $0x34c] ss:$16 sps:$4 sm:$0xff]  }
  0x91   :  { %1159 = vmatmul.mubr.bf16.gmra.mrb[40].mxu1 %v2527_v11  ;;  %v2623_v11 = vld [vmem:[%s3520_s0 + $0x340] ss:$16 sps:$4 sm:$0xff]  }
  0x92   :  { %1448 = vmatmul.mubr.bf16.gmra.mrb[40].mxu0 %v2528_v12  ;;  %1166 = vmatprep.mubr.bf16.mxu1 %v2529_v13  ;;  %v2624_v12 = vld [vmem:[%s3520_s0 + $0x348] ss:$16 sps:$4 sm:$0xff]   ;;  %v2625_v13 = vld [vmem:[%s3520_s0 + $0x364] ss:$16 sps:$4 sm:$0xff]  }
  0x93   :  { %1455 = vmatprep.mubr.bf16.mxu0 %v2531_v14  ;;  %v2627_v14 = vld [vmem:[%s3520_s0 + $0x36c] ss:$16 sps:$4 sm:$0xff]  }
  0x99   :  { %1167 = vmatmul.mubr.bf16.gmra.mrb[44].mxu1 %v2533_v15  ;;  %v3138_v15 = vld [vmem:[%s3521_s2] ss:$0 sm:$0xff] }
  0x9a   :  { %1456 = vmatmul.mubr.bf16.gmra.mrb[44].mxu0 %v2534_v16  ;;  %1174 = vmatprep.mubr.bf16.mxu1 %v2535_v17 }
  0x9b   :  { %1463 = vmatprep.mubr.bf16.mxu0 %v2537_v18 }
  0xa1   :  { %1175 = vmatmul.mubr.bf16.gmra.mrb[48].mxu1 %v2539_v19 }
  0xa2   :  { %1464 = vmatmul.mubr.bf16.gmra.mrb[48].mxu0 %v2540_v20  ;;  %1182 = vmatprep.mubr.bf16.mxu1 %v2541_v21  ;;  %v2629_v20 = vld [vmem:[%s3520_s0 + $0x360] ss:$16 sps:$4 sm:$0xff]  }
  0xa3   :  { %1471 = vmatprep.mubr.bf16.mxu0 %v2543_v22 }
  0xa9   :  { %1183 = vmatmul.mubr.bf16.gmra.mrb[52].mxu1 %v2545_v23  ;;  %v2630_v23 = vld [vmem:[%s3520_s0 + $0x368] ss:$16 sps:$4 sm:$0xff]  }
  0xaa   :  { %1472 = vmatmul.mubr.bf16.gmra.mrb[52].mxu0 %v2546_v24  ;;  %1190 = vmatprep.mubr.bf16.mxu1 %v2547_v25  ;;  %v2631_v24 = vld [vmem:[%s3520_s0 + $0x384] ss:$16 sps:$4 sm:$0xff]  }
  0xab   :  { %1479 = vmatprep.mubr.bf16.mxu0 %v2549_v26 }
  0xb1   :  { %1191 = vmatmul.mubr.bf16.gmra.mrb[56].mxu1 %v2551_v27 }
  0xb2   :  { %1480 = vmatmul.mubr.bf16.gmra.mrb[56].mxu0 %v2552_v28  ;;  %1198 = vmatprep.mubr.bf16.mxu1 %v2553_v29  ;;  %v2633_v29 = vld [vmem:[%s3520_s0 + $0x38c] ss:$16 sps:$4 sm:$0xff]  }
  0xb3   :  { %1487 = vmatprep.mubr.bf16.mxu0 %v2555_v30 }
  0xb9   :  { %1199 = vmatmul.mubr.bf16.gmra.mrb[60].mxu1 %v2557_v31 }
  0xba   :  { %1488 = vmatmul.mubr.bf16.gmra.mrb[60].mxu0 %v2558_v32  ;;  %1206 = vmatprep.mubr.bf16.mxu1 %v2559_v33 }
  0xbb   :  { %1495 = vmatprep.mubr.bf16.mxu0 %v2561_v34 }
  0xc1   :  { %1207 = vmatmul.mubr.bf16.gmra.mrb[64].mxu1 %v2563_v35 }
  0xc2   :  { %1496 = vmatmul.mubr.bf16.gmra.mrb[64].mxu0 %v2564_v36  ;;  %1214 = vmatprep.mubr.bf16.mxu1 %v2565_v37 }
  0xc3   :  { %1503 = vmatprep.mubr.bf16.mxu0 %v2567_v38 }
  0xc9   :  { %1215 = vmatmul.mubr.bf16.gmra.mrb[68].mxu1 %v2569_v39 }
  0xca   :  { %1504 = vmatmul.mubr.bf16.gmra.mrb[68].mxu0 %v2570_v40  ;;  %1222 = vmatprep.mubr.bf16.mxu1 %v2571_v41  ;;  %v2635_v40 = vld [vmem:[%s3520_s0 + $0x380] ss:$16 sps:$4 sm:$0xff]  }
  0xcb   :  { %1511 = vmatprep.mubr.bf16.mxu0 %v2573_v42 }
  0xd1   :  { %1223 = vmatmul.mubr.bf16.gmra.mrb[72].mxu1 %v2575_v43  ;;  %v2636_v43 = vld [vmem:[%s3520_s0 + $0x388] ss:$16 sps:$4 sm:$0xff]  }
  0xd2   :  { %1512 = vmatmul.mubr.bf16.gmra.mrb[72].mxu0 %v2576_v44  ;;  %1230 = vmatprep.mubr.bf16.mxu1 %v2577_v45  ;;  %v2637_v44 = vld [vmem:[%s3520_s0 + $0x3a4] ss:$16 sps:$4 sm:$0xff]  }
  0xd3   :  { %1519 = vmatprep.mubr.bf16.mxu0 %v2579_v46 }
  0xd9   :  { %1231 = vmatmul.mubr.bf16.gmra.mrb[76].mxu1 %v2581_v47 }
  0xda   :  { %1520 = vmatmul.mubr.bf16.gmra.mrb[76].mxu0 %v2582_v48  ;;  %1238 = vmatprep.mubr.bf16.mxu1 %v2583_v49  ;;  %v2639_v49 = vld [vmem:[%s3520_s0 + $0x3ac] ss:$16 sps:$4 sm:$0xff]  }
  0xdb   :  { %1527 = vmatprep.mubr.bf16.mxu0 %v2585_v50 }
  0xe1   :  { %1239 = vmatmul.mubr.bf16.gmra.mrb[80].mxu1 %v2587_v51 }
  0xe2   :  { %1528 = vmatmul.mubr.bf16.gmra.mrb[80].mxu0 %v2588_v52  ;;  %1246 = vmatprep.mubr.bf16.mxu1 %v2589_v53 }
  0xe3   :  { %1535 = vmatprep.mubr.bf16.mxu0 %v2591_v54 }
  0xe9   :  { %1247 = vmatmul.mubr.bf16.gmra.mrb[84].mxu1 %v2593_v55 }
  0xea   :  { %1536 = vmatmul.mubr.bf16.gmra.mrb[84].mxu0 %v2594_v56  ;;  %1254 = vmatprep.mubr.bf16.mxu1 %v2595_v57 }
  0xeb   :  { %1543 = vmatprep.mubr.bf16.mxu0 %v2597_v58 }
  0xf1   :  { %1255 = vmatmul.mubr.bf16.gmra.mrb[88].mxu1 %v2599_v59 }
  0xf2   :  { %1544 = vmatmul.mubr.bf16.gmra.mrb[88].mxu0 %v2600_v60  ;;  %1262 = vmatprep.mubr.bf16.mxu1 %v2601_v61  ;;  %v2641_v60 = vld [vmem:[%s3520_s0 + $0x3a0] ss:$16 sps:$4 sm:$0xff]  }
  0xf3   :  { %1551 = vmatprep.mubr.bf16.mxu0 %v2603_v62 }
  0xf9   :  { %1263 = vmatmul.mubr.bf16.gmra.mrb[92].mxu1 %v2605_v63  ;;  %v2642_v63 = vld [vmem:[%s3520_s0 + $0x3a8] ss:$16 sps:$4 sm:$0xff]  }
  0xfa   :  { %1552 = vmatmul.mubr.bf16.gmra.mrb[92].mxu0 %v2606_v0  ;;  %1270 = vmatprep.mubr.bf16.mxu1 %v2607_v1  ;;  %v2643_v0 = vld [vmem:[%s3520_s0 + $0x3c4] ss:$16 sps:$4 sm:$0xff]  }
  0xfb   :  { %1559 = vmatprep.mubr.bf16.mxu0 %v2609_v2 }
 0x101   :  { %1271 = vmatmul.mubr.bf16.gmra.mrb[96].mxu1 %v2611_v3 }
 0x102   :  { %1560 = vmatmul.mubr.bf16.gmra.mrb[96].mxu0 %v2612_v4  ;;  %1278 = vmatprep.mubr.bf16.mxu1 %v2613_v5  ;;  %v2645_v5 = vld [vmem:[%s3520_s0 + $0x3cc] ss:$16 sps:$4 sm:$0xff]  }
 0x103   :  { %1567 = vmatprep.mubr.bf16.mxu0 %v2615_v6 }
 0x109   :  { %1279 = vmatmul.mubr.bf16.gmra.mrb[100].mxu1 %v2617_v7 }
 0x10a   :  { %1568 = vmatmul.mubr.bf16.gmra.mrb[100].mxu0 %v2618_v8  ;;  %1286 = vmatprep.mubr.bf16.mxu1 %v2619_v9 }
 0x10b   :  { %1575 = vmatprep.mubr.bf16.mxu0 %v2621_v10 }
 0x111   :  { %1287 = vmatmul.mubr.bf16.gmra.mrb[104].mxu1 %v2623_v11 }
 0x112   :  { %1576 = vmatmul.mubr.bf16.gmra.mrb[104].mxu0 %v2624_v12  ;;  %1294 = vmatprep.mubr.bf16.mxu1 %v2625_v13 }
 0x113   :  { %1583 = vmatprep.mubr.bf16.mxu0 %v2627_v14 }
 0x114   :  { %v1080_v16 = vpop.f32.mrb[0].mxu1 }
 0x115   :  { %v1081_v17 = vadd.f32 %v3138_v15, %v1080_v16  ;;  %v1369_v18 = vpop.f32.mrb[0].mxu0  ;;  %v1082_v19 = vpop.f32.mrb[1].mxu1 }
 0x116   :  { %v1371_v21 = vpop.f32.mrb[1].mxu0  ;;  %v1083_v22 = vpop.f32.mrb[2].mxu1 }
 0x117   :  { %v1370_v25 = vadd.f32 %v1369_v18, %v1081_v17  ;;  %v1084_v26 = vadd.f32 %v3138_v15, %v1083_v22  ;;  %v1372_v27 = vpop.f32.mrb[2].mxu0  ;;  %v1085_v28 = vpop.f32.mrb[3].mxu1  ;;  %v2647_v17 = vld [vmem:[%s3520_s0 + $0x3c0] ss:$16 sps:$4 sm:$0xff]   ;;  %v2649_v21 = vld [vmem:[%s3520_s0 + $0x3e4] ss:$16 sps:$4 sm:$0xff]  }
 0x118   :  { %v1374_v30 = vpop.f32.mrb[3].mxu0 }
 0x119   :  { %v1624_v31 = vmax.f32 %v1370_v25, 0.0  ;;  %v1373_v32 = vadd.f32 %v1372_v27, %v1084_v26  ;;  %1295 = vmatmul.mubr.bf16.gmra.mrb[108].mxu1 %v2629_v20  ;;  %v2648_v20 = vld [vmem:[%s3520_s0 + $0x3c8] ss:$16 sps:$4 sm:$0xff]   ;;  %v2651_v26 = vld [vmem:[%s3520_s0 + $0x3ec] ss:$16 sps:$4 sm:$0xff]  }
 0x11a   :  { %1584 = vmatmul.mubr.bf16.gmra.mrb[108].mxu0 %v2630_v23  ;;  %1302 = vmatprep.mubr.bf16.mxu1 %v2631_v24 }
 0x11b   :  { %v2238_v33 = vpack.c.bf16 %v1624_v31, %v1624_v31  ;;  %v1625_v34 = vmax.f32 %v1373_v32, 0.0  ;;  %1591 = vmatprep.mubr.bf16.mxu0 %v2633_v29 }
 0x11c   :  { %v1088_v35 = vpop.f32.mrb[4].mxu1 }
 0x11d   :  { %1945 = vst.msk [vmem:[%s3522_s3] sm:$0xf] %vm1944_vm0, %v2238_v33  ;;  %v2239_v36 = vpack.c.bf16 %v1625_v34, %v1625_v34  ;;  %v1089_v37 = vadd.f32 %v3138_v15, %v1088_v35  ;;  %v1377_v38 = vpop.f32.mrb[4].mxu0  ;;  %v1090_v39 = vpop.f32.mrb[5].mxu1 }
 0x11e   :  { %v1379_v41 = vpop.f32.mrb[5].mxu0  ;;  %v1091_v42 = vpop.f32.mrb[6].mxu1 }
 0x11f   :  { %1946 = vst.msk [vmem:[%s3522_s3 + $0x4] sm:$0xf] %vm1944_vm0, %v2239_v36  ;;  %v1378_v45 = vadd.f32 %v1377_v38, %v1089_v37  ;;  %v1092_v46 = vadd.f32 %v3138_v15, %v1091_v42  ;;  %v1380_v47 = vpop.f32.mrb[6].mxu0  ;;  %v1093_v48 = vpop.f32.mrb[7].mxu1  ;;  %v2653_v37 = vld [vmem:[%s3520_s0 + $0x3e0] ss:$16 sps:$4 sm:$0xff]  }
 0x120   :  { %v1382_v50 = vpop.f32.mrb[7].mxu0 }
 0x121   :  { %v1626_v51 = vmax.f32 %v1378_v45, 0.0  ;;  %v1381_v52 = vadd.f32 %v1380_v47, %v1092_v46  ;;  %1303 = vmatmul.mubr.bf16.gmra.mrb[112].mxu1 %v2635_v40  ;;  %v2654_v40 = vld [vmem:[%s3520_s0 + $0x3e8] ss:$16 sps:$4 sm:$0xff]  }
 0x122   :  { %1592 = vmatmul.mubr.bf16.gmra.mrb[112].mxu0 %v2636_v43  ;;  %1310 = vmatprep.mubr.bf16.mxu1 %v2637_v44 }
 0x123   :  { %v2240_v53 = vpack.c.bf16 %v1626_v51, %v1626_v51  ;;  %v1627_v54 = vmax.f32 %v1381_v52, 0.0  ;;  %1599 = vmatprep.mubr.bf16.mxu0 %v2639_v49 }
 0x124   :  { %v1096_v55 = vpop.f32.mrb[8].mxu1 }
 0x125   :  { %1947 = vst.msk [vmem:[%s3522_s3 + $0x8] sm:$0xf] %vm1944_vm0, %v2240_v53  ;;  %v2241_v56 = vpack.c.bf16 %v1627_v54, %v1627_v54  ;;  %v1097_v57 = vadd.f32 %v3138_v15, %v1096_v55  ;;  %v1385_v58 = vpop.f32.mrb[8].mxu0  ;;  %v1098_v59 = vpop.f32.mrb[9].mxu1 }
 0x126   :  { %v1387_v61 = vpop.f32.mrb[9].mxu0  ;;  %v1099_v62 = vpop.f32.mrb[10].mxu1 }
 0x127   :  { %1948 = vst.msk [vmem:[%s3522_s3 + $0xc] sm:$0xf] %vm1944_vm0, %v2241_v56  ;;  %v1386_v1 = vadd.f32 %v1385_v58, %v1097_v57  ;;  %v1100_v2 = vadd.f32 %v3138_v15, %v1099_v62  ;;  %v1388_v3 = vpop.f32.mrb[10].mxu0  ;;  %v1101_v4 = vpop.f32.mrb[11].mxu1 }
 0x128   :  { %v1390_v6 = vpop.f32.mrb[11].mxu0 }
 0x129   :  { %v1628_v7 = vmax.f32 %v1386_v1, 0.0  ;;  %v1389_v8 = vadd.f32 %v1388_v3, %v1100_v2  ;;  %1311 = vmatmul.mubr.bf16.gmra.mrb[116].mxu1 %v2641_v60 }
 0x12a   :  { %1600 = vmatmul.mubr.bf16.gmra.mrb[116].mxu0 %v2642_v63  ;;  %1318 = vmatprep.mubr.bf16.mxu1 %v2643_v0 }
 0x12b   :  { %v2242_v9 = vpack.c.bf16 %v1628_v7, %v1628_v7  ;;  %v1629_v10 = vmax.f32 %v1389_v8, 0.0  ;;  %1607 = vmatprep.mubr.bf16.mxu0 %v2645_v5 }
 0x12c   :  { %v1104_v11 = vpop.f32.mrb[12].mxu1 }
 0x12d   :  { %1949 = vst.msk [vmem:[%s3522_s3 + $0x10] sm:$0xf] %vm1944_vm0, %v2242_v9  ;;  %v2243_v12 = vpack.c.bf16 %v1629_v10, %v1629_v10  ;;  %v1105_v13 = vadd.f32 %v3138_v15, %v1104_v11  ;;  %v1393_v14 = vpop.f32.mrb[12].mxu0  ;;  %v1106_v16 = vpop.f32.mrb[13].mxu1 }
 0x12e   :  { %v1395_v18 = vpop.f32.mrb[13].mxu0  ;;  %v1107_v19 = vpop.f32.mrb[14].mxu1 }
 0x12f   :  { %1950 = vst.msk [vmem:[%s3522_s3 + $0x14] sm:$0xf] %vm1944_vm0, %v2243_v12  ;;  %v1394_v22 = vadd.f32 %v1393_v14, %v1105_v13  ;;  %v1108_v23 = vadd.f32 %v3138_v15, %v1107_v19  ;;  %v1396_v24 = vpop.f32.mrb[14].mxu0  ;;  %v1109_v25 = vpop.f32.mrb[15].mxu1 }
 0x130   :  { %v1398_v27 = vpop.f32.mrb[15].mxu0 }
 0x131   :  { %v1630_v28 = vmax.f32 %v1394_v22, 0.0  ;;  %v1397_v29 = vadd.f32 %v1396_v24, %v1108_v23  ;;  %1319 = vmatmul.mubr.bf16.gmra.mrb[120].mxu1 %v2647_v17 }
 0x132   :  { %1608 = vmatmul.mubr.bf16.gmra.mrb[120].mxu0 %v2648_v20  ;;  %1326 = vmatprep.mubr.bf16.mxu1 %v2649_v21 }
 0x133   :  { %v2244_v30 = vpack.c.bf16 %v1630_v28, %v1630_v28  ;;  %v1631_v31 = vmax.f32 %v1397_v29, 0.0  ;;  %1615 = vmatprep.mubr.bf16.mxu0 %v2651_v26 }
 0x134   :  { %v1112_v32 = vpop.f32.mrb[16].mxu1 }
 0x135   :  { %1951 = vst.msk [vmem:[%s3522_s3 + $0x18] sm:$0xf] %vm1944_vm0, %v2244_v30  ;;  %v2245_v33 = vpack.c.bf16 %v1631_v31, %v1631_v31  ;;  %v1113_v34 = vadd.f32 %v3138_v15, %v1112_v32  ;;  %v1401_v35 = vpop.f32.mrb[16].mxu0  ;;  %v1114_v36 = vpop.f32.mrb[17].mxu1 }
 0x136   :  { %v1403_v38 = vpop.f32.mrb[17].mxu0  ;;  %v1115_v39 = vpop.f32.mrb[18].mxu1 }
 0x137   :  { %1952 = vst.msk [vmem:[%s3522_s3 + $0x1c] sm:$0xf] %vm1944_vm0, %v2245_v33  ;;  %v1402_v41 = vadd.f32 %v1401_v35, %v1113_v34  ;;  %v1116_v42 = vadd.f32 %v3138_v15, %v1115_v39  ;;  %v1404_v43 = vpop.f32.mrb[18].mxu0  ;;  %v1117_v44 = vpop.f32.mrb[19].mxu1 }
 0x138   :  { %v1406_v45 = vpop.f32.mrb[19].mxu0 }
 0x139   :  { %v1632_v46 = vmax.f32 %v1402_v41, 0.0  ;;  %v1405_v47 = vadd.f32 %v1404_v43, %v1116_v42  ;;  %1327 = vmatmul.mubr.bf16.gmra.mrb[124].mxu1 %v2653_v37 }
 0x13a   :  { %1616 = vmatmul.mubr.bf16.gmra.mrb[124].mxu0 %v2654_v40 }
 0x13b   :  { %v2246_v48 = vpack.c.bf16 %v1632_v46, %v1632_v46  ;;  %v1633_v49 = vmax.f32 %v1405_v47, 0.0 }
 0x13c   :  { %v1120_v50 = vpop.f32.mrb[20].mxu1 }
 0x13d   :  { %1953 = vst.msk [vmem:[%s3522_s3 + $0x20] sm:$0xf] %vm1944_vm0, %v2246_v48  ;;  %v2247_v51 = vpack.c.bf16 %v1633_v49, %v1633_v49  ;;  %v1121_v52 = vadd.f32 %v3138_v15, %v1120_v50  ;;  %v1409_v53 = vpop.f32.mrb[20].mxu0  ;;  %v1122_v54 = vpop.f32.mrb[21].mxu1 }
 0x13e   :  { %v1411_v55 = vpop.f32.mrb[21].mxu0  ;;  %v1123_v56 = vpop.f32.mrb[22].mxu1 }
 0x13f   :  { %1954 = vst.msk [vmem:[%s3522_s3 + $0x24] sm:$0xf] %vm1944_vm0, %v2247_v51  ;;  %v1410_v57 = vadd.f32 %v1409_v53, %v1121_v52  ;;  %v1124_v58 = vadd.f32 %v3138_v15, %v1123_v56  ;;  %v1412_v59 = vpop.f32.mrb[22].mxu0  ;;  %v1125_v60 = vpop.f32.mrb[23].mxu1 }
 0x140   :  { %v1414_v61 = vpop.f32.mrb[23].mxu0 }
 0x141   :  { %v1634_v62 = vmax.f32 %v1410_v57, 0.0  ;;  %v1413_v63 = vadd.f32 %v1412_v59, %v1124_v58 }
 0x143   :  { %v2248_v0 = vpack.c.bf16 %v1634_v62, %v1634_v62  ;;  %v1635_v1 = vmax.f32 %v1413_v63, 0.0 }
 0x144   :  { %v1128_v2 = vpop.f32.mrb[24].mxu1 }
 0x145   :  { %1955 = vst.msk [vmem:[%s3522_s3 + $0x28] sm:$0xf] %vm1944_vm0, %v2248_v0  ;;  %v2249_v3 = vpack.c.bf16 %v1635_v1, %v1635_v1  ;;  %v1129_v4 = vadd.f32 %v3138_v15, %v1128_v2  ;;  %v1417_v5 = vpop.f32.mrb[24].mxu0  ;;  %v1130_v6 = vpop.f32.mrb[25].mxu1 }
 0x146   :  { %v1419_v7 = vpop.f32.mrb[25].mxu0  ;;  %v1131_v8 = vpop.f32.mrb[26].mxu1 }
 0x147   :  { %1956 = vst.msk [vmem:[%s3522_s3 + $0x2c] sm:$0xf] %vm1944_vm0, %v2249_v3  ;;  %v1418_v9 = vadd.f32 %v1417_v5, %v1129_v4  ;;  %v1132_v10 = vadd.f32 %v3138_v15, %v1131_v8  ;;  %v1420_v11 = vpop.f32.mrb[26].mxu0  ;;  %v1133_v12 = vpop.f32.mrb[27].mxu1 }
 0x148   :  { %v1422_v13 = vpop.f32.mrb[27].mxu0 }
 0x149   :  { %v1636_v14 = vmax.f32 %v1418_v9, 0.0  ;;  %v1421_v16 = vadd.f32 %v1420_v11, %v1132_v10 }
 0x14b   :  { %v2250_v17 = vpack.c.bf16 %v1636_v14, %v1636_v14  ;;  %v1637_v18 = vmax.f32 %v1421_v16, 0.0 }
 0x14c   :  { %v1136_v19 = vpop.f32.mrb[28].mxu1 }
 0x14d   :  { %1957 = vst.msk [vmem:[%s3522_s3 + $0x30] sm:$0xf] %vm1944_vm0, %v2250_v17  ;;  %v2251_v20 = vpack.c.bf16 %v1637_v18, %v1637_v18  ;;  %v1137_v21 = vadd.f32 %v3138_v15, %v1136_v19  ;;  %v1425_v22 = vpop.f32.mrb[28].mxu0  ;;  %v1138_v23 = vpop.f32.mrb[29].mxu1 }
 0x14e   :  { %v1427_v24 = vpop.f32.mrb[29].mxu0  ;;  %v1139_v25 = vpop.f32.mrb[30].mxu1 }
 0x14f   :  { %1958 = vst.msk [vmem:[%s3522_s3 + $0x34] sm:$0xf] %vm1944_vm0, %v2251_v20  ;;  %v1426_v26 = vadd.f32 %v1425_v22, %v1137_v21  ;;  %v1140_v27 = vadd.f32 %v3138_v15, %v1139_v25  ;;  %v1428_v28 = vpop.f32.mrb[30].mxu0  ;;  %v1141_v29 = vpop.f32.mrb[31].mxu1 }
 0x150   :  { %v1430_v30 = vpop.f32.mrb[31].mxu0 }
 0x151   :  { %v1638_v31 = vmax.f32 %v1426_v26, 0.0  ;;  %v1429_v32 = vadd.f32 %v1428_v28, %v1140_v27 }
 0x153   :  { %v2252_v33 = vpack.c.bf16 %v1638_v31, %v1638_v31  ;;  %v1639_v34 = vmax.f32 %v1429_v32, 0.0 }
 0x154   :  { %v1144_v35 = vpop.f32.mrb[32].mxu1 }
 0x155   :  { %1959 = vst.msk [vmem:[%s3522_s3 + $0x38] sm:$0xf] %vm1944_vm0, %v2252_v33  ;;  %v2253_v36 = vpack.c.bf16 %v1639_v34, %v1639_v34  ;;  %v1145_v37 = vadd.f32 %v3138_v15, %v1144_v35  ;;  %v1433_v38 = vpop.f32.mrb[32].mxu0  ;;  %v1146_v39 = vpop.f32.mrb[33].mxu1 }
 0x156   :  { %v1435_v40 = vpop.f32.mrb[33].mxu0  ;;  %v1147_v41 = vpop.f32.mrb[34].mxu1 }
 0x157   :  { %1960 = vst.msk [vmem:[%s3522_s3 + $0x3c] sm:$0xf] %vm1944_vm0, %v2253_v36  ;;  %v1434_v42 = vadd.f32 %v1433_v38, %v1145_v37  ;;  %v1148_v43 = vadd.f32 %v3138_v15, %v1147_v41  ;;  %v1436_v44 = vpop.f32.mrb[34].mxu0  ;;  %v1149_v45 = vpop.f32.mrb[35].mxu1 }
 0x158   :  { %v1438_v46 = vpop.f32.mrb[35].mxu0 }
 0x159   :  { %v1640_v47 = vmax.f32 %v1434_v42, 0.0  ;;  %v1437_v48 = vadd.f32 %v1436_v44, %v1148_v43 }
 0x15b   :  { %v2254_v49 = vpack.c.bf16 %v1640_v47, %v1640_v47  ;;  %v1641_v50 = vmax.f32 %v1437_v48, 0.0 }
 0x15c   :  { %v1152_v51 = vpop.f32.mrb[36].mxu1 }
 0x15d   :  { %1961 = vst.msk [vmem:[%s3522_s3 + $0x40] sm:$0xf] %vm1944_vm0, %v2254_v49  ;;  %v2255_v52 = vpack.c.bf16 %v1641_v50, %v1641_v50  ;;  %v1153_v53 = vadd.f32 %v3138_v15, %v1152_v51  ;;  %v1441_v54 = vpop.f32.mrb[36].mxu0  ;;  %v1154_v55 = vpop.f32.mrb[37].mxu1 }
 0x15e   :  { %v1443_v56 = vpop.f32.mrb[37].mxu0  ;;  %v1155_v57 = vpop.f32.mrb[38].mxu1 }
 0x15f   :  { %1962 = vst.msk [vmem:[%s3522_s3 + $0x44] sm:$0xf] %vm1944_vm0, %v2255_v52  ;;  %v1442_v58 = vadd.f32 %v1441_v54, %v1153_v53  ;;  %v1156_v59 = vadd.f32 %v3138_v15, %v1155_v57  ;;  %v1444_v60 = vpop.f32.mrb[38].mxu0  ;;  %v1157_v61 = vpop.f32.mrb[39].mxu1 }
 0x160   :  { %v1446_v62 = vpop.f32.mrb[39].mxu0 }
 0x161   :  { %v1642_v63 = vmax.f32 %v1442_v58, 0.0  ;;  %v1445_v0 = vadd.f32 %v1444_v60, %v1156_v59 }
 0x163   :  { %v2256_v1 = vpack.c.bf16 %v1642_v63, %v1642_v63  ;;  %v1643_v2 = vmax.f32 %v1445_v0, 0.0 }
 0x164   :  { %v1160_v3 = vpop.f32.mrb[40].mxu1 }
 0x165   :  { %1963 = vst.msk [vmem:[%s3522_s3 + $0x48] sm:$0xf] %vm1944_vm0, %v2256_v1  ;;  %v2257_v4 = vpack.c.bf16 %v1643_v2, %v1643_v2  ;;  %v1161_v5 = vadd.f32 %v3138_v15, %v1160_v3  ;;  %v1449_v6 = vpop.f32.mrb[40].mxu0  ;;  %v1162_v7 = vpop.f32.mrb[41].mxu1 }
 0x166   :  { %v1451_v8 = vpop.f32.mrb[41].mxu0  ;;  %v1163_v9 = vpop.f32.mrb[42].mxu1 }
 0x167   :  { %1964 = vst.msk [vmem:[%s3522_s3 + $0x4c] sm:$0xf] %vm1944_vm0, %v2257_v4  ;;  %v1450_v10 = vadd.f32 %v1449_v6, %v1161_v5  ;;  %v1164_v11 = vadd.f32 %v3138_v15, %v1163_v9  ;;  %v1452_v12 = vpop.f32.mrb[42].mxu0  ;;  %v1165_v13 = vpop.f32.mrb[43].mxu1 }
 0x168   :  { %v1454_v14 = vpop.f32.mrb[43].mxu0 }
 0x169   :  { %v1644_v16 = vmax.f32 %v1450_v10, 0.0  ;;  %v1453_v17 = vadd.f32 %v1452_v12, %v1164_v11 }
 0x16b   :  { %v2258_v18 = vpack.c.bf16 %v1644_v16, %v1644_v16  ;;  %v1645_v19 = vmax.f32 %v1453_v17, 0.0 }
 0x16c   :  { %v1168_v20 = vpop.f32.mrb[44].mxu1 }
 0x16d   :  { %1965 = vst.msk [vmem:[%s3522_s3 + $0x50] sm:$0xf] %vm1944_vm0, %v2258_v18  ;;  %v2259_v21 = vpack.c.bf16 %v1645_v19, %v1645_v19  ;;  %v1169_v22 = vadd.f32 %v3138_v15, %v1168_v20  ;;  %v1457_v23 = vpop.f32.mrb[44].mxu0  ;;  %v1170_v24 = vpop.f32.mrb[45].mxu1 }
 0x16e   :  { %v1459_v25 = vpop.f32.mrb[45].mxu0  ;;  %v1171_v26 = vpop.f32.mrb[46].mxu1 }
 0x16f   :  { %1966 = vst.msk [vmem:[%s3522_s3 + $0x54] sm:$0xf] %vm1944_vm0, %v2259_v21  ;;  %v1458_v27 = vadd.f32 %v1457_v23, %v1169_v22  ;;  %v1172_v28 = vadd.f32 %v3138_v15, %v1171_v26  ;;  %v1460_v29 = vpop.f32.mrb[46].mxu0  ;;  %v1173_v30 = vpop.f32.mrb[47].mxu1 }
 0x170   :  { %v1462_v31 = vpop.f32.mrb[47].mxu0 }
 0x171   :  { %v1646_v32 = vmax.f32 %v1458_v27, 0.0  ;;  %v1461_v33 = vadd.f32 %v1460_v29, %v1172_v28 }
 0x173   :  { %v2260_v34 = vpack.c.bf16 %v1646_v32, %v1646_v32  ;;  %v1647_v35 = vmax.f32 %v1461_v33, 0.0 }
 0x174   :  { %v1176_v36 = vpop.f32.mrb[48].mxu1 }
 0x175   :  { %1967 = vst.msk [vmem:[%s3522_s3 + $0x58] sm:$0xf] %vm1944_vm0, %v2260_v34  ;;  %v2261_v37 = vpack.c.bf16 %v1647_v35, %v1647_v35  ;;  %v1177_v38 = vadd.f32 %v3138_v15, %v1176_v36  ;;  %v1465_v39 = vpop.f32.mrb[48].mxu0  ;;  %v1178_v40 = vpop.f32.mrb[49].mxu1 }
 0x176   :  { %v1467_v41 = vpop.f32.mrb[49].mxu0  ;;  %v1179_v42 = vpop.f32.mrb[50].mxu1 }
 0x177   :  { %1968 = vst.msk [vmem:[%s3522_s3 + $0x5c] sm:$0xf] %vm1944_vm0, %v2261_v37  ;;  %v1466_v43 = vadd.f32 %v1465_v39, %v1177_v38  ;;  %v1180_v44 = vadd.f32 %v3138_v15, %v1179_v42  ;;  %v1468_v45 = vpop.f32.mrb[50].mxu0  ;;  %v1181_v46 = vpop.f32.mrb[51].mxu1 }
 0x178   :  { %v1470_v47 = vpop.f32.mrb[51].mxu0 }
 0x179   :  { %v1648_v48 = vmax.f32 %v1466_v43, 0.0  ;;  %v1469_v49 = vadd.f32 %v1468_v45, %v1180_v44 }
 0x17b   :  { %v2262_v50 = vpack.c.bf16 %v1648_v48, %v1648_v48  ;;  %v1649_v51 = vmax.f32 %v1469_v49, 0.0 }
 0x17c   :  { %v1184_v52 = vpop.f32.mrb[52].mxu1 }
 0x17d   :  { %1969 = vst.msk [vmem:[%s3522_s3 + $0x60] sm:$0xf] %vm1944_vm0, %v2262_v50  ;;  %v2263_v53 = vpack.c.bf16 %v1649_v51, %v1649_v51  ;;  %v1185_v54 = vadd.f32 %v3138_v15, %v1184_v52  ;;  %v1473_v55 = vpop.f32.mrb[52].mxu0  ;;  %v1186_v56 = vpop.f32.mrb[53].mxu1 }
 0x17e   :  { %v1475_v57 = vpop.f32.mrb[53].mxu0  ;;  %v1187_v58 = vpop.f32.mrb[54].mxu1 }
 0x17f   :  { %1970 = vst.msk [vmem:[%s3522_s3 + $0x64] sm:$0xf] %vm1944_vm0, %v2263_v53  ;;  %v1474_v59 = vadd.f32 %v1473_v55, %v1185_v54  ;;  %v1188_v60 = vadd.f32 %v3138_v15, %v1187_v58  ;;  %v1476_v61 = vpop.f32.mrb[54].mxu0  ;;  %v1189_v62 = vpop.f32.mrb[55].mxu1 }
 0x180   :  { %v1478_v63 = vpop.f32.mrb[55].mxu0 }
 0x181   :  { %v1650_v0 = vmax.f32 %v1474_v59, 0.0  ;;  %v1477_v1 = vadd.f32 %v1476_v61, %v1188_v60 }
 0x183   :  { %v2264_v2 = vpack.c.bf16 %v1650_v0, %v1650_v0  ;;  %v1651_v3 = vmax.f32 %v1477_v1, 0.0 }
 0x184   :  { %v1192_v4 = vpop.f32.mrb[56].mxu1 }
 0x185   :  { %1971 = vst.msk [vmem:[%s3522_s3 + $0x68] sm:$0xf] %vm1944_vm0, %v2264_v2  ;;  %v2265_v5 = vpack.c.bf16 %v1651_v3, %v1651_v3  ;;  %v1193_v6 = vadd.f32 %v3138_v15, %v1192_v4  ;;  %v1481_v7 = vpop.f32.mrb[56].mxu0  ;;  %v1194_v8 = vpop.f32.mrb[57].mxu1 }
 0x186   :  { %v1483_v9 = vpop.f32.mrb[57].mxu0  ;;  %v1195_v10 = vpop.f32.mrb[58].mxu1 }
 0x187   :  { %1972 = vst.msk [vmem:[%s3522_s3 + $0x6c] sm:$0xf] %vm1944_vm0, %v2265_v5  ;;  %v1482_v11 = vadd.f32 %v1481_v7, %v1193_v6  ;;  %v1196_v12 = vadd.f32 %v3138_v15, %v1195_v10  ;;  %v1484_v13 = vpop.f32.mrb[58].mxu0  ;;  %v1197_v14 = vpop.f32.mrb[59].mxu1 }
 0x188   :  { %v1486_v16 = vpop.f32.mrb[59].mxu0 }
 0x189   :  { %v1652_v17 = vmax.f32 %v1482_v11, 0.0  ;;  %v1485_v18 = vadd.f32 %v1484_v13, %v1196_v12 }
 0x18b   :  { %v2266_v19 = vpack.c.bf16 %v1652_v17, %v1652_v17  ;;  %v1653_v20 = vmax.f32 %v1485_v18, 0.0 }
 0x18c   :  { %v1200_v21 = vpop.f32.mrb[60].mxu1 }
 0x18d   :  { %1973 = vst.msk [vmem:[%s3522_s3 + $0x70] sm:$0xf] %vm1944_vm0, %v2266_v19  ;;  %v2267_v22 = vpack.c.bf16 %v1653_v20, %v1653_v20  ;;  %v1201_v23 = vadd.f32 %v3138_v15, %v1200_v21  ;;  %v1489_v24 = vpop.f32.mrb[60].mxu0  ;;  %v1202_v25 = vpop.f32.mrb[61].mxu1 }
 0x18e   :  { %v1491_v26 = vpop.f32.mrb[61].mxu0  ;;  %v1203_v27 = vpop.f32.mrb[62].mxu1 }
 0x18f   :  { %1974 = vst.msk [vmem:[%s3522_s3 + $0x74] sm:$0xf] %vm1944_vm0, %v2267_v22  ;;  %v1490_v28 = vadd.f32 %v1489_v24, %v1201_v23  ;;  %v1204_v29 = vadd.f32 %v3138_v15, %v1203_v27  ;;  %v1492_v30 = vpop.f32.mrb[62].mxu0  ;;  %v1205_v31 = vpop.f32.mrb[63].mxu1 }
 0x190   :  { %v1494_v32 = vpop.f32.mrb[63].mxu0 }
 0x191   :  { %v1654_v33 = vmax.f32 %v1490_v28, 0.0  ;;  %v1493_v34 = vadd.f32 %v1492_v30, %v1204_v29 }
 0x193   :  { %v2268_v35 = vpack.c.bf16 %v1654_v33, %v1654_v33  ;;  %v1655_v36 = vmax.f32 %v1493_v34, 0.0 }
 0x194   :  { %v1208_v37 = vpop.f32.mrb[64].mxu1 }
 0x195   :  { %1975 = vst.msk [vmem:[%s3522_s3 + $0x78] sm:$0xf] %vm1944_vm0, %v2268_v35  ;;  %v2269_v38 = vpack.c.bf16 %v1655_v36, %v1655_v36  ;;  %v1209_v39 = vadd.f32 %v3138_v15, %v1208_v37  ;;  %v1497_v40 = vpop.f32.mrb[64].mxu0  ;;  %v1210_v41 = vpop.f32.mrb[65].mxu1 }
 0x196   :  { %v1499_v42 = vpop.f32.mrb[65].mxu0  ;;  %v1211_v43 = vpop.f32.mrb[66].mxu1 }
 0x197   :  { %1976 = vst.msk [vmem:[%s3522_s3 + $0x7c] sm:$0xf] %vm1944_vm0, %v2269_v38  ;;  %v1498_v44 = vadd.f32 %v1497_v40, %v1209_v39  ;;  %v1212_v45 = vadd.f32 %v3138_v15, %v1211_v43  ;;  %v1500_v46 = vpop.f32.mrb[66].mxu0  ;;  %v1213_v47 = vpop.f32.mrb[67].mxu1 }
 0x198   :  { %v1502_v48 = vpop.f32.mrb[67].mxu0 }
 0x199   :  { %v1656_v49 = vmax.f32 %v1498_v44, 0.0  ;;  %v1501_v50 = vadd.f32 %v1500_v46, %v1212_v45 }
 0x19b   :  { %v2270_v51 = vpack.c.bf16 %v1656_v49, %v1656_v49  ;;  %v1657_v52 = vmax.f32 %v1501_v50, 0.0 }
 0x19c   :  { %v1216_v53 = vpop.f32.mrb[68].mxu1 }
 0x19d   :  { %1977 = vst.msk [vmem:[%s3522_s3 + $0x80] sm:$0xf] %vm1944_vm0, %v2270_v51  ;;  %v2271_v54 = vpack.c.bf16 %v1657_v52, %v1657_v52  ;;  %v1217_v55 = vadd.f32 %v3138_v15, %v1216_v53  ;;  %v1505_v56 = vpop.f32.mrb[68].mxu0  ;;  %v1218_v57 = vpop.f32.mrb[69].mxu1 }
 0x19e   :  { %v1507_v58 = vpop.f32.mrb[69].mxu0  ;;  %v1219_v59 = vpop.f32.mrb[70].mxu1 }
 0x19f   :  { %1978 = vst.msk [vmem:[%s3522_s3 + $0x84] sm:$0xf] %vm1944_vm0, %v2271_v54  ;;  %v1506_v60 = vadd.f32 %v1505_v56, %v1217_v55  ;;  %v1220_v61 = vadd.f32 %v3138_v15, %v1219_v59  ;;  %v1508_v62 = vpop.f32.mrb[70].mxu0  ;;  %v1221_v63 = vpop.f32.mrb[71].mxu1 }
 0x1a0   :  { %v1510_v0 = vpop.f32.mrb[71].mxu0 }
 0x1a1   :  { %v1658_v1 = vmax.f32 %v1506_v60, 0.0  ;;  %v1509_v2 = vadd.f32 %v1508_v62, %v1220_v61 }
 0x1a3   :  { %v2272_v3 = vpack.c.bf16 %v1658_v1, %v1658_v1  ;;  %v1659_v4 = vmax.f32 %v1509_v2, 0.0 }
 0x1a4   :  { %v1224_v5 = vpop.f32.mrb[72].mxu1 }
 0x1a5   :  { %1979 = vst.msk [vmem:[%s3522_s3 + $0x88] sm:$0xf] %vm1944_vm0, %v2272_v3  ;;  %v2273_v6 = vpack.c.bf16 %v1659_v4, %v1659_v4  ;;  %v1225_v7 = vadd.f32 %v3138_v15, %v1224_v5  ;;  %v1513_v8 = vpop.f32.mrb[72].mxu0  ;;  %v1226_v9 = vpop.f32.mrb[73].mxu1 }
 0x1a6   :  { %v1515_v10 = vpop.f32.mrb[73].mxu0  ;;  %v1227_v11 = vpop.f32.mrb[74].mxu1 }
 0x1a7   :  { %1980 = vst.msk [vmem:[%s3522_s3 + $0x8c] sm:$0xf] %vm1944_vm0, %v2273_v6  ;;  %v1514_v12 = vadd.f32 %v1513_v8, %v1225_v7  ;;  %v1228_v13 = vadd.f32 %v3138_v15, %v1227_v11  ;;  %v1516_v14 = vpop.f32.mrb[74].mxu0  ;;  %v1229_v16 = vpop.f32.mrb[75].mxu1 }
 0x1a8   :  { %v1518_v17 = vpop.f32.mrb[75].mxu0 }
 0x1a9   :  { %v1660_v18 = vmax.f32 %v1514_v12, 0.0  ;;  %v1517_v19 = vadd.f32 %v1516_v14, %v1228_v13 }
 0x1ab   :  { %v2274_v20 = vpack.c.bf16 %v1660_v18, %v1660_v18  ;;  %v1661_v21 = vmax.f32 %v1517_v19, 0.0 }
 0x1ac   :  { %v1232_v22 = vpop.f32.mrb[76].mxu1 }
 0x1ad   :  { %1981 = vst.msk [vmem:[%s3522_s3 + $0x90] sm:$0xf] %vm1944_vm0, %v2274_v20  ;;  %v2275_v23 = vpack.c.bf16 %v1661_v21, %v1661_v21  ;;  %v1233_v24 = vadd.f32 %v3138_v15, %v1232_v22  ;;  %v1521_v25 = vpop.f32.mrb[76].mxu0  ;;  %v1234_v26 = vpop.f32.mrb[77].mxu1 }
 0x1ae   :  { %v1523_v27 = vpop.f32.mrb[77].mxu0  ;;  %v1235_v28 = vpop.f32.mrb[78].mxu1 }
 0x1af   :  { %1982 = vst.msk [vmem:[%s3522_s3 + $0x94] sm:$0xf] %vm1944_vm0, %v2275_v23  ;;  %v1522_v29 = vadd.f32 %v1521_v25, %v1233_v24  ;;  %v1236_v30 = vadd.f32 %v3138_v15, %v1235_v28  ;;  %v1524_v31 = vpop.f32.mrb[78].mxu0  ;;  %v1237_v32 = vpop.f32.mrb[79].mxu1 }
 0x1b0   :  { %v1526_v33 = vpop.f32.mrb[79].mxu0 }
 0x1b1   :  { %v1662_v34 = vmax.f32 %v1522_v29, 0.0  ;;  %v1525_v35 = vadd.f32 %v1524_v31, %v1236_v30 }
 0x1b3   :  { %v2276_v36 = vpack.c.bf16 %v1662_v34, %v1662_v34  ;;  %v1663_v37 = vmax.f32 %v1525_v35, 0.0 }
 0x1b4   :  { %v1240_v38 = vpop.f32.mrb[80].mxu1 }
 0x1b5   :  { %1983 = vst.msk [vmem:[%s3522_s3 + $0x98] sm:$0xf] %vm1944_vm0, %v2276_v36  ;;  %v2277_v39 = vpack.c.bf16 %v1663_v37, %v1663_v37  ;;  %v1241_v40 = vadd.f32 %v3138_v15, %v1240_v38  ;;  %v1529_v41 = vpop.f32.mrb[80].mxu0  ;;  %v1242_v42 = vpop.f32.mrb[81].mxu1 }
 0x1b6   :  { %v1531_v43 = vpop.f32.mrb[81].mxu0  ;;  %v1243_v44 = vpop.f32.mrb[82].mxu1 }
 0x1b7   :  { %1984 = vst.msk [vmem:[%s3522_s3 + $0x9c] sm:$0xf] %vm1944_vm0, %v2277_v39  ;;  %v1530_v45 = vadd.f32 %v1529_v41, %v1241_v40  ;;  %v1244_v46 = vadd.f32 %v3138_v15, %v1243_v44  ;;  %v1532_v47 = vpop.f32.mrb[82].mxu0  ;;  %v1245_v48 = vpop.f32.mrb[83].mxu1 }
 0x1b8   :  { %v1534_v49 = vpop.f32.mrb[83].mxu0 }
 0x1b9   :  { %v1664_v50 = vmax.f32 %v1530_v45, 0.0  ;;  %v1533_v51 = vadd.f32 %v1532_v47, %v1244_v46 }
 0x1bb   :  { %v2278_v52 = vpack.c.bf16 %v1664_v50, %v1664_v50  ;;  %v1665_v53 = vmax.f32 %v1533_v51, 0.0 }
 0x1bc   :  { %v1248_v54 = vpop.f32.mrb[84].mxu1 }
 0x1bd   :  { %1985 = vst.msk [vmem:[%s3522_s3 + $0xa0] sm:$0xf] %vm1944_vm0, %v2278_v52  ;;  %v2279_v55 = vpack.c.bf16 %v1665_v53, %v1665_v53  ;;  %v1249_v56 = vadd.f32 %v3138_v15, %v1248_v54  ;;  %v1537_v57 = vpop.f32.mrb[84].mxu0  ;;  %v1250_v58 = vpop.f32.mrb[85].mxu1 }
 0x1be   :  { %v1539_v59 = vpop.f32.mrb[85].mxu0  ;;  %v1251_v60 = vpop.f32.mrb[86].mxu1 }
 0x1bf   :  { %1986 = vst.msk [vmem:[%s3522_s3 + $0xa4] sm:$0xf] %vm1944_vm0, %v2279_v55  ;;  %v1538_v61 = vadd.f32 %v1537_v57, %v1249_v56  ;;  %v1252_v62 = vadd.f32 %v3138_v15, %v1251_v60  ;;  %v1540_v63 = vpop.f32.mrb[86].mxu0  ;;  %v1253_v0 = vpop.f32.mrb[87].mxu1 }
 0x1c0   :  { %v1542_v1 = vpop.f32.mrb[87].mxu0 }
 0x1c1   :  { %v1666_v2 = vmax.f32 %v1538_v61, 0.0  ;;  %v1541_v3 = vadd.f32 %v1540_v63, %v1252_v62 }
 0x1c3   :  { %v2280_v4 = vpack.c.bf16 %v1666_v2, %v1666_v2  ;;  %v1667_v5 = vmax.f32 %v1541_v3, 0.0 }
 0x1c4   :  { %v1256_v6 = vpop.f32.mrb[88].mxu1 }
 0x1c5   :  { %1987 = vst.msk [vmem:[%s3522_s3 + $0xa8] sm:$0xf] %vm1944_vm0, %v2280_v4  ;;  %v2281_v7 = vpack.c.bf16 %v1667_v5, %v1667_v5  ;;  %v1257_v8 = vadd.f32 %v3138_v15, %v1256_v6  ;;  %v1545_v9 = vpop.f32.mrb[88].mxu0  ;;  %v1258_v10 = vpop.f32.mrb[89].mxu1 }
 0x1c6   :  { %v1547_v11 = vpop.f32.mrb[89].mxu0  ;;  %v1259_v12 = vpop.f32.mrb[90].mxu1 }
 0x1c7   :  { %1988 = vst.msk [vmem:[%s3522_s3 + $0xac] sm:$0xf] %vm1944_vm0, %v2281_v7  ;;  %v1546_v13 = vadd.f32 %v1545_v9, %v1257_v8  ;;  %v1260_v14 = vadd.f32 %v3138_v15, %v1259_v12  ;;  %v1548_v16 = vpop.f32.mrb[90].mxu0  ;;  %v1261_v17 = vpop.f32.mrb[91].mxu1 }
 0x1c8   :  { %v1550_v18 = vpop.f32.mrb[91].mxu0 }
 0x1c9   :  { %v1668_v19 = vmax.f32 %v1546_v13, 0.0  ;;  %v1549_v20 = vadd.f32 %v1548_v16, %v1260_v14  ;;  %v3458_v16 = vld [vmem:[%s3521_s2] ss:$0 sm:$0xff] }
 0x1cb   :  { %v2282_v21 = vpack.c.bf16 %v1668_v19, %v1668_v19  ;;  %v1669_v22 = vmax.f32 %v1549_v20, 0.0 }
 0x1cc   :  { %v1264_v23 = vpop.f32.mrb[92].mxu1 }
 0x1cd   :  { %1989 = vst.msk [vmem:[%s3522_s3 + $0xb0] sm:$0xf] %vm1944_vm0, %v2282_v21  ;;  %v2283_v24 = vpack.c.bf16 %v1669_v22, %v1669_v22  ;;  %v1265_v25 = vadd.f32 %v3138_v15, %v1264_v23  ;;  %v1553_v26 = vpop.f32.mrb[92].mxu0  ;;  %v1266_v27 = vpop.f32.mrb[93].mxu1 }
 0x1ce   :  { %v1555_v28 = vpop.f32.mrb[93].mxu0  ;;  %v1267_v29 = vpop.f32.mrb[94].mxu1 }
 0x1cf   :  { %1990 = vst.msk [vmem:[%s3522_s3 + $0xb4] sm:$0xf] %vm1944_vm0, %v2283_v24  ;;  %v1554_v30 = vadd.f32 %v1553_v26, %v1265_v25  ;;  %v1268_v31 = vadd.f32 %v3138_v15, %v1267_v29  ;;  %v1556_v32 = vpop.f32.mrb[94].mxu0  ;;  %v1269_v33 = vpop.f32.mrb[95].mxu1 }
 0x1d0   :  { %v1558_v34 = vpop.f32.mrb[95].mxu0 }
 0x1d1   :  { %v1670_v35 = vmax.f32 %v1554_v30, 0.0  ;;  %v1557_v36 = vadd.f32 %v1556_v32, %v1268_v31 }
 0x1d3   :  { %v2284_v37 = vpack.c.bf16 %v1670_v35, %v1670_v35  ;;  %v1671_v38 = vmax.f32 %v1557_v36, 0.0 }
 0x1d4   :  { %v1272_v39 = vpop.f32.mrb[96].mxu1 }
 0x1d5   :  { %1991 = vst.msk [vmem:[%s3522_s3 + $0xb8] sm:$0xf] %vm1944_vm0, %v2284_v37  ;;  %v2285_v40 = vpack.c.bf16 %v1671_v38, %v1671_v38  ;;  %v1273_v41 = vadd.f32 %v3138_v15, %v1272_v39  ;;  %v1561_v42 = vpop.f32.mrb[96].mxu0  ;;  %v1274_v43 = vpop.f32.mrb[97].mxu1 }
 0x1d6   :  { %v1563_v44 = vpop.f32.mrb[97].mxu0  ;;  %v1275_v45 = vpop.f32.mrb[98].mxu1 }
 0x1d7   :  { %1992 = vst.msk [vmem:[%s3522_s3 + $0xbc] sm:$0xf] %vm1944_vm0, %v2285_v40  ;;  %v1562_v46 = vadd.f32 %v1561_v42, %v1273_v41  ;;  %v1276_v47 = vadd.f32 %v3138_v15, %v1275_v45  ;;  %v1564_v48 = vpop.f32.mrb[98].mxu0  ;;  %v1277_v49 = vpop.f32.mrb[99].mxu1 }
 0x1d8   :  { %v1566_v50 = vpop.f32.mrb[99].mxu0 }
 0x1d9   :  { %v1672_v51 = vmax.f32 %v1562_v46, 0.0  ;;  %v1565_v52 = vadd.f32 %v1564_v48, %v1276_v47 }
 0x1db   :  { %v2286_v53 = vpack.c.bf16 %v1672_v51, %v1672_v51  ;;  %v1673_v54 = vmax.f32 %v1565_v52, 0.0 }
 0x1dc   :  { %v1280_v55 = vpop.f32.mrb[100].mxu1 }
 0x1dd   :  { %1993 = vst.msk [vmem:[%s3522_s3 + $0xc0] sm:$0xf] %vm1944_vm0, %v2286_v53  ;;  %v2287_v56 = vpack.c.bf16 %v1673_v54, %v1673_v54  ;;  %v1281_v57 = vadd.f32 %v3138_v15, %v1280_v55  ;;  %v1569_v58 = vpop.f32.mrb[100].mxu0  ;;  %v1282_v59 = vpop.f32.mrb[101].mxu1 }
 0x1de   :  { %v1571_v60 = vpop.f32.mrb[101].mxu0  ;;  %v1283_v61 = vpop.f32.mrb[102].mxu1 }
 0x1df   :  { %1994 = vst.msk [vmem:[%s3522_s3 + $0xc4] sm:$0xf] %vm1944_vm0, %v2287_v56  ;;  %v1570_v62 = vadd.f32 %v1569_v58, %v1281_v57  ;;  %v1284_v63 = vadd.f32 %v3138_v15, %v1283_v61  ;;  %v1572_v0 = vpop.f32.mrb[102].mxu0  ;;  %v1285_v1 = vpop.f32.mrb[103].mxu1 }
 0x1e0   :  { %v1574_v2 = vpop.f32.mrb[103].mxu0 }
 0x1e1   :  { %v1674_v3 = vmax.f32 %v1570_v62, 0.0  ;;  %v1573_v4 = vadd.f32 %v1572_v0, %v1284_v63 }
 0x1e3   :  { %v2288_v5 = vpack.c.bf16 %v1674_v3, %v1674_v3  ;;  %v1675_v6 = vmax.f32 %v1573_v4, 0.0 }
 0x1e4   :  { %v1288_v7 = vpop.f32.mrb[104].mxu1 }
 0x1e5   :  { %1995 = vst.msk [vmem:[%s3522_s3 + $0xc8] sm:$0xf] %vm1944_vm0, %v2288_v5  ;;  %v2289_v8 = vpack.c.bf16 %v1675_v6, %v1675_v6  ;;  %v1289_v9 = vadd.f32 %v3138_v15, %v1288_v7  ;;  %v1577_v10 = vpop.f32.mrb[104].mxu0  ;;  %v1290_v11 = vpop.f32.mrb[105].mxu1 }
 0x1e6   :  { %v1579_v12 = vpop.f32.mrb[105].mxu0  ;;  %v1291_v13 = vpop.f32.mrb[106].mxu1 }
 0x1e7   :  { %1996 = vst.msk [vmem:[%s3522_s3 + $0xcc] sm:$0xf] %vm1944_vm0, %v2289_v8  ;;  %v1578_v14 = vadd.f32 %v1577_v10, %v1289_v9  ;;  %v1292_v17 = vadd.f32 %v3458_v16, %v1291_v13  ;;  %v1580_v18 = vpop.f32.mrb[106].mxu0  ;;  %v1293_v19 = vpop.f32.mrb[107].mxu1 }
 0x1e8   :  { %v1582_v15 = vpop.f32.mrb[107].mxu0 }
 0x1e9   :  { %v1676_v20 = vmax.f32 %v1578_v14, 0.0  ;;  %v1581_v21 = vadd.f32 %v1580_v18, %v1292_v17 }
 0x1eb   :  { %v2290_v22 = vpack.c.bf16 %v1676_v20, %v1676_v20  ;;  %v1677_v23 = vmax.f32 %v1581_v21, 0.0 }
 0x1ec   :  { %v1296_v24 = vpop.f32.mrb[108].mxu1 }
 0x1ed   :  { %1997 = vst.msk [vmem:[%s3522_s3 + $0xd0] sm:$0xf] %vm1944_vm0, %v2290_v22  ;;  %v2291_v25 = vpack.c.bf16 %v1677_v23, %v1677_v23  ;;  %v1297_v26 = vadd.f32 %v3458_v16, %v1296_v24  ;;  %v1585_v27 = vpop.f32.mrb[108].mxu0  ;;  %v1298_v28 = vpop.f32.mrb[109].mxu1 }
 0x1ee   :  { %v1587_v29 = vpop.f32.mrb[109].mxu0  ;;  %v1299_v30 = vpop.f32.mrb[110].mxu1 }
 0x1ef   :  { %1998 = vst.msk [vmem:[%s3522_s3 + $0xd4] sm:$0xf] %vm1944_vm0, %v2291_v25  ;;  %v1586_v31 = vadd.f32 %v1585_v27, %v1297_v26  ;;  %v1300_v32 = vadd.f32 %v3458_v16, %v1299_v30  ;;  %v1588_v33 = vpop.f32.mrb[110].mxu0  ;;  %v1301_v34 = vpop.f32.mrb[111].mxu1 }
 0x1f0   :  { %v1590_v35 = vpop.f32.mrb[111].mxu0 }
 0x1f1   :  { %v1678_v36 = vmax.f32 %v1586_v31, 0.0  ;;  %v1589_v37 = vadd.f32 %v1588_v33, %v1300_v32 }
 0x1f3   :  { %v2292_v38 = vpack.c.bf16 %v1678_v36, %v1678_v36  ;;  %v1679_v39 = vmax.f32 %v1589_v37, 0.0 }
 0x1f4   :  { %v1304_v40 = vpop.f32.mrb[112].mxu1 }
 0x1f5   :  { %1999 = vst.msk [vmem:[%s3522_s3 + $0xd8] sm:$0xf] %vm1944_vm0, %v2292_v38  ;;  %v2293_v41 = vpack.c.bf16 %v1679_v39, %v1679_v39  ;;  %v1305_v42 = vadd.f32 %v3458_v16, %v1304_v40  ;;  %v1593_v43 = vpop.f32.mrb[112].mxu0  ;;  %v1306_v44 = vpop.f32.mrb[113].mxu1 }
 0x1f6   :  { %v1595_v45 = vpop.f32.mrb[113].mxu0  ;;  %v1307_v46 = vpop.f32.mrb[114].mxu1 }
 0x1f7   :  { %2000 = vst.msk [vmem:[%s3522_s3 + $0xdc] sm:$0xf] %vm1944_vm0, %v2293_v41  ;;  %v1594_v47 = vadd.f32 %v1593_v43, %v1305_v42  ;;  %v1308_v48 = vadd.f32 %v3458_v16, %v1307_v46  ;;  %v1596_v49 = vpop.f32.mrb[114].mxu0  ;;  %v1309_v50 = vpop.f32.mrb[115].mxu1 }
 0x1f8   :  { %v1598_v51 = vpop.f32.mrb[115].mxu0 }
 0x1f9   :  { %v1680_v52 = vmax.f32 %v1594_v47, 0.0  ;;  %v1597_v53 = vadd.f32 %v1596_v49, %v1308_v48 }
 0x1fb   :  { %v2294_v54 = vpack.c.bf16 %v1680_v52, %v1680_v52  ;;  %v1681_v55 = vmax.f32 %v1597_v53, 0.0 }
 0x1fc   :  { %v1312_v56 = vpop.f32.mrb[116].mxu1 }
 0x1fd   :  { %2001 = vst.msk [vmem:[%s3522_s3 + $0xe0] sm:$0xf] %vm1944_vm0, %v2294_v54  ;;  %v2295_v57 = vpack.c.bf16 %v1681_v55, %v1681_v55  ;;  %v1313_v58 = vadd.f32 %v3458_v16, %v1312_v56  ;;  %v1601_v59 = vpop.f32.mrb[116].mxu0  ;;  %v1314_v60 = vpop.f32.mrb[117].mxu1 }
 0x1fe   :  { %v1603_v61 = vpop.f32.mrb[117].mxu0  ;;  %v1315_v62 = vpop.f32.mrb[118].mxu1 }
 0x1ff   :  { %2002 = vst.msk [vmem:[%s3522_s3 + $0xe4] sm:$0xf] %vm1944_vm0, %v2295_v57  ;;  %v1602_v63 = vadd.f32 %v1601_v59, %v1313_v58  ;;  %v1316_v0 = vadd.f32 %v3458_v16, %v1315_v62  ;;  %v1604_v1 = vpop.f32.mrb[118].mxu0  ;;  %v1317_v2 = vpop.f32.mrb[119].mxu1 }
 0x200   :  { %v1606_v3 = vpop.f32.mrb[119].mxu0 }
 0x201   :  { %v1682_v4 = vmax.f32 %v1602_v63, 0.0  ;;  %v1605_v5 = vadd.f32 %v1604_v1, %v1316_v0 }
 0x203   :  { %v2296_v6 = vpack.c.bf16 %v1682_v4, %v1682_v4  ;;  %v1683_v7 = vmax.f32 %v1605_v5, 0.0 }
 0x204   :  { %v1320_v8 = vpop.f32.mrb[120].mxu1 }
 0x205   :  { %2003 = vst.msk [vmem:[%s3522_s3 + $0xe8] sm:$0xf] %vm1944_vm0, %v2296_v6  ;;  %v2297_v9 = vpack.c.bf16 %v1683_v7, %v1683_v7  ;;  %v1321_v10 = vadd.f32 %v3458_v16, %v1320_v8  ;;  %v1609_v11 = vpop.f32.mrb[120].mxu0  ;;  %v1322_v12 = vpop.f32.mrb[121].mxu1 }
 0x206   :  { %v1611_v13 = vpop.f32.mrb[121].mxu0  ;;  %v1323_v14 = vpop.f32.mrb[122].mxu1 }
 0x207   :  { %2004 = vst.msk [vmem:[%s3522_s3 + $0xec] sm:$0xf] %vm1944_vm0, %v2297_v9  ;;  %v1610_v17 = vadd.f32 %v1609_v11, %v1321_v10  ;;  %v1324_v18 = vadd.f32 %v3458_v16, %v1323_v14  ;;  %v1612_v19 = vpop.f32.mrb[122].mxu0  ;;  %v1325_v15 = vpop.f32.mrb[123].mxu1 }
 0x208   :  { %v1614_v20 = vpop.f32.mrb[123].mxu0 }
 0x209   :  { %v1684_v21 = vmax.f32 %v1610_v17, 0.0  ;;  %v1613_v22 = vadd.f32 %v1612_v19, %v1324_v18 }
 0x20b   :  { %v2298_v23 = vpack.c.bf16 %v1684_v21, %v1684_v21  ;;  %v1685_v24 = vmax.f32 %v1613_v22, 0.0 }
 0x20c   :  { %v1328_v25 = vpop.f32.mrb[124].mxu1 }
 0x20d   :  { %2005 = vst.msk [vmem:[%s3522_s3 + $0xf0] sm:$0xf] %vm1944_vm0, %v2298_v23  ;;  %v2299_v26 = vpack.c.bf16 %v1685_v24, %v1685_v24  ;;  %v1329_v27 = vadd.f32 %v3458_v16, %v1328_v25  ;;  %v1617_v28 = vpop.f32.mrb[124].mxu0  ;;  %v1330_v29 = vpop.f32.mrb[125].mxu1 }
 0x20e   :  { %v1619_v30 = vpop.f32.mrb[125].mxu0  ;;  %v1331_v31 = vpop.f32.mrb[126].mxu1 }
 0x20f   :  { %2006 = vst.msk [vmem:[%s3522_s3 + $0xf4] sm:$0xf] %vm1944_vm0, %v2299_v26  ;;  %v1618_v32 = vadd.f32 %v1617_v28, %v1329_v27  ;;  %v1332_v33 = vadd.f32 %v3458_v16, %v1331_v31  ;;  %v1620_v34 = vpop.f32.mrb[126].mxu0  ;;  %v1333_v35 = vpop.f32.mrb[127].mxu1 }
 0x210   :  { %v1622_v36 = vpop.f32.mrb[127].mxu0 }
 0x211   :  { %v1686_v37 = vmax.f32 %v1618_v32, 0.0  ;;  %v1621_v38 = vadd.f32 %v1620_v34, %v1332_v33 }
 0x213   :  { %v2300_v39 = vpack.c.bf16 %v1686_v37, %v1686_v37  ;;  %v1687_v40 = vmax.f32 %v1621_v38, 0.0 }
 0x215   :  { %2007 = vst.msk [vmem:[%s3522_s3 + $0xf8] sm:$0xf] %vm1944_vm0, %v2300_v39  ;;  %v2301_v41 = vpack.c.bf16 %v1687_v40, %v1687_v40 }
 0x217   :  { %2008 = vst.msk [vmem:[%s3522_s3 + $0xfc] sm:$0xf] %vm1944_vm0, %v2301_v41 }

// kernel: encoder_forward.5
= control target key start
LH: loop header
LB: loop body
LE: loop exit
PB: predicated region body
PF: predicated region fallthrough
CT: control target
= control target key end

     0   :  { %vm744_vm0 = vcmask 519168   ;;  %s1367_s1 = inlined_call_operand.vmem [shape: bf16[512,64], index: 1, kind: input, shape index: {}]   ;;  %s1368_s0 = inlined_call_operand.vmem [shape: bf16[128,512], index: 0, kind: input, shape index: {}]   ;;  %s1369_s2 = inlined_call_operand.vmem [shape: f32[1,64], index: 2, kind: input, shape index: {}]   ;;  %s1370_s3 = inlined_call_operand.vmem [shape: bf16[128,64], index: 3, kind: output, shape index: {}]  }
   0x1   :  { %v990_v0 = vld [vmem:[%s1367_s1 + $0x40] sm:$0xff]   ;;  %v994_v4 = vld [vmem:[%s1367_s1 + $0x48] sm:$0xff]   ;;  %v998_v8 = vld [vmem:[%s1367_s1 + $0x50] sm:$0xff]  }
   0x2   :  { %v991_v1 = vld [vmem:[%s1367_s1 + $0xc0] sm:$0xff]   ;;  %862 = vmatprep.subr.bf16.mxu0 %v990_v0  ;;  %v995_v5 = vld [vmem:[%s1367_s1 + $0xc8] sm:$0xff]   ;;  %v999_v9 = vld [vmem:[%s1367_s1 + $0xd0] sm:$0xff]  }
   0x3   :  { %v992_v2 = vld [vmem:[%s1367_s1] sm:$0xff]   ;;  %926 = vmatprep.subr.bf16.mxu1 %v991_v1  ;;  %v996_v6 = vld [vmem:[%s1367_s1 + $0x8] sm:$0xff]   ;;  %v1000_v10 = vld [vmem:[%s1367_s1 + $0x10] sm:$0xff]  }
   0x4   :  { %v993_v3 = vld [vmem:[%s1367_s1 + $0x80] sm:$0xff]   ;;  %863 = vmatpush3.bf16.msra.mxu0 %v992_v2  ;;  %v997_v7 = vld [vmem:[%s1367_s1 + $0x88] sm:$0xff]   ;;  %v1001_v11 = vld [vmem:[%s1367_s1 + $0x90] sm:$0xff]  }
   0x5   :  { %927 = vmatpush3.bf16.msra.mxu1 %v993_v3  ;;  %864 = vmatprep.subr.bf16.mxu0 %v994_v4  ;;  %v1002_v12 = vld [vmem:[%s1367_s1 + $0x58] sm:$0xff]   ;;  %v1006_v16 = vld [vmem:[%s1367_s1 + $0x60] sm:$0xff]   ;;  %v1010_v20 = vld [vmem:[%s1367_s1 + $0x68] sm:$0xff]  }
   0x6   :  { %928 = vmatprep.subr.bf16.mxu1 %v995_v5  ;;  %v1003_v13 = vld [vmem:[%s1367_s1 + $0xd8] sm:$0xff]   ;;  %v1007_v17 = vld [vmem:[%s1367_s1 + $0xe0] sm:$0xff]   ;;  %v1011_v21 = vld [vmem:[%s1367_s1 + $0xe8] sm:$0xff]  }
   0x7   :  { %v1004_v14 = vld [vmem:[%s1367_s1 + $0x18] sm:$0xff]   ;;  %v1008_v18 = vld [vmem:[%s1367_s1 + $0x20] sm:$0xff]   ;;  %v1012_v22 = vld [vmem:[%s1367_s1 + $0x28] sm:$0xff]  }
   0x8   :  { %865 = vmatpush3.bf16.msra.mxu0 %v996_v6  ;;  %v1005_v15 = vld [vmem:[%s1367_s1 + $0x98] sm:$0xff]   ;;  %v1009_v19 = vld [vmem:[%s1367_s1 + $0xa0] sm:$0xff]   ;;  %v1013_v23 = vld [vmem:[%s1367_s1 + $0xa8] sm:$0xff]  }
   0x9   :  { %929 = vmatpush3.bf16.msra.mxu1 %v997_v7  ;;  %866 = vmatprep.subr.bf16.mxu0 %v998_v8  ;;  %v1014_v24 = vld [vmem:[%s1367_s1 + $0x70] sm:$0xff]   ;;  %v1018_v28 = vld [vmem:[%s1367_s1 + $0x78] sm:$0xff]   ;;  %v1285_v2 = vld [vmem:[%s1369_s2] ss:$0 sm:$0xff] }
   0xa   :  { %930 = vmatprep.subr.bf16.mxu1 %v999_v9  ;;  %v1015_v25 = vld [vmem:[%s1367_s1 + $0xf0] sm:$0xff]   ;;  %v1019_v29 = vld [vmem:[%s1367_s1 + $0xf8] sm:$0xff]  }
   0xb   :  { %v1016_v26 = vld [vmem:[%s1367_s1 + $0x30] sm:$0xff]   ;;  %v1020_v30 = vld [vmem:[%s1367_s1 + $0x38] sm:$0xff]  }
   0xc   :  { %867 = vmatpush3.bf16.msra.mxu0 %v1000_v10  ;;  %v1017_v27 = vld [vmem:[%s1367_s1 + $0xb0] sm:$0xff]   ;;  %v1021_v31 = vld [vmem:[%s1367_s1 + $0xb8] sm:$0xff]  }
   0xd   :  { %931 = vmatpush3.bf16.msra.mxu1 %v1001_v11  ;;  %868 = vmatprep.subr.bf16.mxu0 %v1002_v12  ;;  %v1022_v32 = vld [vmem:[%s1368_s0] ss:$16 sps:$4 sm:$0xff]   ;;  %v1024_v33 = vld [vmem:[%s1368_s0 + $0x4] ss:$16 sps:$4 sm:$0xff]   ;;  %v1025_v34 = vld [vmem:[%s1368_s0 + $0x8] ss:$16 sps:$4 sm:$0xff]  }
   0xe   :  { %932 = vmatprep.subr.bf16.mxu1 %v1003_v13  ;;  %v1027_v35 = vld [vmem:[%s1368_s0 + $0xc] ss:$16 sps:$4 sm:$0xff]   ;;  %502 = vmatprep.mubr.bf16.mxu0 %v1024_v33  ;;  %v1028_v36 = vld [vmem:[%s1368_s0 + $0x24] ss:$16 sps:$4 sm:$0xff]   ;;  %v1032_v38 = vld [vmem:[%s1368_s0 + $0x20] ss:$16 sps:$4 sm:$0xff]  }
   0xf   :  { %599 = vmatprep.mubr.bf16.mxu1 %v1027_v35  ;;  %v1030_v37 = vld [vmem:[%s1368_s0 + $0x2c] ss:$16 sps:$4 sm:$0xff]   ;;  %v1033_v39 = vld [vmem:[%s1368_s0 + $0x28] ss:$16 sps:$4 sm:$0xff]   ;;  %v1034_v40 = vld [vmem:[%s1368_s0 + $0x44] ss:$16 sps:$4 sm:$0xff]  }
  0x10   :  { %869 = vmatpush3.bf16.msra.mxu0 %v1004_v14  ;;  %v1036_v41 = vld [vmem:[%s1368_s0 + $0x4c] ss:$16 sps:$4 sm:$0xff]   ;;  %v1038_v42 = vld [vmem:[%s1368_s0 + $0x40] ss:$16 sps:$4 sm:$0xff]   ;;  %v1039_v43 = vld [vmem:[%s1368_s0 + $0x48] ss:$16 sps:$4 sm:$0xff]  }
  0x11   :  { %933 = vmatpush3.bf16.msra.mxu1 %v1005_v15  ;;  %870 = vmatprep.subr.bf16.mxu0 %v1006_v16  ;;  %v1040_v44 = vld [vmem:[%s1368_s0 + $0x64] ss:$16 sps:$4 sm:$0xff]   ;;  %v1042_v45 = vld [vmem:[%s1368_s0 + $0x6c] ss:$16 sps:$4 sm:$0xff]   ;;  %v1044_v46 = vld [vmem:[%s1368_s0 + $0x60] ss:$16 sps:$4 sm:$0xff]  }
  0x12   :  { %934 = vmatprep.subr.bf16.mxu1 %v1007_v17  ;;  %v1045_v47 = vld [vmem:[%s1368_s0 + $0x68] ss:$16 sps:$4 sm:$0xff]   ;;  %v1046_v48 = vld [vmem:[%s1368_s0 + $0x84] ss:$16 sps:$4 sm:$0xff]   ;;  %v1048_v49 = vld [vmem:[%s1368_s0 + $0x8c] ss:$16 sps:$4 sm:$0xff]  }
  0x13   :  { %v1050_v50 = vld [vmem:[%s1368_s0 + $0x80] ss:$16 sps:$4 sm:$0xff]   ;;  %v1051_v51 = vld [vmem:[%s1368_s0 + $0x88] ss:$16 sps:$4 sm:$0xff]   ;;  %v1052_v52 = vld [vmem:[%s1368_s0 + $0xa4] ss:$16 sps:$4 sm:$0xff]  }
  0x14   :  { %871 = vmatpush3.bf16.msra.mxu0 %v1008_v18  ;;  %v1054_v53 = vld [vmem:[%s1368_s0 + $0xac] ss:$16 sps:$4 sm:$0xff]   ;;  %v1056_v54 = vld [vmem:[%s1368_s0 + $0xa0] ss:$16 sps:$4 sm:$0xff]   ;;  %v1057_v55 = vld [vmem:[%s1368_s0 + $0xa8] ss:$16 sps:$4 sm:$0xff]  }
  0x15   :  { %935 = vmatpush3.bf16.msra.mxu1 %v1009_v19  ;;  %872 = vmatprep.subr.bf16.mxu0 %v1010_v20  ;;  %v1058_v56 = vld [vmem:[%s1368_s0 + $0xc4] ss:$16 sps:$4 sm:$0xff]   ;;  %v1060_v57 = vld [vmem:[%s1368_s0 + $0xcc] ss:$16 sps:$4 sm:$0xff]   ;;  %v1062_v58 = vld [vmem:[%s1368_s0 + $0xc0] ss:$16 sps:$4 sm:$0xff]  }
  0x16   :  { %936 = vmatprep.subr.bf16.mxu1 %v1011_v21  ;;  %v1063_v59 = vld [vmem:[%s1368_s0 + $0xc8] ss:$16 sps:$4 sm:$0xff]   ;;  %v1064_v60 = vld [vmem:[%s1368_s0 + $0xe4] ss:$16 sps:$4 sm:$0xff]   ;;  %v1066_v61 = vld [vmem:[%s1368_s0 + $0xec] ss:$16 sps:$4 sm:$0xff]  }
  0x17   :  { %v1068_v62 = vld [vmem:[%s1368_s0 + $0xe0] ss:$16 sps:$4 sm:$0xff]   ;;  %v1069_v63 = vld [vmem:[%s1368_s0 + $0xe8] ss:$16 sps:$4 sm:$0xff]  }
  0x18   :  { %873 = vmatpush3.bf16.msra.mxu0 %v1012_v22 }
  0x19   :  { %937 = vmatpush3.bf16.msra.mxu1 %v1013_v23  ;;  %874 = vmatprep.subr.bf16.mxu0 %v1014_v24 }
  0x1a   :  { %938 = vmatprep.subr.bf16.mxu1 %v1015_v25 }
  0x1c   :  { %875 = vmatpush3.bf16.msra.mxu0 %v1016_v26 }
  0x1d   :  { %939 = vmatpush3.bf16.msra.mxu1 %v1017_v27  ;;  %876 = vmatprep.subr.bf16.mxu0 %v1018_v28 }
  0x1e   :  { %940 = vmatprep.subr.bf16.mxu1 %v1019_v29 }
  0x20   :  { %877 = vmatpush3.bf16.msra.mxu0 %v1020_v30 }
  0x21   :  { %941 = vmatpush3.bf16.msra.mxu1 %v1021_v31 }
  0x23   :  { %503 = vmatmul.mubr.bf16.vlgmr.msra.gmra.mrb[0].mxu0 %v1022_v32 }
  0x24   :  { %600 = vmatmul.mubr.bf16.vlgmr.msra.gmra.mrb[0].mxu1 %v1025_v34  ;;  %510 = vmatprep.mubr.bf16.mxu0 %v1028_v36 }
  0x25   :  { %607 = vmatprep.mubr.bf16.mxu1 %v1030_v37 }
  0x2b   :  { %511 = vmatmul.mubr.bf16.gmra.mrb[4].mxu0 %v1032_v38 }
  0x2c   :  { %608 = vmatmul.mubr.bf16.gmra.mrb[4].mxu1 %v1033_v39  ;;  %518 = vmatprep.mubr.bf16.mxu0 %v1034_v40 }
  0x2d   :  { %615 = vmatprep.mubr.bf16.mxu1 %v1036_v41 }
  0x33   :  { %519 = vmatmul.mubr.bf16.gmra.mrb[8].mxu0 %v1038_v42 }
  0x34   :  { %616 = vmatmul.mubr.bf16.gmra.mrb[8].mxu1 %v1039_v43  ;;  %526 = vmatprep.mubr.bf16.mxu0 %v1040_v44 }
  0x35   :  { %623 = vmatprep.mubr.bf16.mxu1 %v1042_v45 }
  0x3b   :  { %527 = vmatmul.mubr.bf16.gmra.mrb[12].mxu0 %v1044_v46 }
  0x3c   :  { %624 = vmatmul.mubr.bf16.gmra.mrb[12].mxu1 %v1045_v47  ;;  %534 = vmatprep.mubr.bf16.mxu0 %v1046_v48 }
  0x3d   :  { %631 = vmatprep.mubr.bf16.mxu1 %v1048_v49 }
  0x43   :  { %535 = vmatmul.mubr.bf16.gmra.mrb[16].mxu0 %v1050_v50 }
  0x44   :  { %632 = vmatmul.mubr.bf16.gmra.mrb[16].mxu1 %v1051_v51  ;;  %542 = vmatprep.mubr.bf16.mxu0 %v1052_v52 }
  0x45   :  { %639 = vmatprep.mubr.bf16.mxu1 %v1054_v53 }
  0x4b   :  { %543 = vmatmul.mubr.bf16.gmra.mrb[20].mxu0 %v1056_v54 }
  0x4c   :  { %640 = vmatmul.mubr.bf16.gmra.mrb[20].mxu1 %v1057_v55  ;;  %550 = vmatprep.mubr.bf16.mxu0 %v1058_v56 }
  0x4d   :  { %647 = vmatprep.mubr.bf16.mxu1 %v1060_v57 }
  0x53   :  { %551 = vmatmul.mubr.bf16.gmra.mrb[24].mxu0 %v1062_v58 }
  0x54   :  { %648 = vmatmul.mubr.bf16.gmra.mrb[24].mxu1 %v1063_v59  ;;  %558 = vmatprep.mubr.bf16.mxu0 %v1064_v60 }
  0x55   :  { %655 = vmatprep.mubr.bf16.mxu1 %v1066_v61 }
  0x5b   :  { %559 = vmatmul.mubr.bf16.gmra.mrb[28].mxu0 %v1068_v62 }
  0x5c   :  { %656 = vmatmul.mubr.bf16.gmra.mrb[28].mxu1 %v1069_v63 }
  0xf6   :  { %v878_v0 = vpop.f32.mrb[0].mxu0 }
  0xf7   :  { %v942_v1 = vpop.f32.mrb[0].mxu1  ;;  %v879_v3 = vpop.f32.mrb[1].mxu0 }
  0xf8   :  { %v880_v4 = vadd.f32 %v879_v3, %v878_v0  ;;  %v943_v5 = vpop.f32.mrb[1].mxu1  ;;  %v881_v6 = vpop.f32.mrb[2].mxu0 }
  0xf9   :  { %v944_v7 = vadd.f32 %v943_v5, %v942_v1  ;;  %v945_v8 = vpop.f32.mrb[2].mxu1  ;;  %v882_v9 = vpop.f32.mrb[3].mxu0 }
  0xfa   :  { %v505_v10 = vadd.f32 %v880_v4, %v1285_v2  ;;  %v883_v11 = vadd.f32 %v882_v9, %v881_v6  ;;  %v946_v12 = vpop.f32.mrb[3].mxu1 }
  0xfb   :  { %v947_v13 = vadd.f32 %v946_v12, %v945_v8 }
  0xfc   :  { %v602_v14 = vadd.f32 %v944_v7, %v505_v10  ;;  %v508_v15 = vadd.f32 %v883_v11, %v1285_v2 }
  0xfe   :  { %v664_v16 = vmax.f32 %v602_v14, 0.0  ;;  %v605_v17 = vadd.f32 %v947_v13, %v508_v15  ;;  %v884_v18 = vpop.f32.mrb[4].mxu0 }
  0xff   :  { %v948_v19 = vpop.f32.mrb[4].mxu1  ;;  %v885_v20 = vpop.f32.mrb[5].mxu0 }
 0x100   :  { %v846_v21 = vpack.c.bf16 %v664_v16, %v664_v16  ;;  %v665_v22 = vmax.f32 %v605_v17, 0.0  ;;  %v886_v23 = vadd.f32 %v885_v20, %v884_v18  ;;  %v949_v24 = vpop.f32.mrb[5].mxu1  ;;  %v887_v25 = vpop.f32.mrb[6].mxu0 }
 0x101   :  { %v950_v26 = vadd.f32 %v949_v24, %v948_v19  ;;  %v951_v27 = vpop.f32.mrb[6].mxu1  ;;  %v888_v28 = vpop.f32.mrb[7].mxu0 }
 0x102   :  { %745 = vst.msk [vmem:[%s1370_s3] sm:$0xf] %vm744_vm0, %v846_v21  ;;  %v847_v29 = vpack.c.bf16 %v665_v22, %v665_v22  ;;  %v513_v30 = vadd.f32 %v886_v23, %v1285_v2  ;;  %v889_v31 = vadd.f32 %v888_v28, %v887_v25  ;;  %v952_v32 = vpop.f32.mrb[7].mxu1 }
 0x103   :  { %v953_v33 = vadd.f32 %v952_v32, %v951_v27 }
 0x104   :  { %746 = vst.msk [vmem:[%s1370_s3 + $0x4] sm:$0xf] %vm744_vm0, %v847_v29  ;;  %v610_v34 = vadd.f32 %v950_v26, %v513_v30  ;;  %v516_v35 = vadd.f32 %v889_v31, %v1285_v2 }
 0x106   :  { %v666_v36 = vmax.f32 %v610_v34, 0.0  ;;  %v613_v37 = vadd.f32 %v953_v33, %v516_v35  ;;  %v890_v38 = vpop.f32.mrb[8].mxu0 }
 0x107   :  { %v954_v39 = vpop.f32.mrb[8].mxu1  ;;  %v891_v40 = vpop.f32.mrb[9].mxu0 }
 0x108   :  { %v848_v41 = vpack.c.bf16 %v666_v36, %v666_v36  ;;  %v667_v42 = vmax.f32 %v613_v37, 0.0  ;;  %v892_v43 = vadd.f32 %v891_v40, %v890_v38  ;;  %v955_v44 = vpop.f32.mrb[9].mxu1  ;;  %v893_v45 = vpop.f32.mrb[10].mxu0 }
 0x109   :  { %v956_v46 = vadd.f32 %v955_v44, %v954_v39  ;;  %v957_v47 = vpop.f32.mrb[10].mxu1  ;;  %v894_v48 = vpop.f32.mrb[11].mxu0 }
 0x10a   :  { %747 = vst.msk [vmem:[%s1370_s3 + $0x8] sm:$0xf] %vm744_vm0, %v848_v41  ;;  %v849_v49 = vpack.c.bf16 %v667_v42, %v667_v42  ;;  %v521_v50 = vadd.f32 %v892_v43, %v1285_v2  ;;  %v895_v51 = vadd.f32 %v894_v48, %v893_v45  ;;  %v958_v52 = vpop.f32.mrb[11].mxu1 }
 0x10b   :  { %v959_v53 = vadd.f32 %v958_v52, %v957_v47 }
 0x10c   :  { %748 = vst.msk [vmem:[%s1370_s3 + $0xc] sm:$0xf] %vm744_vm0, %v849_v49  ;;  %v618_v54 = vadd.f32 %v956_v46, %v521_v50  ;;  %v524_v55 = vadd.f32 %v895_v51, %v1285_v2 }
 0x10e   :  { %v668_v56 = vmax.f32 %v618_v54, 0.0  ;;  %v621_v57 = vadd.f32 %v959_v53, %v524_v55  ;;  %v896_v58 = vpop.f32.mrb[12].mxu0 }
 0x10f   :  { %v960_v59 = vpop.f32.mrb[12].mxu1  ;;  %v897_v60 = vpop.f32.mrb[13].mxu0 }
 0x110   :  { %v850_v61 = vpack.c.bf16 %v668_v56, %v668_v56  ;;  %v669_v62 = vmax.f32 %v621_v57, 0.0  ;;  %v898_v63 = vadd.f32 %v897_v60, %v896_v58  ;;  %v961_v0 = vpop.f32.mrb[13].mxu1  ;;  %v899_v1 = vpop.f32.mrb[14].mxu0 }
 0x111   :  { %v962_v3 = vadd.f32 %v961_v0, %v960_v59  ;;  %v963_v4 = vpop.f32.mrb[14].mxu1  ;;  %v900_v5 = vpop.f32.mrb[15].mxu0 }
 0x112   :  { %749 = vst.msk [vmem:[%s1370_s3 + $0x10] sm:$0xf] %vm744_vm0, %v850_v61  ;;  %v851_v6 = vpack.c.bf16 %v669_v62, %v669_v62  ;;  %v529_v7 = vadd.f32 %v898_v63, %v1285_v2  ;;  %v901_v8 = vadd.f32 %v900_v5, %v899_v1  ;;  %v964_v9 = vpop.f32.mrb[15].mxu1 }
 0x113   :  { %v965_v10 = vadd.f32 %v964_v9, %v963_v4 }
 0x114   :  { %750 = vst.msk [vmem:[%s1370_s3 + $0x14] sm:$0xf] %vm744_vm0, %v851_v6  ;;  %v626_v11 = vadd.f32 %v962_v3, %v529_v7  ;;  %v532_v12 = vadd.f32 %v901_v8, %v1285_v2 }
 0x116   :  { %v670_v13 = vmax.f32 %v626_v11, 0.0  ;;  %v629_v14 = vadd.f32 %v965_v10, %v532_v12  ;;  %v902_v15 = vpop.f32.mrb[16].mxu0 }
 0x117   :  { %v966_v16 = vpop.f32.mrb[16].mxu1  ;;  %v903_v17 = vpop.f32.mrb[17].mxu0 }
 0x118   :  { %v852_v18 = vpack.c.bf16 %v670_v13, %v670_v13  ;;  %v671_v19 = vmax.f32 %v629_v14, 0.0  ;;  %v904_v20 = vadd.f32 %v903_v17, %v902_v15  ;;  %v967_v21 = vpop.f32.mrb[17].mxu1  ;;  %v905_v22 = vpop.f32.mrb[18].mxu0 }
 0x119   :  { %v968_v23 = vadd.f32 %v967_v21, %v966_v16  ;;  %v969_v24 = vpop.f32.mrb[18].mxu1  ;;  %v906_v25 = vpop.f32.mrb[19].mxu0 }
 0x11a   :  { %751 = vst.msk [vmem:[%s1370_s3 + $0x18] sm:$0xf] %vm744_vm0, %v852_v18  ;;  %v853_v26 = vpack.c.bf16 %v671_v19, %v671_v19  ;;  %v537_v27 = vadd.f32 %v904_v20, %v1285_v2  ;;  %v907_v28 = vadd.f32 %v906_v25, %v905_v22  ;;  %v970_v29 = vpop.f32.mrb[19].mxu1 }
 0x11b   :  { %v971_v30 = vadd.f32 %v970_v29, %v969_v24 }
 0x11c   :  { %752 = vst.msk [vmem:[%s1370_s3 + $0x1c] sm:$0xf] %vm744_vm0, %v853_v26  ;;  %v634_v31 = vadd.f32 %v968_v23, %v537_v27  ;;  %v540_v32 = vadd.f32 %v907_v28, %v1285_v2 }
 0x11e   :  { %v672_v33 = vmax.f32 %v634_v31, 0.0  ;;  %v637_v34 = vadd.f32 %v971_v30, %v540_v32  ;;  %v908_v35 = vpop.f32.mrb[20].mxu0 }
 0x11f   :  { %v972_v36 = vpop.f32.mrb[20].mxu1  ;;  %v909_v37 = vpop.f32.mrb[21].mxu0 }
 0x120   :  { %v854_v38 = vpack.c.bf16 %v672_v33, %v672_v33  ;;  %v673_v39 = vmax.f32 %v637_v34, 0.0  ;;  %v910_v40 = vadd.f32 %v909_v37, %v908_v35  ;;  %v973_v41 = vpop.f32.mrb[21].mxu1  ;;  %v911_v42 = vpop.f32.mrb[22].mxu0 }
 0x121   :  { %v974_v43 = vadd.f32 %v973_v41, %v972_v36  ;;  %v975_v44 = vpop.f32.mrb[22].mxu1  ;;  %v912_v45 = vpop.f32.mrb[23].mxu0 }
 0x122   :  { %753 = vst.msk [vmem:[%s1370_s3 + $0x20] sm:$0xf] %vm744_vm0, %v854_v38  ;;  %v855_v46 = vpack.c.bf16 %v673_v39, %v673_v39  ;;  %v545_v47 = vadd.f32 %v910_v40, %v1285_v2  ;;  %v913_v48 = vadd.f32 %v912_v45, %v911_v42  ;;  %v976_v49 = vpop.f32.mrb[23].mxu1 }
 0x123   :  { %v977_v50 = vadd.f32 %v976_v49, %v975_v44 }
 0x124   :  { %754 = vst.msk [vmem:[%s1370_s3 + $0x24] sm:$0xf] %vm744_vm0, %v855_v46  ;;  %v642_v51 = vadd.f32 %v974_v43, %v545_v47  ;;  %v548_v52 = vadd.f32 %v913_v48, %v1285_v2 }
 0x126   :  { %v674_v53 = vmax.f32 %v642_v51, 0.0  ;;  %v645_v54 = vadd.f32 %v977_v50, %v548_v52  ;;  %v914_v55 = vpop.f32.mrb[24].mxu0 }
 0x127   :  { %v978_v56 = vpop.f32.mrb[24].mxu1  ;;  %v915_v57 = vpop.f32.mrb[25].mxu0 }
 0x128   :  { %v856_v58 = vpack.c.bf16 %v674_v53, %v674_v53  ;;  %v675_v59 = vmax.f32 %v645_v54, 0.0  ;;  %v916_v60 = vadd.f32 %v915_v57, %v914_v55  ;;  %v979_v61 = vpop.f32.mrb[25].mxu1  ;;  %v917_v62 = vpop.f32.mrb[26].mxu0 }
 0x129   :  { %v980_v63 = vadd.f32 %v979_v61, %v978_v56  ;;  %v981_v0 = vpop.f32.mrb[26].mxu1  ;;  %v918_v1 = vpop.f32.mrb[27].mxu0 }
 0x12a   :  { %755 = vst.msk [vmem:[%s1370_s3 + $0x28] sm:$0xf] %vm744_vm0, %v856_v58  ;;  %v857_v3 = vpack.c.bf16 %v675_v59, %v675_v59  ;;  %v553_v4 = vadd.f32 %v916_v60, %v1285_v2  ;;  %v919_v5 = vadd.f32 %v918_v1, %v917_v62  ;;  %v982_v6 = vpop.f32.mrb[27].mxu1 }
 0x12b   :  { %v983_v7 = vadd.f32 %v982_v6, %v981_v0 }
 0x12c   :  { %756 = vst.msk [vmem:[%s1370_s3 + $0x2c] sm:$0xf] %vm744_vm0, %v857_v3  ;;  %v650_v8 = vadd.f32 %v980_v63, %v553_v4  ;;  %v556_v9 = vadd.f32 %v919_v5, %v1285_v2 }
 0x12e   :  { %v676_v10 = vmax.f32 %v650_v8, 0.0  ;;  %v653_v11 = vadd.f32 %v983_v7, %v556_v9  ;;  %v920_v12 = vpop.f32.mrb[28].mxu0 }
 0x12f   :  { %v984_v13 = vpop.f32.mrb[28].mxu1  ;;  %v921_v14 = vpop.f32.mrb[29].mxu0 }
 0x130   :  { %v858_v15 = vpack.c.bf16 %v676_v10, %v676_v10  ;;  %v677_v16 = vmax.f32 %v653_v11, 0.0  ;;  %v922_v17 = vadd.f32 %v921_v14, %v920_v12  ;;  %v985_v18 = vpop.f32.mrb[29].mxu1  ;;  %v923_v19 = vpop.f32.mrb[30].mxu0 }
 0x131   :  { %v986_v20 = vadd.f32 %v985_v18, %v984_v13  ;;  %v987_v21 = vpop.f32.mrb[30].mxu1  ;;  %v924_v22 = vpop.f32.mrb[31].mxu0 }
 0x132   :  { %757 = vst.msk [vmem:[%s1370_s3 + $0x30] sm:$0xf] %vm744_vm0, %v858_v15  ;;  %v859_v23 = vpack.c.bf16 %v677_v16, %v677_v16  ;;  %v561_v24 = vadd.f32 %v922_v17, %v1285_v2  ;;  %v925_v25 = vadd.f32 %v924_v22, %v923_v19  ;;  %v988_v26 = vpop.f32.mrb[31].mxu1 }
 0x133   :  { %v989_v27 = vadd.f32 %v988_v26, %v987_v21 }
 0x134   :  { %758 = vst.msk [vmem:[%s1370_s3 + $0x34] sm:$0xf] %vm744_vm0, %v859_v23  ;;  %v658_v28 = vadd.f32 %v986_v20, %v561_v24  ;;  %v564_v29 = vadd.f32 %v925_v25, %v1285_v2 }
 0x136   :  { %v678_v30 = vmax.f32 %v658_v28, 0.0  ;;  %v661_v31 = vadd.f32 %v989_v27, %v564_v29 }
 0x138   :  { %v860_v32 = vpack.c.bf16 %v678_v30, %v678_v30  ;;  %v679_v33 = vmax.f32 %v661_v31, 0.0 }
 0x13a   :  { %759 = vst.msk [vmem:[%s1370_s3 + $0x38] sm:$0xf] %vm744_vm0, %v860_v32  ;;  %v861_v34 = vpack.c.bf16 %v679_v33, %v679_v33 }
 0x13c   :  { %760 = vst.msk [vmem:[%s1370_s3 + $0x3c] sm:$0xf] %vm744_vm0, %v861_v34 }

// kernel: encoder_forward.6
= control target key start
LH: loop header
LB: loop body
LE: loop exit
PB: predicated region body
PF: predicated region fallthrough
CT: control target
= control target key end

     0   :  { %vm846_vm0 = vcmask 519168   ;;  %s1399_s1 = inlined_call_operand.vmem [shape: bf16[1024,64], index: 1, kind: input, shape index: {}]   ;;  %s1400_s0 = inlined_call_operand.vmem [shape: bf16[32,1024], index: 0, kind: input, shape index: {}]   ;;  %s1401_s2 = inlined_call_operand.vmem [shape: f32[1,64], index: 2, kind: input, shape index: {}]   ;;  %s1402_s3 = inlined_call_operand.vmem [shape: bf16[32,64], index: 3, kind: output, shape index: {}]  }
   0x1   :  { %v1056_v0 = vld [vmem:[%s1399_s1 + $0x40] sm:$0xff]   ;;  %v1060_v4 = vld [vmem:[%s1399_s1 + $0x48] sm:$0xff]   ;;  %v1064_v8 = vld [vmem:[%s1399_s1 + $0x50] sm:$0xff]  }
   0x2   :  { %v1057_v1 = vld [vmem:[%s1399_s1 + $0xc0] sm:$0xff]   ;;  %944 = vmatprep.subr.bf16.mxu0 %v1056_v0  ;;  %v1061_v5 = vld [vmem:[%s1399_s1 + $0xc8] sm:$0xff]   ;;  %v1065_v9 = vld [vmem:[%s1399_s1 + $0xd0] sm:$0xff]  }
   0x3   :  { %v1058_v2 = vld [vmem:[%s1399_s1] sm:$0xff]   ;;  %972 = vmatprep.subr.bf16.mxu1 %v1057_v1  ;;  %v1062_v6 = vld [vmem:[%s1399_s1 + $0x8] sm:$0xff]   ;;  %v1066_v10 = vld [vmem:[%s1399_s1 + $0x10] sm:$0xff]  }
   0x4   :  { %v1059_v3 = vld [vmem:[%s1399_s1 + $0x80] sm:$0xff]   ;;  %945 = vmatpush3.bf16.msra.mxu0 %v1058_v2  ;;  %v1063_v7 = vld [vmem:[%s1399_s1 + $0x88] sm:$0xff]   ;;  %v1067_v11 = vld [vmem:[%s1399_s1 + $0x90] sm:$0xff]  }
   0x5   :  { %973 = vmatpush3.bf16.msra.mxu1 %v1059_v3  ;;  %946 = vmatprep.subr.bf16.mxu0 %v1060_v4  ;;  %v1068_v12 = vld [vmem:[%s1399_s1 + $0x58] sm:$0xff]   ;;  %v1072_v16 = vld [vmem:[%s1399_s1 + $0x60] sm:$0xff]   ;;  %v1076_v20 = vld [vmem:[%s1399_s1 + $0x68] sm:$0xff]  }
   0x6   :  { %974 = vmatprep.subr.bf16.mxu1 %v1061_v5  ;;  %v1069_v13 = vld [vmem:[%s1399_s1 + $0xd8] sm:$0xff]   ;;  %v1073_v17 = vld [vmem:[%s1399_s1 + $0xe0] sm:$0xff]   ;;  %v1077_v21 = vld [vmem:[%s1399_s1 + $0xe8] sm:$0xff]  }
   0x7   :  { %v1070_v14 = vld [vmem:[%s1399_s1 + $0x18] sm:$0xff]   ;;  %v1074_v18 = vld [vmem:[%s1399_s1 + $0x20] sm:$0xff]   ;;  %v1078_v22 = vld [vmem:[%s1399_s1 + $0x28] sm:$0xff]  }
   0x8   :  { %947 = vmatpush3.bf16.msra.mxu0 %v1062_v6  ;;  %v1071_v15 = vld [vmem:[%s1399_s1 + $0x98] sm:$0xff]   ;;  %v1075_v19 = vld [vmem:[%s1399_s1 + $0xa0] sm:$0xff]   ;;  %v1079_v23 = vld [vmem:[%s1399_s1 + $0xa8] sm:$0xff]  }
   0x9   :  { %975 = vmatpush3.bf16.msra.mxu1 %v1063_v7  ;;  %948 = vmatprep.subr.bf16.mxu0 %v1064_v8  ;;  %v1080_v24 = vld [vmem:[%s1399_s1 + $0x70] sm:$0xff]   ;;  %v1084_v28 = vld [vmem:[%s1399_s1 + $0x78] sm:$0xff]   ;;  %v15_v32 = vld [vmem:[%s1400_s0] sm:$0xff] }
   0xa   :  { %976 = vmatprep.subr.bf16.mxu1 %v1065_v9  ;;  %v1081_v25 = vld [vmem:[%s1399_s1 + $0xf0] sm:$0xff]   ;;  %v1085_v29 = vld [vmem:[%s1399_s1 + $0xf8] sm:$0xff]   ;;  %v19_v33 = vld [vmem:[%s1400_s0 + $0x20] sm:$0xff] }
   0xb   :  { %v1082_v26 = vld [vmem:[%s1399_s1 + $0x30] sm:$0xff]   ;;  %v1086_v30 = vld [vmem:[%s1399_s1 + $0x38] sm:$0xff]   ;;  %v16_v34 = vld [vmem:[%s1400_s0 + $0x8] sm:$0xff]  ;;  %v856_v35 = vcombine.low %v15_v32, %v19_v33  ;;  %v857_v36 = vcombine.high %v15_v32, %v19_v33 }
   0xc   :  { %949 = vmatpush3.bf16.msra.mxu0 %v1066_v10  ;;  %v1083_v27 = vld [vmem:[%s1399_s1 + $0xb0] sm:$0xff]   ;;  %v1087_v31 = vld [vmem:[%s1399_s1 + $0xb8] sm:$0xff]   ;;  %v20_v37 = vld [vmem:[%s1400_s0 + $0x28] sm:$0xff] }
   0xd   :  { %977 = vmatpush3.bf16.msra.mxu1 %v1067_v11  ;;  %950 = vmatprep.subr.bf16.mxu0 %v1068_v12  ;;  %v858_v38 = vcombine.low %v16_v34, %v20_v37  ;;  %v859_v39 = vcombine.high %v16_v34, %v20_v37  ;;  %v1088_v40 = vld [vmem:[%s1399_s1 + $0x140] sm:$0xff]   ;;  %v1092_v44 = vld [vmem:[%s1399_s1 + $0x148] sm:$0xff]   ;;  %v1096_v48 = vld [vmem:[%s1399_s1 + $0x150] sm:$0xff]  }
   0xe   :  { %978 = vmatprep.subr.bf16.mxu1 %v1069_v13  ;;  %662 = vmatprep.mubr.bf16.mxu0 %v857_v36  ;;  %v1089_v41 = vld [vmem:[%s1399_s1 + $0x1c0] sm:$0xff]   ;;  %v1093_v45 = vld [vmem:[%s1399_s1 + $0x1c8] sm:$0xff]   ;;  %v1097_v49 = vld [vmem:[%s1399_s1 + $0x1d0] sm:$0xff]  }
   0xf   :  { %711 = vmatprep.mubr.bf16.mxu1 %v859_v39  ;;  %v1090_v42 = vld [vmem:[%s1399_s1 + $0x100] sm:$0xff]   ;;  %v1094_v46 = vld [vmem:[%s1399_s1 + $0x108] sm:$0xff]   ;;  %v1098_v50 = vld [vmem:[%s1399_s1 + $0x110] sm:$0xff]  }
  0x10   :  { %951 = vmatpush3.bf16.msra.mxu0 %v1070_v14  ;;  %v1091_v43 = vld [vmem:[%s1399_s1 + $0x180] sm:$0xff]   ;;  %v1095_v47 = vld [vmem:[%s1399_s1 + $0x188] sm:$0xff]   ;;  %v1099_v51 = vld [vmem:[%s1399_s1 + $0x190] sm:$0xff]  }
  0x11   :  { %979 = vmatpush3.bf16.msra.mxu1 %v1071_v15  ;;  %952 = vmatprep.subr.bf16.mxu0 %v1072_v16  ;;  %v1100_v52 = vld [vmem:[%s1399_s1 + $0x158] sm:$0xff]   ;;  %v1104_v56 = vld [vmem:[%s1399_s1 + $0x160] sm:$0xff]   ;;  %v1108_v63 = vld [vmem:[%s1399_s1 + $0x168] sm:$0xff]  }
  0x12   :  { %980 = vmatprep.subr.bf16.mxu1 %v1073_v17  ;;  %v1101_v53 = vld [vmem:[%s1399_s1 + $0x1d8] sm:$0xff]   ;;  %v1105_v57 = vld [vmem:[%s1399_s1 + $0x1e0] sm:$0xff]   ;;  %v1109_v1 = vld [vmem:[%s1399_s1 + $0x1e8] sm:$0xff]  }
  0x13   :  { %v1102_v54 = vld [vmem:[%s1399_s1 + $0x118] sm:$0xff]   ;;  %v1106_v58 = vld [vmem:[%s1399_s1 + $0x120] sm:$0xff]   ;;  %v1110_v2 = vld [vmem:[%s1399_s1 + $0x128] sm:$0xff]  }
  0x14   :  { %953 = vmatpush3.bf16.msra.mxu0 %v1074_v18  ;;  %v1103_v55 = vld [vmem:[%s1399_s1 + $0x198] sm:$0xff]   ;;  %v1107_v59 = vld [vmem:[%s1399_s1 + $0x1a0] sm:$0xff]   ;;  %v1111_v3 = vld [vmem:[%s1399_s1 + $0x1a8] sm:$0xff]  }
  0x15   :  { %981 = vmatpush3.bf16.msra.mxu1 %v1075_v19  ;;  %954 = vmatprep.subr.bf16.mxu0 %v1076_v20  ;;  %v23_v60 = vld [vmem:[%s1400_s0 + $0x40] sm:$0xff]  ;;  %v24_v4 = vld [vmem:[%s1400_s0 + $0x48] sm:$0xff]  ;;  %v1112_v8 = vld [vmem:[%s1399_s1 + $0x170] sm:$0xff]  }
  0x16   :  { %982 = vmatprep.subr.bf16.mxu1 %v1077_v21  ;;  %v27_v61 = vld [vmem:[%s1400_s0 + $0x60] sm:$0xff]  ;;  %v28_v5 = vld [vmem:[%s1400_s0 + $0x68] sm:$0xff]  ;;  %v1113_v9 = vld [vmem:[%s1399_s1 + $0x1f0] sm:$0xff]  }
  0x17   :  { %v865_v62 = vcombine.high %v23_v60, %v27_v61  ;;  %v864_v0 = vcombine.low %v23_v60, %v27_v61  ;;  %v867_v6 = vcombine.high %v24_v4, %v28_v5  ;;  %v866_v7 = vcombine.low %v24_v4, %v28_v5  ;;  %v1114_v10 = vld [vmem:[%s1399_s1 + $0x130] sm:$0xff]   ;;  %v1116_v12 = vld [vmem:[%s1399_s1 + $0x178] sm:$0xff]   ;;  %v855_v34 = vld [vmem:[%s1401_s2] ss:$0 sm:$0xff] }
  0x18   :  { %955 = vmatpush3.bf16.msra.mxu0 %v1078_v22  ;;  %v1115_v11 = vld [vmem:[%s1399_s1 + $0x1b0] sm:$0xff]   ;;  %v1117_v13 = vld [vmem:[%s1399_s1 + $0x1f8] sm:$0xff]  }
  0x19   :  { %983 = vmatpush3.bf16.msra.mxu1 %v1079_v23  ;;  %956 = vmatprep.subr.bf16.mxu0 %v1080_v24  ;;  %v1118_v14 = vld [vmem:[%s1399_s1 + $0x138] sm:$0xff]   ;;  %v17_v16 = vld [vmem:[%s1400_s0 + $0x10] sm:$0xff] }
  0x1a   :  { %984 = vmatprep.subr.bf16.mxu1 %v1081_v25  ;;  %v1119_v15 = vld [vmem:[%s1399_s1 + $0x1b8] sm:$0xff]   ;;  %v21_v17 = vld [vmem:[%s1400_s0 + $0x30] sm:$0xff] }
  0x1b   :  { %v18_v18 = vld [vmem:[%s1400_s0 + $0x18] sm:$0xff]  ;;  %v860_v20 = vcombine.low %v17_v16, %v21_v17  ;;  %v861_v21 = vcombine.high %v17_v16, %v21_v17  ;;  %v25_v24 = vld [vmem:[%s1400_s0 + $0x50] sm:$0xff] }
  0x1c   :  { %957 = vmatpush3.bf16.msra.mxu0 %v1082_v26  ;;  %v22_v19 = vld [vmem:[%s1400_s0 + $0x38] sm:$0xff]  ;;  %v29_v25 = vld [vmem:[%s1400_s0 + $0x70] sm:$0xff] }
  0x1d   :  { %985 = vmatpush3.bf16.msra.mxu1 %v1083_v27  ;;  %958 = vmatprep.subr.bf16.mxu0 %v1084_v28  ;;  %v862_v22 = vcombine.low %v18_v18, %v22_v19  ;;  %v863_v23 = vcombine.high %v18_v18, %v22_v19  ;;  %v26_v26 = vld [vmem:[%s1400_s0 + $0x58] sm:$0xff]  ;;  %v869_v27 = vcombine.high %v25_v24, %v29_v25 }
  0x1e   :  { %986 = vmatprep.subr.bf16.mxu1 %v1085_v29  ;;  %v30_v28 = vld [vmem:[%s1400_s0 + $0x78] sm:$0xff] }
  0x1f   :  { %v871_v29 = vcombine.high %v26_v26, %v30_v28 }
  0x20   :  { %959 = vmatpush3.bf16.msra.mxu0 %v1086_v30  ;;  %v868_v30 = vcombine.low %v25_v24, %v29_v25 }
  0x21   :  { %987 = vmatpush3.bf16.msra.mxu1 %v1087_v31  ;;  %1000 = vmatprep.subr.bf16.mxu0 %v1088_v40  ;;  %v870_v31 = vcombine.low %v26_v26, %v30_v28 }
  0x22   :  { %1028 = vmatprep.subr.bf16.mxu1 %v1089_v41 }
  0x23   :  { %663 = vmatmul.mubr.bf16.vlgmr.msra.gmra.mrb[0].mxu0 %v856_v35 }
  0x24   :  { %712 = vmatmul.mubr.bf16.vlgmr.msra.gmra.mrb[0].mxu1 %v858_v38  ;;  %1001 = vmatpush3.bf16.msra.mxu0 %v1090_v42 }
  0x25   :  { %1029 = vmatpush3.bf16.msra.mxu1 %v1091_v43  ;;  %1002 = vmatprep.subr.bf16.mxu0 %v1092_v44 }
  0x26   :  { %1030 = vmatprep.subr.bf16.mxu1 %v1093_v45  ;;  %670 = vmatprep.mubr.bf16.mxu0 %v865_v62 }
  0x27   :  { %719 = vmatprep.mubr.bf16.mxu1 %v867_v6 }
  0x28   :  { %1003 = vmatpush3.bf16.msra.mxu0 %v1094_v46 }
  0x29   :  { %1031 = vmatpush3.bf16.msra.mxu1 %v1095_v47  ;;  %1004 = vmatprep.subr.bf16.mxu0 %v1096_v48 }
  0x2a   :  { %1032 = vmatprep.subr.bf16.mxu1 %v1097_v49 }
  0x2b   :  { %671 = vmatmul.mubr.bf16.gmra.mrb[4].mxu0 %v864_v0 }
  0x2c   :  { %1005 = vmatpush3.bf16.msra.mxu0 %v1098_v50  ;;  %720 = vmatmul.mubr.bf16.gmra.mrb[4].mxu1 %v866_v7 }
  0x2d   :  { %1033 = vmatpush3.bf16.msra.mxu1 %v1099_v51  ;;  %1006 = vmatprep.subr.bf16.mxu0 %v1100_v52 }
  0x2e   :  { %1034 = vmatprep.subr.bf16.mxu1 %v1101_v53  ;;  %760 = vmatprep.mubr.bf16.mxu0 %v861_v21 }
  0x2f   :  { %809 = vmatprep.mubr.bf16.mxu1 %v863_v23 }
  0x30   :  { %1007 = vmatpush3.bf16.msra.mxu0 %v1102_v54 }
  0x31   :  { %1035 = vmatpush3.bf16.msra.mxu1 %v1103_v55  ;;  %1008 = vmatprep.subr.bf16.mxu0 %v1104_v56 }
  0x32   :  { %1036 = vmatprep.subr.bf16.mxu1 %v1105_v57 }
  0x34   :  { %1009 = vmatpush3.bf16.msra.mxu0 %v1106_v58 }
  0x35   :  { %1037 = vmatpush3.bf16.msra.mxu1 %v1107_v59  ;;  %1010 = vmatprep.subr.bf16.mxu0 %v1108_v63 }
  0x36   :  { %1038 = vmatprep.subr.bf16.mxu1 %v1109_v1 }
  0x38   :  { %1011 = vmatpush3.bf16.msra.mxu0 %v1110_v2 }
  0x39   :  { %1039 = vmatpush3.bf16.msra.mxu1 %v1111_v3  ;;  %1012 = vmatprep.subr.bf16.mxu0 %v1112_v8 }
  0x3a   :  { %1040 = vmatprep.subr.bf16.mxu1 %v1113_v9 }
  0x3c   :  { %1013 = vmatpush3.bf16.msra.mxu0 %v1114_v10 }
  0x3d   :  { %1041 = vmatpush3.bf16.msra.mxu1 %v1115_v11  ;;  %1014 = vmatprep.subr.bf16.mxu0 %v1116_v12 }
  0x3e   :  { %1042 = vmatprep.subr.bf16.mxu1 %v1117_v13 }
  0x40   :  { %1015 = vmatpush3.bf16.msra.mxu0 %v1118_v14 }
  0x41   :  { %1043 = vmatpush3.bf16.msra.mxu1 %v1119_v15 }
  0x43   :  { %761 = vmatmul.mubr.bf16.vlgmr.msra.gmra.mrb[8].mxu0 %v860_v20 }
  0x44   :  { %810 = vmatmul.mubr.bf16.vlgmr.msra.gmra.mrb[8].mxu1 %v862_v22  ;;  %768 = vmatprep.mubr.bf16.mxu0 %v869_v27 }
  0x45   :  { %817 = vmatprep.mubr.bf16.mxu1 %v871_v29 }
  0x4b   :  { %769 = vmatmul.mubr.bf16.gmra.mrb[12].mxu0 %v868_v30 }
  0x4c   :  { %818 = vmatmul.mubr.bf16.gmra.mrb[12].mxu1 %v870_v31 }
  0xf6   :  { %v960_v32 = vpop.f32.mrb[0].mxu0 }
  0xf7   :  { %v988_v33 = vpop.f32.mrb[0].mxu1  ;;  %v961_v35 = vpop.f32.mrb[1].mxu0 }
  0xf8   :  { %v962_v36 = vadd.f32 %v961_v35, %v960_v32  ;;  %v989_v37 = vpop.f32.mrb[1].mxu1  ;;  %v963_v38 = vpop.f32.mrb[2].mxu0 }
  0xf9   :  { %v990_v39 = vadd.f32 %v989_v37, %v988_v33  ;;  %v991_v40 = vpop.f32.mrb[2].mxu1  ;;  %v964_v41 = vpop.f32.mrb[3].mxu0 }
  0xfa   :  { %v665_v42 = vadd.f32 %v962_v36, %v855_v34  ;;  %v965_v43 = vadd.f32 %v964_v41, %v963_v38  ;;  %v992_v44 = vpop.f32.mrb[3].mxu1 }
  0xfb   :  { %v993_v45 = vadd.f32 %v992_v44, %v991_v40 }
  0xfc   :  { %v714_v46 = vadd.f32 %v990_v39, %v665_v42  ;;  %v668_v47 = vadd.f32 %v965_v43, %v855_v34 }
  0xfe   :  { %v717_v48 = vadd.f32 %v993_v45, %v668_v47  ;;  %v966_v49 = vpop.f32.mrb[4].mxu0 }
  0xff   :  { %v967_v50 = vpop.f32.mrb[5].mxu0  ;;  %v994_v56 = vpop.f32.mrb[4].mxu1 }
 0x100   :  { %v968_v51 = vadd.f32 %v967_v50, %v966_v49  ;;  %v969_v52 = vpop.f32.mrb[6].mxu0  ;;  %v995_v57 = vpop.f32.mrb[5].mxu1 }
 0x101   :  { %v970_v53 = vpop.f32.mrb[7].mxu0  ;;  %v996_v59 = vadd.f32 %v995_v57, %v994_v56  ;;  %v997_v60 = vpop.f32.mrb[6].mxu1 }
 0x102   :  { %v971_v54 = vadd.f32 %v970_v53, %v969_v52  ;;  %v673_v55 = vadd.f32 %v968_v51, %v855_v34  ;;  %v998_v61 = vpop.f32.mrb[7].mxu1 }
 0x103   :  { %v999_v63 = vadd.f32 %v998_v61, %v997_v60 }
 0x104   :  { %v676_v58 = vadd.f32 %v971_v54, %v855_v34  ;;  %v722_v62 = vadd.f32 %v996_v59, %v673_v55 }
 0x106   :  { %v725_v0 = vadd.f32 %v999_v63, %v676_v58 }
 0x116   :  { %v1016_v1 = vpop.f32.mrb[8].mxu0 }
 0x117   :  { %v1044_v2 = vpop.f32.mrb[8].mxu1  ;;  %v1017_v3 = vpop.f32.mrb[9].mxu0 }
 0x118   :  { %v1045_v4 = vpop.f32.mrb[9].mxu1  ;;  %v1018_v5 = vadd.f32 %v1017_v3, %v1016_v1  ;;  %v1019_v7 = vpop.f32.mrb[10].mxu0 }
 0x119   :  { %v1046_v6 = vadd.f32 %v1045_v4, %v1044_v2  ;;  %v1047_v8 = vpop.f32.mrb[10].mxu1  ;;  %v1020_v9 = vpop.f32.mrb[11].mxu0 }
 0x11a   :  { %v1048_v10 = vpop.f32.mrb[11].mxu1  ;;  %v763_v11 = vadd.f32 %v1018_v5, %v714_v46  ;;  %v1021_v12 = vadd.f32 %v1020_v9, %v1019_v7 }
 0x11b   :  { %v1049_v13 = vadd.f32 %v1048_v10, %v1047_v8 }
 0x11c   :  { %v812_v14 = vadd.f32 %v1046_v6, %v763_v11  ;;  %v766_v15 = vadd.f32 %v1021_v12, %v717_v48 }
 0x11e   :  { %v826_v16 = vmax.f32 %v812_v14, 0.0  ;;  %v815_v17 = vadd.f32 %v1049_v13, %v766_v15  ;;  %v1022_v18 = vpop.f32.mrb[12].mxu0 }
 0x11f   :  { %v1050_v19 = vpop.f32.mrb[12].mxu1  ;;  %v1023_v20 = vpop.f32.mrb[13].mxu0 }
 0x120   :  { %v1051_v21 = vpop.f32.mrb[13].mxu1  ;;  %v940_v22 = vpack.c.bf16 %v826_v16, %v826_v16  ;;  %v827_v23 = vmax.f32 %v815_v17, 0.0  ;;  %v1024_v24 = vadd.f32 %v1023_v20, %v1022_v18  ;;  %v1025_v26 = vpop.f32.mrb[14].mxu0 }
 0x121   :  { %v1052_v25 = vadd.f32 %v1051_v21, %v1050_v19  ;;  %v1053_v27 = vpop.f32.mrb[14].mxu1  ;;  %v1026_v28 = vpop.f32.mrb[15].mxu0 }
 0x122   :  { %v1054_v29 = vpop.f32.mrb[15].mxu1  ;;  %847 = vst.msk [vmem:[%s1402_s3] sm:$0xf] %vm846_vm0, %v940_v22  ;;  %v941_v30 = vpack.c.bf16 %v827_v23, %v827_v23  ;;  %v771_v31 = vadd.f32 %v1024_v24, %v722_v62  ;;  %v1027_v32 = vadd.f32 %v1026_v28, %v1025_v26 }
 0x123   :  { %v1055_v33 = vadd.f32 %v1054_v29, %v1053_v27 }
 0x124   :  { %848 = vst.msk [vmem:[%s1402_s3 + $0x4] sm:$0xf] %vm846_vm0, %v941_v30  ;;  %v820_v34 = vadd.f32 %v1052_v25, %v771_v31  ;;  %v774_v35 = vadd.f32 %v1027_v32, %v725_v0 }
 0x126   :  { %v828_v36 = vmax.f32 %v820_v34, 0.0  ;;  %v823_v37 = vadd.f32 %v1055_v33, %v774_v35 }
 0x128   :  { %v942_v38 = vpack.c.bf16 %v828_v36, %v828_v36  ;;  %v829_v39 = vmax.f32 %v823_v37, 0.0 }
 0x12a   :  { %849 = vst.msk [vmem:[%s1402_s3 + $0x8] sm:$0xf] %vm846_vm0, %v942_v38  ;;  %v943_v40 = vpack.c.bf16 %v829_v39, %v829_v39 }
 0x12c   :  { %850 = vst.msk [vmem:[%s1402_s3 + $0xc] sm:$0xf] %vm846_vm0, %v943_v40 }

// kernel: encoder_forward.7
= control target key start
LH: loop header
LB: loop body
LE: loop exit
PB: predicated region body
PF: predicated region fallthrough
CT: control target
= control target key end

     0   :  { %v1144_v22 = vmov 1966171168   ;;  %v162_v24 = vlaneseq  ;;  %vm1146_vm0 = vmmov 0   ;;  %s1418_s1 = inlined_call_operand.vmem [shape: bf16[1024,128], index: 1, kind: input, shape index: {}]   ;;  %s1419_s0 = inlined_call_operand.vmem [shape: bf16[2,1024], index: 0, kind: input, shape index: {}]   ;;  %s1420_s3 = inlined_call_operand.vmem [shape: bf16[128,128], index: 3, kind: input, shape index: {}]   ;;  %s1421_s2 = inlined_call_operand.vmem [shape: f32[1,128], index: 2, kind: input, shape index: {}]   ;;  %s1422_s4 = inlined_call_operand.vmem [shape: f32[1,128], index: 4, kind: input, shape index: {}]   ;;  %s1423_s5 = inlined_call_operand.vmem [shape: f32[2,128], index: 5, kind: output, shape index: {}]  }
   0x1   :  { %v1071_v0 = vld [vmem:[%s1418_s1 + $0x40] sm:$0xff]   ;;  %v1075_v4 = vld [vmem:[%s1418_s1 + $0x48] sm:$0xff]   ;;  %v1079_v8 = vld [vmem:[%s1418_s1 + $0x50] sm:$0xff]   ;;  %v160_v23 = vunpack.c.l.s4 %v1144_v22 }
   0x2   :  { %v1072_v1 = vld [vmem:[%s1418_s1 + $0xc0] sm:$0xff]   ;;  %951 = vmatprep.subr.bf16.mxu0 %v1071_v0  ;;  %v1076_v5 = vld [vmem:[%s1418_s1 + $0xc8] sm:$0xff]   ;;  %v1080_v9 = vld [vmem:[%s1418_s1 + $0xd0] sm:$0xff]   ;;  %v163_v30 = vshrl.u32 %v162_v24, 7 }
   0x3   :  { %v1073_v2 = vld [vmem:[%s1418_s1] sm:$0xff]   ;;  %973 = vmatprep.subr.bf16.mxu1 %v1072_v1  ;;  %v1077_v6 = vld [vmem:[%s1418_s1 + $0x8] sm:$0xff]   ;;  %v1081_v10 = vld [vmem:[%s1418_s1 + $0x10] sm:$0xff]   ;;  %v161_v29 = vunpack.c.0.s8 %v160_v23 }
   0x4   :  { %v1074_v3 = vld [vmem:[%s1418_s1 + $0x80] sm:$0xff]   ;;  %952 = vmatpush3.bf16.msra.mxu0 %v1073_v2  ;;  %v1078_v7 = vld [vmem:[%s1418_s1 + $0x88] sm:$0xff]   ;;  %v1082_v11 = vld [vmem:[%s1418_s1 + $0x90] sm:$0xff]  }
   0x5   :  { %974 = vmatpush3.bf16.msra.mxu1 %v1074_v3  ;;  %953 = vmatprep.subr.bf16.mxu0 %v1075_v4  ;;  %v1083_v12 = vld [vmem:[%s1418_s1 + $0x58] sm:$0xff]   ;;  %v1087_v16 = vld [vmem:[%s1418_s1 + $0x60] sm:$0xff]   ;;  %v1091_v20 = vld [vmem:[%s1418_s1 + $0x68] sm:$0xff]   ;;  %v1267_v35 = vsub.s32 %v161_v29, %v163_v30 }
   0x6   :  { %975 = vmatprep.subr.bf16.mxu1 %v1076_v5  ;;  %v1084_v13 = vld [vmem:[%s1418_s1 + $0xd8] sm:$0xff]   ;;  %v1088_v17 = vld [vmem:[%s1418_s1 + $0xe0] sm:$0xff]   ;;  %v1092_v21 = vld [vmem:[%s1418_s1 + $0xe8] sm:$0xff]  }
   0x7   :  { %v1085_v14 = vld [vmem:[%s1418_s1 + $0x18] sm:$0xff]   ;;  %v1089_v18 = vld [vmem:[%s1418_s1 + $0x20] sm:$0xff]   ;;  %v1093_v25 = vld [vmem:[%s1418_s1 + $0x28] sm:$0xff]  }
   0x8   :  { %954 = vmatpush3.bf16.msra.mxu0 %v1077_v6  ;;  %v1086_v15 = vld [vmem:[%s1418_s1 + $0x98] sm:$0xff]   ;;  %v1090_v19 = vld [vmem:[%s1418_s1 + $0xa0] sm:$0xff]   ;;  %v1094_v26 = vld [vmem:[%s1418_s1 + $0xa8] sm:$0xff]  }
   0x9   :  { %976 = vmatpush3.bf16.msra.mxu1 %v1078_v7  ;;  %955 = vmatprep.subr.bf16.mxu0 %v1079_v8  ;;  %v1095_v27 = vld [vmem:[%s1418_s1 + $0x70] sm:$0xff]   ;;  %v1099_v33 = vld [vmem:[%s1418_s1 + $0x78] sm:$0xff]   ;;  %v21_v38 = vld [vmem:[%s1419_s0] sm:$0xff] }
   0xa   :  { %977 = vmatprep.subr.bf16.mxu1 %v1080_v9  ;;  %v1096_v28 = vld [vmem:[%s1418_s1 + $0xf0] sm:$0xff]   ;;  %v1100_v34 = vld [vmem:[%s1418_s1 + $0xf8] sm:$0xff]   ;;  %v158_v39 = vcombine.high %v21_v38, %v21_v38  ;;  %v165_v40 = vrot.slane %v21_v38, %v1267_v35  ;;  %v1104_v41 = vld [vmem:[%s1418_s1 + $0x140] sm:$0xff]  }
   0xb   :  { %v1097_v31 = vld [vmem:[%s1418_s1 + $0x30] sm:$0xff]   ;;  %v1101_v36 = vld [vmem:[%s1418_s1 + $0x38] sm:$0xff]   ;;  %v1105_v42 = vld [vmem:[%s1418_s1 + $0x1c0] sm:$0xff]  }
   0xc   :  { %956 = vmatpush3.bf16.msra.mxu0 %v1081_v10  ;;  %v1098_v32 = vld [vmem:[%s1418_s1 + $0xb0] sm:$0xff]   ;;  %v1102_v37 = vld [vmem:[%s1418_s1 + $0xb8] sm:$0xff]   ;;  %v173_v43 = vcombine.high %v165_v40, %v165_v40  ;;  %v181_v44 = vrot.slane %v165_v40, %v1267_v35  ;;  %v1287_v45 = vrot.slane %v158_v39, %v1267_v35  ;;  %v1106_v47 = vld [vmem:[%s1418_s1 + $0x100] sm:$0xff]  }
   0xd   :  { %978 = vmatpush3.bf16.msra.mxu1 %v1082_v11  ;;  %957 = vmatprep.subr.bf16.mxu0 %v1083_v12  ;;  %v1108_v50 = vld [vmem:[%s1418_s1 + $0x148] sm:$0xff]   ;;  %v1107_v52 = vld [vmem:[%s1418_s1 + $0x180] sm:$0xff]   ;;  %v1112_v57 = vld [vmem:[%s1418_s1 + $0x150] sm:$0xff]  }
   0xe   :  { %979 = vmatprep.subr.bf16.mxu1 %v1084_v13  ;;  %v195_v46 = vrot.slane %v173_v43, %v1267_v35  ;;  %v174_v48 = vcombine.high %v1287_v45, %v1287_v45  ;;  %v203_v49 = vcombine.high %v181_v44, %v181_v44  ;;  %v1109_v54 = vld [vmem:[%s1418_s1 + $0x1c8] sm:$0xff]   ;;  %v1113_v59 = vld [vmem:[%s1418_s1 + $0x1d0] sm:$0xff]   ;;  %v1116_v61 = vld [vmem:[%s1418_s1 + $0x158] sm:$0xff]  }
   0xf   :  { %v1110_v55 = vld [vmem:[%s1418_s1 + $0x108] sm:$0xff]   ;;  %v1114_v60 = vld [vmem:[%s1418_s1 + $0x110] sm:$0xff]   ;;  %v1117_v63 = vld [vmem:[%s1418_s1 + $0x1d8] sm:$0xff]  }
  0x10   :  { %958 = vmatpush3.bf16.msra.mxu0 %v1085_v14  ;;  %631 = vmatprep.mubr.bf16.mxu0 %v195_v46  ;;  %v205_v51 = vcombine.high %v195_v46, %v195_v46  ;;  %v202_v53 = vrot.slane %v174_v48, %v1267_v35  ;;  %v1111_v58 = vld [vmem:[%s1418_s1 + $0x188] sm:$0xff]   ;;  %v1115_v62 = vld [vmem:[%s1418_s1 + $0x190] sm:$0xff]   ;;  %v1118_v0 = vld [vmem:[%s1418_s1 + $0x118] sm:$0xff]  }
  0x11   :  { %980 = vmatpush3.bf16.msra.mxu1 %v1086_v15  ;;  %959 = vmatprep.subr.bf16.mxu0 %v1087_v16  ;;  %v1120_v1 = vld [vmem:[%s1418_s1 + $0x160] sm:$0xff]   ;;  %v1119_v2 = vld [vmem:[%s1418_s1 + $0x198] sm:$0xff]   ;;  %v1124_v5 = vld [vmem:[%s1418_s1 + $0x168] sm:$0xff]  }
  0x12   :  { %981 = vmatprep.subr.bf16.mxu1 %v1088_v17  ;;  %671 = vmatprep.mubr.bf16.mxu1 %v205_v51  ;;  %v206_v56 = vcombine.high %v202_v53, %v202_v53  ;;  %v1121_v3 = vld [vmem:[%s1418_s1 + $0x1e0] sm:$0xff]   ;;  %v1125_v7 = vld [vmem:[%s1418_s1 + $0x1e8] sm:$0xff]   ;;  %v1128_v9 = vld [vmem:[%s1418_s1 + $0x170] sm:$0xff]   ;;  %v188_v17 = vrot.slane %v1287_v45, %v1267_v35 }
  0x13   :  { %v1122_v4 = vld [vmem:[%s1418_s1 + $0x120] sm:$0xff]   ;;  %v1126_v8 = vld [vmem:[%s1418_s1 + $0x128] sm:$0xff]   ;;  %v1129_v11 = vld [vmem:[%s1418_s1 + $0x1f0] sm:$0xff]  }
  0x14   :  { %960 = vmatpush3.bf16.msra.mxu0 %v1089_v18  ;;  %v1123_v6 = vld [vmem:[%s1418_s1 + $0x1a0] sm:$0xff]   ;;  %v1127_v10 = vld [vmem:[%s1418_s1 + $0x1a8] sm:$0xff]   ;;  %v1130_v12 = vld [vmem:[%s1418_s1 + $0x130] sm:$0xff]  }
  0x15   :  { %982 = vmatpush3.bf16.msra.mxu1 %v1090_v19  ;;  %961 = vmatprep.subr.bf16.mxu0 %v1091_v20  ;;  %v1132_v13 = vld [vmem:[%s1418_s1 + $0x178] sm:$0xff]   ;;  %v1131_v14 = vld [vmem:[%s1418_s1 + $0x1b0] sm:$0xff]   ;;  %v204_v19 = vcombine.high %v188_v17, %v188_v17  ;;  %v1145_v20 = vmov 0.0   ;;  %v1137_v22 = vld [vmem:[%s1420_s3 + $0x8] sm:$0xff]  }
  0x16   :  { %983 = vmatprep.subr.bf16.mxu1 %v1092_v21  ;;  %v1133_v15 = vld [vmem:[%s1418_s1 + $0x1f8] sm:$0xff]   ;;  %v1136_v21 = vld [vmem:[%s1420_s3] sm:$0xff]   ;;  %v1138_v23 = vld [vmem:[%s1420_s3 + $0x10] sm:$0xff]  }
  0x17   :  { %v1134_v16 = vld [vmem:[%s1418_s1 + $0x138] sm:$0xff]   ;;  %v877_v30 = vld [vmem:[%s1421_s2] ss:$0 sm:$0xff] }
  0x18   :  { %962 = vmatpush3.bf16.msra.mxu0 %v1093_v25  ;;  %v1135_v18 = vld [vmem:[%s1418_s1 + $0x1b8] sm:$0xff]   ;;  %v1140_v25 = vld [vmem:[%s1420_s3 + $0x20] sm:$0xff]  }
  0x19   :  { %984 = vmatpush3.bf16.msra.mxu1 %v1094_v26  ;;  %963 = vmatprep.subr.bf16.mxu0 %v1095_v27  ;;  %v1139_v24 = vld [vmem:[%s1420_s3 + $0x18] sm:$0xff]   ;;  %v1141_v26 = vld [vmem:[%s1420_s3 + $0x28] sm:$0xff]   ;;  %v1142_v27 = vld [vmem:[%s1420_s3 + $0x30] sm:$0xff]  }
  0x1a   :  { %985 = vmatprep.subr.bf16.mxu1 %v1096_v28  ;;  %v1143_v28 = vld [vmem:[%s1420_s3 + $0x38] sm:$0xff]  }
  0x1c   :  { %964 = vmatpush3.bf16.msra.mxu0 %v1097_v31 }
  0x1d   :  { %986 = vmatpush3.bf16.msra.mxu1 %v1098_v32  ;;  %965 = vmatprep.subr.bf16.mxu0 %v1099_v33 }
  0x1e   :  { %987 = vmatprep.subr.bf16.mxu1 %v1100_v34 }
  0x20   :  { %966 = vmatpush3.bf16.msra.mxu0 %v1101_v36 }
  0x21   :  { %988 = vmatpush3.bf16.msra.mxu1 %v1102_v37  ;;  %995 = vmatprep.subr.bf16.mxu0 %v1104_v41 }
  0x22   :  { %1017 = vmatprep.subr.bf16.mxu1 %v1105_v42 }
  0x23   :  { %632 = vmatmul.mubr.bf16.vlgmr.msra.gmra.mrb[0].mxu0 %v181_v44 }
  0x24   :  { %996 = vmatpush3.bf16.msra.mxu0 %v1106_v47  ;;  %672 = vmatmul.mubr.bf16.vlgmr.msra.gmra.mrb[0].mxu1 %v203_v49 }
  0x25   :  { %997 = vmatprep.subr.bf16.mxu0 %v1108_v50  ;;  %1018 = vmatpush3.bf16.msra.mxu1 %v1107_v52 }
  0x26   :  { %711 = vmatprep.mubr.bf16.mxu0 %v202_v53  ;;  %1019 = vmatprep.subr.bf16.mxu1 %v1109_v54 }
  0x27   :  { %751 = vmatprep.mubr.bf16.mxu1 %v206_v56  ;;  %v942_v56 = vld [vmem:[%s1422_s4] ss:$0 sm:$0xff] }
  0x28   :  { %998 = vmatpush3.bf16.msra.mxu0 %v1110_v55 }
  0x29   :  { %999 = vmatprep.subr.bf16.mxu0 %v1112_v57  ;;  %1020 = vmatpush3.bf16.msra.mxu1 %v1111_v58 }
  0x2a   :  { %1021 = vmatprep.subr.bf16.mxu1 %v1113_v59 }
  0x2c   :  { %1000 = vmatpush3.bf16.msra.mxu0 %v1114_v60 }
  0x2d   :  { %1001 = vmatprep.subr.bf16.mxu0 %v1116_v61  ;;  %1022 = vmatpush3.bf16.msra.mxu1 %v1115_v62 }
  0x2e   :  { %1023 = vmatprep.subr.bf16.mxu1 %v1117_v63 }
  0x30   :  { %1002 = vmatpush3.bf16.msra.mxu0 %v1118_v0 }
  0x31   :  { %1003 = vmatprep.subr.bf16.mxu0 %v1120_v1  ;;  %1024 = vmatpush3.bf16.msra.mxu1 %v1119_v2 }
  0x32   :  { %1025 = vmatprep.subr.bf16.mxu1 %v1121_v3 }
  0x34   :  { %1004 = vmatpush3.bf16.msra.mxu0 %v1122_v4 }
  0x35   :  { %1005 = vmatprep.subr.bf16.mxu0 %v1124_v5  ;;  %1026 = vmatpush3.bf16.msra.mxu1 %v1123_v6 }
  0x36   :  { %1027 = vmatprep.subr.bf16.mxu1 %v1125_v7 }
  0x38   :  { %1006 = vmatpush3.bf16.msra.mxu0 %v1126_v8 }
  0x39   :  { %1007 = vmatprep.subr.bf16.mxu0 %v1128_v9  ;;  %1028 = vmatpush3.bf16.msra.mxu1 %v1127_v10 }
  0x3a   :  { %1029 = vmatprep.subr.bf16.mxu1 %v1129_v11 }
  0x3c   :  { %1008 = vmatpush3.bf16.msra.mxu0 %v1130_v12 }
  0x3d   :  { %1009 = vmatprep.subr.bf16.mxu0 %v1132_v13  ;;  %1030 = vmatpush3.bf16.msra.mxu1 %v1131_v14 }
  0x3e   :  { %1031 = vmatprep.subr.bf16.mxu1 %v1133_v15 }
  0x40   :  { %1010 = vmatpush3.bf16.msra.mxu0 %v1134_v16 }
  0x41   :  { %1032 = vmatpush3.bf16.msra.mxu1 %v1135_v18  ;;  %1048 = vmatprep.subr.bf16.mxu0 %v1145_v20 }
  0x43   :  { %712 = vmatmul.mubr.bf16.vlgmr.msra.gmra.mrb[4].mxu0 %v188_v17 }
  0x44   :  { %752 = vmatmul.mubr.bf16.vlgmr.msra.gmra.mrb[4].mxu1 %v204_v19  ;;  %1049 = vmatpush3.bf16.msra.mxu0 %v1136_v21 }
  0x45   :  { %1050 = vmatprep.subr.bf16.mxu0 %v1145_v20  ;;  %1064 = vmatprep.mubr.msk.bf16.mxu0 %vm1146_vm0, %v1145_v20 }
  0x48   :  { %1051 = vmatpush3.bf16.msra.mxu0 %v1137_v22 }
  0x49   :  { %1052 = vmatprep.subr.bf16.mxu0 %v1145_v20 }
  0x4c   :  { %1053 = vmatpush3.bf16.msra.mxu0 %v1138_v23 }
  0x4d   :  { %1054 = vmatprep.subr.bf16.mxu0 %v1145_v20 }
  0x50   :  { %1055 = vmatpush3.bf16.msra.mxu0 %v1139_v24 }
  0x51   :  { %1056 = vmatprep.subr.bf16.mxu0 %v1145_v20 }
  0x54   :  { %1057 = vmatpush3.bf16.msra.mxu0 %v1140_v25 }
  0x55   :  { %1058 = vmatprep.subr.bf16.mxu0 %v1145_v20 }
  0x58   :  { %1059 = vmatpush3.bf16.msra.mxu0 %v1141_v26 }
  0x59   :  { %1060 = vmatprep.subr.bf16.mxu0 %v1145_v20 }
  0x5c   :  { %1061 = vmatpush3.bf16.msra.mxu0 %v1142_v27 }
  0x5d   :  { %1062 = vmatprep.subr.bf16.mxu0 %v1145_v20 }
  0x60   :  { %1063 = vmatpush3.bf16.msra.mxu0 %v1143_v28 }
  0xf6   :  { %v967_v29 = vpop.f32.mrb[0].mxu0 }
  0xf7   :  { %v968_v31 = vpop.f32.mrb[1].mxu0  ;;  %v989_v32 = vpop.f32.mrb[0].mxu1 }
  0xf8   :  { %v969_v33 = vadd.f32 %v968_v31, %v967_v29  ;;  %v970_v34 = vpop.f32.mrb[2].mxu0  ;;  %v990_v35 = vpop.f32.mrb[1].mxu1 }
  0xf9   :  { %v971_v36 = vpop.f32.mrb[3].mxu0  ;;  %v991_v38 = vadd.f32 %v990_v35, %v989_v32  ;;  %v992_v39 = vpop.f32.mrb[2].mxu1 }
  0xfa   :  { %v634_v37 = vadd.f32 %v969_v33, %v877_v30  ;;  %v993_v40 = vpop.f32.mrb[3].mxu1 }
  0xfc   :  { %v674_v41 = vadd.f32 %v991_v38, %v634_v37 }
 0x116   :  { %v1011_v42 = vpop.f32.mrb[4].mxu0 }
 0x117   :  { %v1012_v43 = vpop.f32.mrb[5].mxu0  ;;  %v1033_v44 = vpop.f32.mrb[4].mxu1 }
 0x118   :  { %v1013_v45 = vadd.f32 %v1012_v43, %v1011_v42  ;;  %v1014_v46 = vpop.f32.mrb[6].mxu0  ;;  %v1034_v47 = vpop.f32.mrb[5].mxu1 }
 0x119   :  { %v1015_v48 = vpop.f32.mrb[7].mxu0  ;;  %v1035_v50 = vadd.f32 %v1034_v47, %v1033_v44  ;;  %v1036_v51 = vpop.f32.mrb[6].mxu1 }
 0x11a   :  { %v714_v49 = vadd.f32 %v1013_v45, %v674_v41  ;;  %v1037_v52 = vpop.f32.mrb[7].mxu1 }
 0x11c   :  { %v754_v53 = vadd.f32 %v1035_v50, %v714_v49 }
 0x11e   :  { %v759_v54 = vmax.f32 %v754_v53, 0.0 }
 0x120   :  { %v760_v55 = vpack.c.bf16 %v759_v54, %v759_v54 }
 0x122   :  { %1065 = vmatmul.mubr.bf16.vlgmr.msra.gmra.mrb[8].mxu0 %v760_v55 }
 0x1f5   :  { %v866_v57 = vpop.f32.mrb[8].mxu0 }
 0x1f6   :  { %v867_v58 = vadd.f32 %v942_v56, %v866_v57  ;;  %v1066_v59 = vpop.f32.mrb[9].mxu0 }
 0x1f7   :  { %v869_v60 = vpop.f32.mrb[10].mxu0 }
 0x1f8   :  { %872 = vst [vmem:[%s1423_s5] sm:$0x3] %v867_v58  ;;  %v1067_v61 = vpop.f32.mrb[11].mxu0 }

</bundles_post_ra>
